<compile_context>
chip_gen: v7x
topology: tpu7x:2x2x1
jax: 0.10.0
libtpu: 0.0.40
codegen_flags: <defaults>
</compile_context>

<pallas_src>
import numpy as np

import jax
import jax.numpy as jnp
from jax import lax
from jax.experimental import pallas as pl
from jax.experimental.pallas import tpu as pltpu


# --------------------------------------------------------------------------- #
# Fused per-image kernel.
# --------------------------------------------------------------------------- #
def _cifarnet_kernel(x_ref, a1, b1, a2, b2,
                     pr1e, pr1o, pc1e, pc1o,
                     a3, b3, a4, b4,
                     pr2e, pr2o, pc2e, pc2o,
                     w1, bf1, w2, bf2,
                     o_ref,
                     s1, s3, s4, sp2):
    f32 = jnp.float32

    def band_conv_relu(src_ref, ho, a_ref, b_ref):
        # src_ref: (Hi, Wi*Cin), a_ref: (3, Wi*Cin, Wo*Cout), b_ref: (1, Wo*Cout)
        acc = jnp.dot(src_ref[pl.ds(0, ho), :], a_ref[0],
                      preferred_element_type=f32)
        acc = acc + jnp.dot(src_ref[pl.ds(1, ho), :], a_ref[1],
                            preferred_element_type=f32)
        acc = acc + jnp.dot(src_ref[pl.ds(2, ho), :], a_ref[2],
                            preferred_element_type=f32)
        return jnp.maximum(acc + b_ref[...], 0.0)

    def maxpool2(v, re_ref, ro_ref, ce_ref, co_ref):
        # v: (H, W*C) -> (H//2, (W//2)*C) via 0/1 selection matmuls + max.
        rows = jnp.maximum(
            jnp.dot(re_ref[...], v, preferred_element_type=f32),
            jnp.dot(ro_ref[...], v, preferred_element_type=f32))
        return jnp.maximum(
            jnp.dot(rows, ce_ref[...], preferred_element_type=f32),
            jnp.dot(rows, co_ref[...], preferred_element_type=f32))

    # conv1 (pad=1; rows pre-padded, W-pad folded into a1): (34,96) -> (32,256)
    s1[...] = band_conv_relu(x_ref, 32, a1, b1)

    # conv2 (pad=0): (32,256) -> (30,240)
    h2 = band_conv_relu(s1, 30, a2, b2)

    # pool1: (30,240) -> (15,120); stored in rows 1..15 of the zero-row-padded
    # conv3 input buffer (17,120).
    zrow = jnp.zeros((1, s3.shape[1]), f32)
    s3[pl.ds(0, 1), :] = zrow
    s3[pl.ds(16, 1), :] = zrow
    s3[pl.ds(1, 15), :] = maxpool2(h2, pr1e, pr1o, pc1e, pc1o)

    # conv3 (pad=1 via zero rows + banded a3): (17,120) -> (15,120)
    s4[...] = band_conv_relu(s3, 15, a3, b3)

    # conv4 (pad=0): (15,120) -> (13,104)
    h4 = band_conv_relu(s4, 13, a4, b4)

    # pool2 (floor mode): (13,104) -> (6,48)
    sp2[...] = maxpool2(h4, pr2e, pr2o, pc2e, pc2o)

    # fc1 + ReLU: sum_h (1,48)@(48,512)  (w1 rows already reordered to match
    # torch.flatten's NCHW order)
    acc = jnp.dot(sp2[pl.ds(0, 1), :], w1[0], preferred_element_type=f32)
    for h in range(1, 6):
        acc = acc + jnp.dot(sp2[pl.ds(h, 1), :], w1[h],
                            preferred_element_type=f32)
    z = jnp.maximum(acc + bf1[...], 0.0)

    # fc2: (1,512) -> (1,out_pad)  (out columns >= out_channels, zero padded)
    out = jnp.dot(z, w2[...], preferred_element_type=f32) + bf2[...]
    o_ref[...] = out.astype(o_ref.dtype)


# --------------------------------------------------------------------------- #
# One-time parameter-side preprocessing (PyTorch layouts -> kernel layouts).
# --------------------------------------------------------------------------- #
def _band_conv_mats(w_oihw, wi, pad):
    """Conv weight (Cout,Cin,3,3) -> (3, Wi*Cin, Wo*Cout) block-banded mats."""
    cout, cin, _, _ = w_oihw.shape
    wo = wi + 2 * pad - 2
    place = np.zeros((3, wi, wo), np.float32)
    for kw in range(3):
        for wo_i in range(wo):
            wi_i = wo_i + kw - pad
            if 0 <= wi_i < wi:
                place[kw, wi_i, wo_i] = 1.0
    w = jnp.transpose(w_oihw, (2, 3, 1, 0)).astype(jnp.float32)  # (kh,kw,ci,co)
    a = jnp.einsum('kvw,hkio->hviwo', jnp.asarray(place), w)
    return a.reshape(3, wi * cin, wo * cout)


def _pool_row_selectors(hin):
    hp = hin // 2
    e = np.zeros((hp, hin), np.float32)
    o = np.zeros((hp, hin), np.float32)
    e[np.arange(hp), 2 * np.arange(hp)] = 1.0
    o[np.arange(hp), 2 * np.arange(hp) + 1] = 1.0
    return jnp.asarray(e), jnp.asarray(o)


def _pool_col_selectors(win, c):
    wp = win // 2
    e = np.zeros((win * c, wp * c), np.float32)
    o = np.zeros((win * c, wp * c), np.float32)
    for w in range(wp):
        for ci in range(c):
            e[(2 * w) * c + ci, w * c + ci] = 1.0
            o[(2 * w + 1) * c + ci, w * c + ci] = 1.0
    return jnp.asarray(e), jnp.asarray(o)


def prepare_params(p):
    l1 = p['conv1_w'].shape[0]
    l2 = p['conv2_w'].shape[0]
    l3 = p['conv3_w'].shape[0]
    l4 = p['conv4_w'].shape[0]
    d1 = p['fc1_w'].shape[0]            # 512

    pr1e, pr1o = _pool_row_selectors(30)
    pc1e, pc1o = _pool_col_selectors(30, l2)
    pr2e, pr2o = _pool_row_selectors(13)
    pc2e, pc2o = _pool_col_selectors(13, l4)

    # fc1: PyTorch flat index is c*36 + h*6 + w; kernel rows are (h, w*l4 + c).
    w1 = p['fc1_w'].reshape(d1, l4, 6, 6)           # (o, c, h, w)
    w1 = jnp.transpose(w1, (2, 3, 1, 0)).reshape(6, 6 * l4, d1)

    return {
        'a1': _band_conv_mats(p['conv1_w'], 32, 1),
        'b1': jnp.tile(p['conv1_b'], 32).reshape(1, 32 * l1),
        'a2': _band_conv_mats(p['conv2_w'], 32, 0),
        'b2': jnp.tile(p['conv2_b'], 30).reshape(1, 30 * l2),
        'pr1e': pr1e, 'pr1o': pr1o, 'pc1e': pc1e, 'pc1o': pc1o,
        'a3': _band_conv_mats(p['conv3_w'], 15, 1),
        'b3': jnp.tile(p['conv3_b'], 15).reshape(1, 15 * l3),
        'a4': _band_conv_mats(p['conv4_w'], 15, 0),
        'b4': jnp.tile(p['conv4_b'], 13).reshape(1, 13 * l4),
        'pr2e': pr2e, 'pr2o': pr2o, 'pc2e': pc2e, 'pc2o': pc2o,
        'w1': w1,
        'bf1': p['fc1_b'].reshape(1, d1),
        'w2': p['fc2_w'].T,
        'bf2': p['fc2_b'].reshape(1, -1),
    }


# --------------------------------------------------------------------------- #
# Forward pass (takes PyTorch-layout input + preprocessed params).
# --------------------------------------------------------------------------- #
def cifarnet_forward(x_nchw, prep):
    n, cin = x_nchw.shape[0], x_nchw.shape[1]
    l1 = prep['a1'].shape[2] // 32
    l2 = prep['a2'].shape[2] // 30
    l3 = prep['a3'].shape[2] // 15
    l4 = prep['a4'].shape[2] // 13
    out_ch = prep['w2'].shape[1]

    # Lane-dense output: pad fc2 to a multiple of 128 output lanes so the
    # per-image output store is an unmasked full-lane store.  Extra columns
    # are exactly zero (zero weight column + zero bias) and sliced off below.
    out_pad = ((out_ch + 127) // 128) * 128
    w2 = jnp.pad(prep['w2'], ((0, 0), (0, out_pad - out_ch)))
    bf2 = jnp.pad(prep['bf2'], ((0, 0), (0, out_pad - out_ch)))

    # NCHW -> row-padded, lane-packed (N, 34, 32*Cin).  W padding is folded
    # into the banded conv matrices; H padding is these two zero rows.
    x = jnp.transpose(x_nchw, (0, 2, 3, 1))
    x = jnp.pad(x, ((0, 0), (1, 1), (0, 0), (0, 0)))
    x = x.reshape(n, 34, 32 * cin)

    order = ('a1', 'b1', 'a2', 'b2', 'pr1e', 'pr1o', 'pc1e', 'pc1o',
             'a3', 'b3', 'a4', 'b4', 'pr2e', 'pr2o', 'pc2e', 'pc2o',
             'w1', 'bf1')
    consts = [prep[k] for k in order] + [w2, bf2]

    def const_spec(arr):
        if arr.ndim == 2:
            return pl.BlockSpec(arr.shape, lambda i: (0, 0))
        return pl.BlockSpec(arr.shape, lambda i: (0, 0, 0))

    in_specs = [pl.BlockSpec((None, 34, 32 * cin), lambda i: (i, 0, 0))]
    in_specs += [const_spec(a) for a in consts]

    out = pl.pallas_call(
        _cifarnet_kernel,
        grid=(n,),
        out_shape=jax.ShapeDtypeStruct((n, 1, out_pad), jnp.float32),
        in_specs=in_specs,
        out_specs=pl.BlockSpec((None, 1, out_pad), lambda i: (i, 0, 0)),
        scratch_shapes=[
            pltpu.VMEM((32, 32 * l1), jnp.float32),  # conv1 out / conv2 in
            pltpu.VMEM((17, 15 * l2), jnp.float32),  # pool1 out + zero pad rows
            pltpu.VMEM((15, 15 * l3), jnp.float32),  # conv3 out / conv4 in
            pltpu.VMEM((6, 6 * l4), jnp.float32),    # pool2 out / fc1 in
        ],
        compiler_params=pltpu.CompilerParams(
            dimension_semantics=("parallel",),
            vmem_limit_bytes=16 * 1024 * 1024),
    )(x, *consts)
    return out.reshape(n, out_pad)[:, :out_ch]


# --------------------------------------------------------------------------- #
# Pure-JAX reference (mirrors the PyTorch module) for the correctness check.
# --------------------------------------------------------------------------- #
def reference_forward(x, p):
    def conv(o, w, b, pad):
        y = lax.conv_general_dilated(
            o, w, window_strides=(1, 1), padding=[(pad, pad), (pad, pad)],
            dimension_numbers=('NCHW', 'OIHW', 'NCHW'))
        return y + b[None, :, None, None]

    def maxpool(o):
        return lax.reduce_window(o, -jnp.inf, lax.max,
                                 (1, 1, 2, 2), (1, 1, 2, 2), 'VALID')

    relu = jax.nn.relu
    o = relu(conv(x, p['conv1_w'], p['conv1_b'], 1))
    o = relu(conv(o, p['conv2_w'], p['conv2_b'], 0))
    o = maxpool(o)
    o = relu(conv(o, p['conv3_w'], p['conv3_b'], 1))
    o = relu(conv(o, p['conv4_w'], p['conv4_b'], 0))
    o = maxpool(o)
    o = o.reshape(o.shape[0], -1)
    o = relu(o @ p['fc1_w'].T + p['fc1_b'])
    o = o @ p['fc2_w'].T + p['fc2_b']
    return o


def init_params(key, in_channels, out_channels, l1, l2, l3, l4):
    ks = jax.random.split(key, 12)

    def u(k, shape, fan_in):
        bound = 1.0 / np.sqrt(fan_in)
        return jax.random.uniform(k, shape, jnp.float32, -bound, bound)

    return {
        'conv1_w': u(ks[0], (l1, in_channels, 3, 3), in_channels * 9),
        'conv1_b': u(ks[1], (l1,), in_channels * 9),
        'conv2_w': u(ks[2], (l2, l1, 3, 3), l1 * 9),
        'conv2_b': u(ks[3], (l2,), l1 * 9),
        'conv3_w': u(ks[4], (l3, l2, 3, 3), l2 * 9),
        'conv3_b': u(ks[5], (l3,), l2 * 9),
        'conv4_w': u(ks[6], (l4, l3, 3, 3), l3 * 9),
        'conv4_b': u(ks[7], (l4,), l3 * 9),
        'fc1_w': u(ks[8], (512, l4 * 6 * 6), l4 * 6 * 6),
        'fc1_b': u(ks[9], (512,), l4 * 6 * 6),
        'fc2_w': u(ks[10], (out_channels, 512), 512),
        'fc2_b': u(ks[11], (out_channels,), 512),
    }


if __name__ == "__main__":
    key = jax.random.PRNGKey(0)
    k_x, k_p = jax.random.split(key)

    # 32x32 spatial is required by the module (Linear(l4*6*6, 512)).
    in_channels, out_channels = 3, 10
    l1, l2, l3, l4 = 8, 8, 8, 8
    batch = 2

    x = jax.random.normal(k_x, (batch, in_channels, 32, 32), jnp.float32)  # NCHW
    params = init_params(k_p, in_channels, out_channels, l1, l2, l3, l4)

    # One-time parameter-side preprocessing (outside the jitted forward).
    prep = prepare_params(params)

    out = jax.jit(cifarnet_forward)(x, prep)
    out = jax.block_until_ready(out)

    ref = jax.jit(reference_forward)(x, params)
    ref = jax.block_until_ready(ref)

    assert out.shape == (batch, out_channels), out.shape
    err = float(jnp.max(jnp.abs(out - ref)))
    if not np.isfinite(err) or err > 5e-2:
        raise AssertionError(f"Pallas output mismatch vs reference, max abs err = {err}")

    print("KERNEL_OK")
</pallas_src>

<mosaic_0001>
module attributes {stable_mosaic.version = 11 : i64} {
  func.func @_cifarnet_kernel(%arg0: i32, %arg1: memref<1x34x96xf32, #tpu.memory_space<vmem>>, %arg2: memref<3x96x256xf32, #tpu.memory_space<vmem>>, %arg3: memref<1x256xf32, #tpu.memory_space<vmem>>, %arg4: memref<3x256x240xf32, #tpu.memory_space<vmem>>, %arg5: memref<1x240xf32, #tpu.memory_space<vmem>>, %arg6: memref<15x30xf32, #tpu.memory_space<vmem>>, %arg7: memref<15x30xf32, #tpu.memory_space<vmem>>, %arg8: memref<240x120xf32, #tpu.memory_space<vmem>>, %arg9: memref<240x120xf32, #tpu.memory_space<vmem>>, %arg10: memref<3x120x120xf32, #tpu.memory_space<vmem>>, %arg11: memref<1x120xf32, #tpu.memory_space<vmem>>, %arg12: memref<3x120x104xf32, #tpu.memory_space<vmem>>, %arg13: memref<1x104xf32, #tpu.memory_space<vmem>>, %arg14: memref<6x13xf32, #tpu.memory_space<vmem>>, %arg15: memref<6x13xf32, #tpu.memory_space<vmem>>, %arg16: memref<104x48xf32, #tpu.memory_space<vmem>>, %arg17: memref<104x48xf32, #tpu.memory_space<vmem>>, %arg18: memref<6x48x512xf32, #tpu.memory_space<vmem>>, %arg19: memref<1x512xf32, #tpu.memory_space<vmem>>, %arg20: memref<512x128xf32, #tpu.memory_space<vmem>>, %arg21: memref<1x128xf32, #tpu.memory_space<vmem>>, %arg22: memref<1x1x128xf32, #tpu.memory_space<vmem>>, %arg23: memref<32x256xf32, #tpu.memory_space<vmem>>, %arg24: memref<17x120xf32, #tpu.memory_space<vmem>>, %arg25: memref<15x120xf32, #tpu.memory_space<vmem>>, %arg26: memref<6x48xf32, #tpu.memory_space<vmem>>) attributes {dimension_semantics = [#tpu.dimension_semantics<parallel>], iteration_bounds = array<i64: 2>, scalar_prefetch = 0 : i64, scratch_operands = 4 : i64, tpu.core_type = #tpu.core_type<tc>, window_params = [{transform_indices = @transform_0, window_bounds = array<i64: 1, 34, 96>}, {pipeline_mode = #tpu.pipeline_mode<synchronous>, transform_indices = @transform_1, window_bounds = array<i64: 3, 96, 256>}, {pipeline_mode = #tpu.pipeline_mode<synchronous>, transform_indices = @transform_2, window_bounds = array<i64: 1, 256>}, {pipeline_mode = #tpu.pipeline_mode<synchronous>, transform_indices = @transform_3, window_bounds = array<i64: 3, 256, 240>}, {pipeline_mode = #tpu.pipeline_mode<synchronous>, transform_indices = @transform_4, window_bounds = array<i64: 1, 240>}, {pipeline_mode = #tpu.pipeline_mode<synchronous>, transform_indices = @transform_5, window_bounds = array<i64: 15, 30>}, {pipeline_mode = #tpu.pipeline_mode<synchronous>, transform_indices = @transform_6, window_bounds = array<i64: 15, 30>}, {pipeline_mode = #tpu.pipeline_mode<synchronous>, transform_indices = @transform_7, window_bounds = array<i64: 240, 120>}, {pipeline_mode = #tpu.pipeline_mode<synchronous>, transform_indices = @transform_8, window_bounds = array<i64: 240, 120>}, {pipeline_mode = #tpu.pipeline_mode<synchronous>, transform_indices = @transform_9, window_bounds = array<i64: 3, 120, 120>}, {pipeline_mode = #tpu.pipeline_mode<synchronous>, transform_indices = @transform_10, window_bounds = array<i64: 1, 120>}, {pipeline_mode = #tpu.pipeline_mode<synchronous>, transform_indices = @transform_11, window_bounds = array<i64: 3, 120, 104>}, {pipeline_mode = #tpu.pipeline_mode<synchronous>, transform_indices = @transform_12, window_bounds = array<i64: 1, 104>}, {pipeline_mode = #tpu.pipeline_mode<synchronous>, transform_indices = @transform_13, window_bounds = array<i64: 6, 13>}, {pipeline_mode = #tpu.pipeline_mode<synchronous>, transform_indices = @transform_14, window_bounds = array<i64: 6, 13>}, {pipeline_mode = #tpu.pipeline_mode<synchronous>, transform_indices = @transform_15, window_bounds = array<i64: 104, 48>}, {pipeline_mode = #tpu.pipeline_mode<synchronous>, transform_indices = @transform_16, window_bounds = array<i64: 104, 48>}, {pipeline_mode = #tpu.pipeline_mode<synchronous>, transform_indices = @transform_17, window_bounds = array<i64: 6, 48, 512>}, {pipeline_mode = #tpu.pipeline_mode<synchronous>, transform_indices = @transform_18, window_bounds = array<i64: 1, 512>}, {pipeline_mode = #tpu.pipeline_mode<synchronous>, transform_indices = @transform_19, window_bounds = array<i64: 512, 128>}, {pipeline_mode = #tpu.pipeline_mode<synchronous>, transform_indices = @transform_20, window_bounds = array<i64: 1, 128>}, {transform_indices = @transform_21, window_bounds = array<i64: 1, 1, 128>}]} {
    %c0 = arith.constant 0 : index
    %c0_0 = arith.constant 0 : index
    %c0_1 = arith.constant 0 : index
    %0 = vector.load %arg1[%c0, %c0_0, %c0_1] : memref<1x34x96xf32, #tpu.memory_space<vmem>>, vector<1x32x96xf32>
    %1 = vector.shape_cast %0 : vector<1x32x96xf32> to vector<32x96xf32>
    %c0_2 = arith.constant 0 : index
    %c0_3 = arith.constant 0 : index
    %c0_4 = arith.constant 0 : index
    %2 = vector.load %arg2[%c0_2, %c0_3, %c0_4] : memref<3x96x256xf32, #tpu.memory_space<vmem>>, vector<1x96x256xf32>
    %3 = vector.shape_cast %2 : vector<1x96x256xf32> to vector<96x256xf32>
    %cst = arith.constant dense<0.000000e+00> : vector<32x256xf32>
    %4 = tpu.matmul %1, %3, %cst {dimension_numbers = #tpu.dot_dimension_numbers<[1], [0], [0], [1], [0, 0, 1, 1], [], []>} : vector<32x96xf32>, vector<96x256xf32>, vector<32x256xf32> -> vector<32x256xf32>
    %c0_5 = arith.constant 0 : index
    %c1 = arith.constant 1 : index
    %c0_6 = arith.constant 0 : index
    %5 = vector.load %arg1[%c0_5, %c1, %c0_6] : memref<1x34x96xf32, #tpu.memory_space<vmem>>, vector<1x32x96xf32>
    %6 = vector.shape_cast %5 : vector<1x32x96xf32> to vector<32x96xf32>
    %c1_7 = arith.constant 1 : index
    %c0_8 = arith.constant 0 : index
    %c0_9 = arith.constant 0 : index
    %7 = vector.load %arg2[%c1_7, %c0_8, %c0_9] : memref<3x96x256xf32, #tpu.memory_space<vmem>>, vector<1x96x256xf32>
    %8 = vector.shape_cast %7 : vector<1x96x256xf32> to vector<96x256xf32>
    %cst_10 = arith.constant dense<0.000000e+00> : vector<32x256xf32>
    %9 = tpu.matmul %6, %8, %cst_10 {dimension_numbers = #tpu.dot_dimension_numbers<[1], [0], [0], [1], [0, 0, 1, 1], [], []>} : vector<32x96xf32>, vector<96x256xf32>, vector<32x256xf32> -> vector<32x256xf32>
    %10 = arith.addf %4, %9 : vector<32x256xf32>
    %c0_11 = arith.constant 0 : index
    %c2 = arith.constant 2 : index
    %c0_12 = arith.constant 0 : index
    %11 = vector.load %arg1[%c0_11, %c2, %c0_12] : memref<1x34x96xf32, #tpu.memory_space<vmem>>, vector<1x32x96xf32>
    %12 = vector.shape_cast %11 : vector<1x32x96xf32> to vector<32x96xf32>
    %c2_13 = arith.constant 2 : index
    %c0_14 = arith.constant 0 : index
    %c0_15 = arith.constant 0 : index
    %13 = vector.load %arg2[%c2_13, %c0_14, %c0_15] : memref<3x96x256xf32, #tpu.memory_space<vmem>>, vector<1x96x256xf32>
    %14 = vector.shape_cast %13 : vector<1x96x256xf32> to vector<96x256xf32>
    %cst_16 = arith.constant dense<0.000000e+00> : vector<32x256xf32>
    %15 = tpu.matmul %12, %14, %cst_16 {dimension_numbers = #tpu.dot_dimension_numbers<[1], [0], [0], [1], [0, 0, 1, 1], [], []>} : vector<32x96xf32>, vector<96x256xf32>, vector<32x256xf32> -> vector<32x256xf32>
    %16 = arith.addf %10, %15 : vector<32x256xf32>
    %c0_17 = arith.constant 0 : index
    %c0_18 = arith.constant 0 : index
    %17 = vector.load %arg3[%c0_17, %c0_18] : memref<1x256xf32, #tpu.memory_space<vmem>>, vector<1x256xf32>
    %18 = vector.broadcast %17 : vector<1x256xf32> to vector<32x256xf32>
    %19 = arith.addf %16, %18 : vector<32x256xf32>
    %cst_19 = arith.constant 0.000000e+00 : f32
    %20 = vector.broadcast %cst_19 : f32 to vector<32x256xf32>
    %21 = arith.maximumf %19, %20 : vector<32x256xf32>
    %c0_20 = arith.constant 0 : index
    %c0_21 = arith.constant 0 : index
    %22 = vector.load %arg23[%c0_20, %c0_21] : memref<32x256xf32, #tpu.memory_space<vmem>>, vector<32x256xf32>
    tpu.vector_store %arg23[%c0_20, %c0_21], %21 {strides = array<i32>} : memref<32x256xf32, #tpu.memory_space<vmem>>, vector<32x256xf32>,
    %c0_22 = arith.constant 0 : index
    %c0_23 = arith.constant 0 : index
    %23 = vector.load %arg23[%c0_22, %c0_23] : memref<32x256xf32, #tpu.memory_space<vmem>>, vector<30x256xf32>
    %c0_24 = arith.constant 0 : index
    %c0_25 = arith.constant 0 : index
    %c0_26 = arith.constant 0 : index
    %24 = vector.load %arg4[%c0_24, %c0_25, %c0_26] : memref<3x256x240xf32, #tpu.memory_space<vmem>>, vector<1x256x240xf32>
    %25 = vector.shape_cast %24 : vector<1x256x240xf32> to vector<256x240xf32>
    %cst_27 = arith.constant dense<0.000000e+00> : vector<30x240xf32>
    %26 = tpu.matmul %23, %25, %cst_27 {dimension_numbers = #tpu.dot_dimension_numbers<[1], [0], [0], [1], [0, 0, 1, 1], [], []>} : vector<30x256xf32>, vector<256x240xf32>, vector<30x240xf32> -> vector<30x240xf32>
    %c1_28 = arith.constant 1 : index
    %c0_29 = arith.constant 0 : index
    %27 = vector.load %arg23[%c1_28, %c0_29] : memref<32x256xf32, #tpu.memory_space<vmem>>, vector<30x256xf32>
    %c1_30 = arith.constant 1 : index
    %c0_31 = arith.constant 0 : index
    %c0_32 = arith.constant 0 : index
    %28 = vector.load %arg4[%c1_30, %c0_31, %c0_32] : memref<3x256x240xf32, #tpu.memory_space<vmem>>, vector<1x256x240xf32>
    %29 = vector.shape_cast %28 : vector<1x256x240xf32> to vector<256x240xf32>
    %cst_33 = arith.constant dense<0.000000e+00> : vector<30x240xf32>
    %30 = tpu.matmul %27, %29, %cst_33 {dimension_numbers = #tpu.dot_dimension_numbers<[1], [0], [0], [1], [0, 0, 1, 1], [], []>} : vector<30x256xf32>, vector<256x240xf32>, vector<30x240xf32> -> vector<30x240xf32>
    %31 = arith.addf %26, %30 : vector<30x240xf32>
    %c2_34 = arith.constant 2 : index
    %c0_35 = arith.constant 0 : index
    %32 = vector.load %arg23[%c2_34, %c0_35] : memref<32x256xf32, #tpu.memory_space<vmem>>, vector<30x256xf32>
    %c2_36 = arith.constant 2 : index
    %c0_37 = arith.constant 0 : index
    %c0_38 = arith.constant 0 : index
    %33 = vector.load %arg4[%c2_36, %c0_37, %c0_38] : memref<3x256x240xf32, #tpu.memory_space<vmem>>, vector<1x256x240xf32>
    %34 = vector.shape_cast %33 : vector<1x256x240xf32> to vector<256x240xf32>
    %cst_39 = arith.constant dense<0.000000e+00> : vector<30x240xf32>
    %35 = tpu.matmul %32, %34, %cst_39 {dimension_numbers = #tpu.dot_dimension_numbers<[1], [0], [0], [1], [0, 0, 1, 1], [], []>} : vector<30x256xf32>, vector<256x240xf32>, vector<30x240xf32> -> vector<30x240xf32>
    %36 = arith.addf %31, %35 : vector<30x240xf32>
    %c0_40 = arith.constant 0 : index
    %c0_41 = arith.constant 0 : index
    %37 = vector.load %arg5[%c0_40, %c0_41] : memref<1x240xf32, #tpu.memory_space<vmem>>, vector<1x240xf32>
    %38 = vector.broadcast %37 : vector<1x240xf32> to vector<30x240xf32>
    %39 = arith.addf %36, %38 : vector<30x240xf32>
    %cst_42 = arith.constant 0.000000e+00 : f32
    %40 = vector.broadcast %cst_42 : f32 to vector<30x240xf32>
    %41 = arith.maximumf %39, %40 : vector<30x240xf32>
    %cst_43 = arith.constant 0.000000e+00 : f32
    %42 = vector.broadcast %cst_43 : f32 to vector<1x120xf32>
    %c0_44 = arith.constant 0 : index
    %c0_45 = arith.constant 0 : index
    %43 = vector.load %arg24[%c0_44, %c0_45] : memref<17x120xf32, #tpu.memory_space<vmem>>, vector<1x120xf32>
    tpu.vector_store %arg24[%c0_44, %c0_45], %42 {strides = array<i32>} : memref<17x120xf32, #tpu.memory_space<vmem>>, vector<1x120xf32>,
    %c16 = arith.constant 16 : index
    %c0_46 = arith.constant 0 : index
    %44 = vector.load %arg24[%c16, %c0_46] : memref<17x120xf32, #tpu.memory_space<vmem>>, vector<1x120xf32>
    tpu.vector_store %arg24[%c16, %c0_46], %42 {strides = array<i32>} : memref<17x120xf32, #tpu.memory_space<vmem>>, vector<1x120xf32>,
    %c0_47 = arith.constant 0 : index
    %c0_48 = arith.constant 0 : index
    %45 = vector.load %arg6[%c0_47, %c0_48] : memref<15x30xf32, #tpu.memory_space<vmem>>, vector<15x30xf32>
    %cst_49 = arith.constant dense<0.000000e+00> : vector<15x240xf32>
    %46 = tpu.matmul %45, %41, %cst_49 {dimension_numbers = #tpu.dot_dimension_numbers<[1], [0], [0], [1], [0, 0, 1, 1], [], []>} : vector<15x30xf32>, vector<30x240xf32>, vector<15x240xf32> -> vector<15x240xf32>
    %c0_50 = arith.constant 0 : index
    %c0_51 = arith.constant 0 : index
    %47 = vector.load %arg7[%c0_50, %c0_51] : memref<15x30xf32, #tpu.memory_space<vmem>>, vector<15x30xf32>
    %cst_52 = arith.constant dense<0.000000e+00> : vector<15x240xf32>
    %48 = tpu.matmul %47, %41, %cst_52 {dimension_numbers = #tpu.dot_dimension_numbers<[1], [0], [0], [1], [0, 0, 1, 1], [], []>} : vector<15x30xf32>, vector<30x240xf32>, vector<15x240xf32> -> vector<15x240xf32>
    %49 = arith.maximumf %46, %48 : vector<15x240xf32>
    %c0_53 = arith.constant 0 : index
    %c0_54 = arith.constant 0 : index
    %50 = vector.load %arg8[%c0_53, %c0_54] : memref<240x120xf32, #tpu.memory_space<vmem>>, vector<240x120xf32>
    %cst_55 = arith.constant dense<0.000000e+00> : vector<15x120xf32>
    %51 = tpu.matmul %49, %50, %cst_55 {dimension_numbers = #tpu.dot_dimension_numbers<[1], [0], [0], [1], [0, 0, 1, 1], [], []>} : vector<15x240xf32>, vector<240x120xf32>, vector<15x120xf32> -> vector<15x120xf32>
    %c0_56 = arith.constant 0 : index
    %c0_57 = arith.constant 0 : index
    %52 = vector.load %arg9[%c0_56, %c0_57] : memref<240x120xf32, #tpu.memory_space<vmem>>, vector<240x120xf32>
    %cst_58 = arith.constant dense<0.000000e+00> : vector<15x120xf32>
    %53 = tpu.matmul %49, %52, %cst_58 {dimension_numbers = #tpu.dot_dimension_numbers<[1], [0], [0], [1], [0, 0, 1, 1], [], []>} : vector<15x240xf32>, vector<240x120xf32>, vector<15x120xf32> -> vector<15x120xf32>
    %54 = arith.maximumf %51, %53 : vector<15x120xf32>
    %c1_59 = arith.constant 1 : index
    %c0_60 = arith.constant 0 : index
    %55 = vector.load %arg24[%c1_59, %c0_60] : memref<17x120xf32, #tpu.memory_space<vmem>>, vector<15x120xf32>
    tpu.vector_store %arg24[%c1_59, %c0_60], %54 {strides = array<i32>} : memref<17x120xf32, #tpu.memory_space<vmem>>, vector<15x120xf32>,
    %c0_61 = arith.constant 0 : index
    %c0_62 = arith.constant 0 : index
    %56 = vector.load %arg24[%c0_61, %c0_62] : memref<17x120xf32, #tpu.memory_space<vmem>>, vector<15x120xf32>
    %c0_63 = arith.constant 0 : index
    %c0_64 = arith.constant 0 : index
    %c0_65 = arith.constant 0 : index
    %57 = vector.load %arg10[%c0_63, %c0_64, %c0_65] : memref<3x120x120xf32, #tpu.memory_space<vmem>>, vector<1x120x120xf32>
    %58 = vector.shape_cast %57 : vector<1x120x120xf32> to vector<120x120xf32>
    %cst_66 = arith.constant dense<0.000000e+00> : vector<15x120xf32>
    %59 = tpu.matmul %56, %58, %cst_66 {dimension_numbers = #tpu.dot_dimension_numbers<[1], [0], [0], [1], [0, 0, 1, 1], [], []>} : vector<15x120xf32>, vector<120x120xf32>, vector<15x120xf32> -> vector<15x120xf32>
    %c1_67 = arith.constant 1 : index
    %c0_68 = arith.constant 0 : index
    %60 = vector.load %arg24[%c1_67, %c0_68] : memref<17x120xf32, #tpu.memory_space<vmem>>, vector<15x120xf32>
    %c1_69 = arith.constant 1 : index
    %c0_70 = arith.constant 0 : index
    %c0_71 = arith.constant 0 : index
    %61 = vector.load %arg10[%c1_69, %c0_70, %c0_71] : memref<3x120x120xf32, #tpu.memory_space<vmem>>, vector<1x120x120xf32>
    %62 = vector.shape_cast %61 : vector<1x120x120xf32> to vector<120x120xf32>
    %cst_72 = arith.constant dense<0.000000e+00> : vector<15x120xf32>
    %63 = tpu.matmul %60, %62, %cst_72 {dimension_numbers = #tpu.dot_dimension_numbers<[1], [0], [0], [1], [0, 0, 1, 1], [], []>} : vector<15x120xf32>, vector<120x120xf32>, vector<15x120xf32> -> vector<15x120xf32>
    %64 = arith.addf %59, %63 : vector<15x120xf32>
    %c2_73 = arith.constant 2 : index
    %c0_74 = arith.constant 0 : index
    %65 = vector.load %arg24[%c2_73, %c0_74] : memref<17x120xf32, #tpu.memory_space<vmem>>, vector<15x120xf32>
    %c2_75 = arith.constant 2 : index
    %c0_76 = arith.constant 0 : index
    %c0_77 = arith.constant 0 : index
    %66 = vector.load %arg10[%c2_75, %c0_76, %c0_77] : memref<3x120x120xf32, #tpu.memory_space<vmem>>, vector<1x120x120xf32>
    %67 = vector.shape_cast %66 : vector<1x120x120xf32> to vector<120x120xf32>
    %cst_78 = arith.constant dense<0.000000e+00> : vector<15x120xf32>
    %68 = tpu.matmul %65, %67, %cst_78 {dimension_numbers = #tpu.dot_dimension_numbers<[1], [0], [0], [1], [0, 0, 1, 1], [], []>} : vector<15x120xf32>, vector<120x120xf32>, vector<15x120xf32> -> vector<15x120xf32>
    %69 = arith.addf %64, %68 : vector<15x120xf32>
    %c0_79 = arith.constant 0 : index
    %c0_80 = arith.constant 0 : index
    %70 = vector.load %arg11[%c0_79, %c0_80] : memref<1x120xf32, #tpu.memory_space<vmem>>, vector<1x120xf32>
    %71 = vector.broadcast %70 : vector<1x120xf32> to vector<15x120xf32>
    %72 = arith.addf %69, %71 : vector<15x120xf32>
    %cst_81 = arith.constant 0.000000e+00 : f32
    %73 = vector.broadcast %cst_81 : f32 to vector<15x120xf32>
    %74 = arith.maximumf %72, %73 : vector<15x120xf32>
    %c0_82 = arith.constant 0 : index
    %c0_83 = arith.constant 0 : index
    %75 = vector.load %arg25[%c0_82, %c0_83] : memref<15x120xf32, #tpu.memory_space<vmem>>, vector<15x120xf32>
    tpu.vector_store %arg25[%c0_82, %c0_83], %74 {strides = array<i32>} : memref<15x120xf32, #tpu.memory_space<vmem>>, vector<15x120xf32>,
    %c0_84 = arith.constant 0 : index
    %c0_85 = arith.constant 0 : index
    %76 = vector.load %arg25[%c0_84, %c0_85] : memref<15x120xf32, #tpu.memory_space<vmem>>, vector<13x120xf32>
    %c0_86 = arith.constant 0 : index
    %c0_87 = arith.constant 0 : index
    %c0_88 = arith.constant 0 : index
    %77 = vector.load %arg12[%c0_86, %c0_87, %c0_88] : memref<3x120x104xf32, #tpu.memory_space<vmem>>, vector<1x120x104xf32>
    %78 = vector.shape_cast %77 : vector<1x120x104xf32> to vector<120x104xf32>
    %cst_89 = arith.constant dense<0.000000e+00> : vector<13x104xf32>
    %79 = tpu.matmul %76, %78, %cst_89 {dimension_numbers = #tpu.dot_dimension_numbers<[1], [0], [0], [1], [0, 0, 1, 1], [], []>} : vector<13x120xf32>, vector<120x104xf32>, vector<13x104xf32> -> vector<13x104xf32>
    %c1_90 = arith.constant 1 : index
    %c0_91 = arith.constant 0 : index
    %80 = vector.load %arg25[%c1_90, %c0_91] : memref<15x120xf32, #tpu.memory_space<vmem>>, vector<13x120xf32>
    %c1_92 = arith.constant 1 : index
    %c0_93 = arith.constant 0 : index
    %c0_94 = arith.constant 0 : index
    %81 = vector.load %arg12[%c1_92, %c0_93, %c0_94] : memref<3x120x104xf32, #tpu.memory_space<vmem>>, vector<1x120x104xf32>
    %82 = vector.shape_cast %81 : vector<1x120x104xf32> to vector<120x104xf32>
    %cst_95 = arith.constant dense<0.000000e+00> : vector<13x104xf32>
    %83 = tpu.matmul %80, %82, %cst_95 {dimension_numbers = #tpu.dot_dimension_numbers<[1], [0], [0], [1], [0, 0, 1, 1], [], []>} : vector<13x120xf32>, vector<120x104xf32>, vector<13x104xf32> -> vector<13x104xf32>
    %84 = arith.addf %79, %83 : vector<13x104xf32>
    %c2_96 = arith.constant 2 : index
    %c0_97 = arith.constant 0 : index
    %85 = vector.load %arg25[%c2_96, %c0_97] : memref<15x120xf32, #tpu.memory_space<vmem>>, vector<13x120xf32>
    %c2_98 = arith.constant 2 : index
    %c0_99 = arith.constant 0 : index
    %c0_100 = arith.constant 0 : index
    %86 = vector.load %arg12[%c2_98, %c0_99, %c0_100] : memref<3x120x104xf32, #tpu.memory_space<vmem>>, vector<1x120x104xf32>
    %87 = vector.shape_cast %86 : vector<1x120x104xf32> to vector<120x104xf32>
    %cst_101 = arith.constant dense<0.000000e+00> : vector<13x104xf32>
    %88 = tpu.matmul %85, %87, %cst_101 {dimension_numbers = #tpu.dot_dimension_numbers<[1], [0], [0], [1], [0, 0, 1, 1], [], []>} : vector<13x120xf32>, vector<120x104xf32>, vector<13x104xf32> -> vector<13x104xf32>
    %89 = arith.addf %84, %88 : vector<13x104xf32>
    %c0_102 = arith.constant 0 : index
    %c0_103 = arith.constant 0 : index
    %90 = vector.load %arg13[%c0_102, %c0_103] : memref<1x104xf32, #tpu.memory_space<vmem>>, vector<1x104xf32>
    %91 = vector.broadcast %90 : vector<1x104xf32> to vector<13x104xf32>
    %92 = arith.addf %89, %91 : vector<13x104xf32>
    %cst_104 = arith.constant 0.000000e+00 : f32
    %93 = vector.broadcast %cst_104 : f32 to vector<13x104xf32>
    %94 = arith.maximumf %92, %93 : vector<13x104xf32>
    %c0_105 = arith.constant 0 : index
    %c0_106 = arith.constant 0 : index
    %95 = vector.load %arg14[%c0_105, %c0_106] : memref<6x13xf32, #tpu.memory_space<vmem>>, vector<6x13xf32>
    %cst_107 = arith.constant dense<0.000000e+00> : vector<6x104xf32>
    %96 = tpu.matmul %95, %94, %cst_107 {dimension_numbers = #tpu.dot_dimension_numbers<[1], [0], [0], [1], [0, 0, 1, 1], [], []>} : vector<6x13xf32>, vector<13x104xf32>, vector<6x104xf32> -> vector<6x104xf32>
    %c0_108 = arith.constant 0 : index
    %c0_109 = arith.constant 0 : index
    %97 = vector.load %arg15[%c0_108, %c0_109] : memref<6x13xf32, #tpu.memory_space<vmem>>, vector<6x13xf32>
    %cst_110 = arith.constant dense<0.000000e+00> : vector<6x104xf32>
    %98 = tpu.matmul %97, %94, %cst_110 {dimension_numbers = #tpu.dot_dimension_numbers<[1], [0], [0], [1], [0, 0, 1, 1], [], []>} : vector<6x13xf32>, vector<13x104xf32>, vector<6x104xf32> -> vector<6x104xf32>
    %99 = arith.maximumf %96, %98 : vector<6x104xf32>
    %c0_111 = arith.constant 0 : index
    %c0_112 = arith.constant 0 : index
    %100 = vector.load %arg16[%c0_111, %c0_112] : memref<104x48xf32, #tpu.memory_space<vmem>>, vector<104x48xf32>
    %cst_113 = arith.constant dense<0.000000e+00> : vector<6x48xf32>
    %101 = tpu.matmul %99, %100, %cst_113 {dimension_numbers = #tpu.dot_dimension_numbers<[1], [0], [0], [1], [0, 0, 1, 1], [], []>} : vector<6x104xf32>, vector<104x48xf32>, vector<6x48xf32> -> vector<6x48xf32>
    %c0_114 = arith.constant 0 : index
    %c0_115 = arith.constant 0 : index
    %102 = vector.load %arg17[%c0_114, %c0_115] : memref<104x48xf32, #tpu.memory_space<vmem>>, vector<104x48xf32>
    %cst_116 = arith.constant dense<0.000000e+00> : vector<6x48xf32>
    %103 = tpu.matmul %99, %102, %cst_116 {dimension_numbers = #tpu.dot_dimension_numbers<[1], [0], [0], [1], [0, 0, 1, 1], [], []>} : vector<6x104xf32>, vector<104x48xf32>, vector<6x48xf32> -> vector<6x48xf32>
    %104 = arith.maximumf %101, %103 : vector<6x48xf32>
    %c0_117 = arith.constant 0 : index
    %c0_118 = arith.constant 0 : index
    %105 = vector.load %arg26[%c0_117, %c0_118] : memref<6x48xf32, #tpu.memory_space<vmem>>, vector<6x48xf32>
    tpu.vector_store %arg26[%c0_117, %c0_118], %104 {strides = array<i32>} : memref<6x48xf32, #tpu.memory_space<vmem>>, vector<6x48xf32>,
    %c0_119 = arith.constant 0 : index
    %c0_120 = arith.constant 0 : index
    %106 = vector.load %arg26[%c0_119, %c0_120] : memref<6x48xf32, #tpu.memory_space<vmem>>, vector<1x48xf32>
    %c0_121 = arith.constant 0 : index
    %c0_122 = arith.constant 0 : index
    %c0_123 = arith.constant 0 : index
    %107 = vector.load %arg18[%c0_121, %c0_122, %c0_123] : memref<6x48x512xf32, #tpu.memory_space<vmem>>, vector<1x48x512xf32>
    %108 = vector.shape_cast %107 : vector<1x48x512xf32> to vector<48x512xf32>
    %cst_124 = arith.constant dense<0.000000e+00> : vector<1x512xf32>
    %109 = tpu.matmul %106, %108, %cst_124 {dimension_numbers = #tpu.dot_dimension_numbers<[1], [0], [0], [1], [0, 0, 1, 1], [], []>} : vector<1x48xf32>, vector<48x512xf32>, vector<1x512xf32> -> vector<1x512xf32>
    %c1_125 = arith.constant 1 : index
    %c0_126 = arith.constant 0 : index
    %110 = vector.load %arg26[%c1_125, %c0_126] : memref<6x48xf32, #tpu.memory_space<vmem>>, vector<1x48xf32>
    %c1_127 = arith.constant 1 : index
    %c0_128 = arith.constant 0 : index
    %c0_129 = arith.constant 0 : index
    %111 = vector.load %arg18[%c1_127, %c0_128, %c0_129] : memref<6x48x512xf32, #tpu.memory_space<vmem>>, vector<1x48x512xf32>
    %112 = vector.shape_cast %111 : vector<1x48x512xf32> to vector<48x512xf32>
    %cst_130 = arith.constant dense<0.000000e+00> : vector<1x512xf32>
    %113 = tpu.matmul %110, %112, %cst_130 {dimension_numbers = #tpu.dot_dimension_numbers<[1], [0], [0], [1], [0, 0, 1, 1], [], []>} : vector<1x48xf32>, vector<48x512xf32>, vector<1x512xf32> -> vector<1x512xf32>
    %114 = arith.addf %109, %113 : vector<1x512xf32>
    %c2_131 = arith.constant 2 : index
    %c0_132 = arith.constant 0 : index
    %115 = vector.load %arg26[%c2_131, %c0_132] : memref<6x48xf32, #tpu.memory_space<vmem>>, vector<1x48xf32>
    %c2_133 = arith.constant 2 : index
    %c0_134 = arith.constant 0 : index
    %c0_135 = arith.constant 0 : index
    %116 = vector.load %arg18[%c2_133, %c0_134, %c0_135] : memref<6x48x512xf32, #tpu.memory_space<vmem>>, vector<1x48x512xf32>
    %117 = vector.shape_cast %116 : vector<1x48x512xf32> to vector<48x512xf32>
    %cst_136 = arith.constant dense<0.000000e+00> : vector<1x512xf32>
    %118 = tpu.matmul %115, %117, %cst_136 {dimension_numbers = #tpu.dot_dimension_numbers<[1], [0], [0], [1], [0, 0, 1, 1], [], []>} : vector<1x48xf32>, vector<48x512xf32>, vector<1x512xf32> -> vector<1x512xf32>
    %119 = arith.addf %114, %118 : vector<1x512xf32>
    %c3 = arith.constant 3 : index
    %c0_137 = arith.constant 0 : index
    %120 = vector.load %arg26[%c3, %c0_137] : memref<6x48xf32, #tpu.memory_space<vmem>>, vector<1x48xf32>
    %c3_138 = arith.constant 3 : index
    %c0_139 = arith.constant 0 : index
    %c0_140 = arith.constant 0 : index
    %121 = vector.load %arg18[%c3_138, %c0_139, %c0_140] : memref<6x48x512xf32, #tpu.memory_space<vmem>>, vector<1x48x512xf32>
    %122 = vector.shape_cast %121 : vector<1x48x512xf32> to vector<48x512xf32>
    %cst_141 = arith.constant dense<0.000000e+00> : vector<1x512xf32>
    %123 = tpu.matmul %120, %122, %cst_141 {dimension_numbers = #tpu.dot_dimension_numbers<[1], [0], [0], [1], [0, 0, 1, 1], [], []>} : vector<1x48xf32>, vector<48x512xf32>, vector<1x512xf32> -> vector<1x512xf32>
    %124 = arith.addf %119, %123 : vector<1x512xf32>
    %c4 = arith.constant 4 : index
    %c0_142 = arith.constant 0 : index
    %125 = vector.load %arg26[%c4, %c0_142] : memref<6x48xf32, #tpu.memory_space<vmem>>, vector<1x48xf32>
    %c4_143 = arith.constant 4 : index
    %c0_144 = arith.constant 0 : index
    %c0_145 = arith.constant 0 : index
    %126 = vector.load %arg18[%c4_143, %c0_144, %c0_145] : memref<6x48x512xf32, #tpu.memory_space<vmem>>, vector<1x48x512xf32>
    %127 = vector.shape_cast %126 : vector<1x48x512xf32> to vector<48x512xf32>
    %cst_146 = arith.constant dense<0.000000e+00> : vector<1x512xf32>
    %128 = tpu.matmul %125, %127, %cst_146 {dimension_numbers = #tpu.dot_dimension_numbers<[1], [0], [0], [1], [0, 0, 1, 1], [], []>} : vector<1x48xf32>, vector<48x512xf32>, vector<1x512xf32> -> vector<1x512xf32>
    %129 = arith.addf %124, %128 : vector<1x512xf32>
    %c5 = arith.constant 5 : index
    %c0_147 = arith.constant 0 : index
    %130 = vector.load %arg26[%c5, %c0_147] : memref<6x48xf32, #tpu.memory_space<vmem>>, vector<1x48xf32>
    %c5_148 = arith.constant 5 : index
    %c0_149 = arith.constant 0 : index
    %c0_150 = arith.constant 0 : index
    %131 = vector.load %arg18[%c5_148, %c0_149, %c0_150] : memref<6x48x512xf32, #tpu.memory_space<vmem>>, vector<1x48x512xf32>
    %132 = vector.shape_cast %131 : vector<1x48x512xf32> to vector<48x512xf32>
    %cst_151 = arith.constant dense<0.000000e+00> : vector<1x512xf32>
    %133 = tpu.matmul %130, %132, %cst_151 {dimension_numbers = #tpu.dot_dimension_numbers<[1], [0], [0], [1], [0, 0, 1, 1], [], []>} : vector<1x48xf32>, vector<48x512xf32>, vector<1x512xf32> -> vector<1x512xf32>
    %134 = arith.addf %129, %133 : vector<1x512xf32>
    %c0_152 = arith.constant 0 : index
    %c0_153 = arith.constant 0 : index
    %135 = vector.load %arg19[%c0_152, %c0_153] : memref<1x512xf32, #tpu.memory_space<vmem>>, vector<1x512xf32>
    %136 = arith.addf %134, %135 : vector<1x512xf32>
    %cst_154 = arith.constant 0.000000e+00 : f32
    %137 = vector.broadcast %cst_154 : f32 to vector<1x512xf32>
    %138 = arith.maximumf %136, %137 : vector<1x512xf32>
    %c0_155 = arith.constant 0 : index
    %c0_156 = arith.constant 0 : index
    %139 = vector.load %arg20[%c0_155, %c0_156] : memref<512x128xf32, #tpu.memory_space<vmem>>, vector<512x128xf32>
    %cst_157 = arith.constant dense<0.000000e+00> : vector<1x128xf32>
    %140 = tpu.matmul %138, %139, %cst_157 {dimension_numbers = #tpu.dot_dimension_numbers<[1], [0], [0], [1], [0, 0, 1, 1], [], []>} : vector<1x512xf32>, vector<512x128xf32>, vector<1x128xf32> -> vector<1x128xf32>
    %c0_158 = arith.constant 0 : index
    %c0_159 = arith.constant 0 : index
    %141 = vector.load %arg21[%c0_158, %c0_159] : memref<1x128xf32, #tpu.memory_space<vmem>>, vector<1x128xf32>
    %142 = arith.addf %140, %141 : vector<1x128xf32>
    %c0_160 = arith.constant 0 : index
    %c0_161 = arith.constant 0 : index
    %c0_162 = arith.constant 0 : index
    %143 = vector.load %arg22[%c0_160, %c0_161, %c0_162] : memref<1x1x128xf32, #tpu.memory_space<vmem>>, vector<1x1x128xf32>
    %144 = vector.shape_cast %143 : vector<1x1x128xf32> to vector<1x128xf32>
    %145 = vector.shape_cast %142 : vector<1x128xf32> to vector<1x1x128xf32>
    tpu.vector_store %arg22[%c0_160, %c0_161, %c0_162], %145 {strides = array<i32>} : memref<1x1x128xf32, #tpu.memory_space<vmem>>, vector<1x1x128xf32>,
    return
  }
  func.func @transform_0(%arg0: i32) -> (i32, i32, i32) {
    %c0_i32 = arith.constant 0 : i32
    %c0_i32_0 = arith.constant 0 : i32
    %c0_i32_1 = arith.constant 0 : i32
    return %arg0, %c0_i32, %c0_i32_0 : i32, i32, i32
  }
  func.func @transform_1(%arg0: i32) -> (i32, i32, i32) {
    %c0_i32 = arith.constant 0 : i32
    %c0_i32_0 = arith.constant 0 : i32
    %c0_i32_1 = arith.constant 0 : i32
    %c0_i32_2 = arith.constant 0 : i32
    return %c0_i32, %c0_i32_0, %c0_i32_1 : i32, i32, i32
  }
  func.func @transform_2(%arg0: i32) -> (i32, i32) {
    %c0_i32 = arith.constant 0 : i32
    %c0_i32_0 = arith.constant 0 : i32
    %c0_i32_1 = arith.constant 0 : i32
    return %c0_i32, %c0_i32_0 : i32, i32
  }
  func.func @transform_3(%arg0: i32) -> (i32, i32, i32) {
    %c0_i32 = arith.constant 0 : i32
    %c0_i32_0 = arith.constant 0 : i32
    %c0_i32_1 = arith.constant 0 : i32
    %c0_i32_2 = arith.constant 0 : i32
    return %c0_i32, %c0_i32_0, %c0_i32_1 : i32, i32, i32
  }
  func.func @transform_4(%arg0: i32) -> (i32, i32) {
    %c0_i32 = arith.constant 0 : i32
    %c0_i32_0 = arith.constant 0 : i32
    %c0_i32_1 = arith.constant 0 : i32
    return %c0_i32, %c0_i32_0 : i32, i32
  }
  func.func @transform_5(%arg0: i32) -> (i32, i32) {
    %c0_i32 = arith.constant 0 : i32
    %c0_i32_0 = arith.constant 0 : i32
    %c0_i32_1 = arith.constant 0 : i32
    return %c0_i32, %c0_i32_0 : i32, i32
  }
  func.func @transform_6(%arg0: i32) -> (i32, i32) {
    %c0_i32 = arith.constant 0 : i32
    %c0_i32_0 = arith.constant 0 : i32
    %c0_i32_1 = arith.constant 0 : i32
    return %c0_i32, %c0_i32_0 : i32, i32
  }
  func.func @transform_7(%arg0: i32) -> (i32, i32) {
    %c0_i32 = arith.constant 0 : i32
    %c0_i32_0 = arith.constant 0 : i32
    %c0_i32_1 = arith.constant 0 : i32
    return %c0_i32, %c0_i32_0 : i32, i32
  }
  func.func @transform_8(%arg0: i32) -> (i32, i32) {
    %c0_i32 = arith.constant 0 : i32
    %c0_i32_0 = arith.constant 0 : i32
    %c0_i32_1 = arith.constant 0 : i32
    return %c0_i32, %c0_i32_0 : i32, i32
  }
  func.func @transform_9(%arg0: i32) -> (i32, i32, i32) {
    %c0_i32 = arith.constant 0 : i32
    %c0_i32_0 = arith.constant 0 : i32
    %c0_i32_1 = arith.constant 0 : i32
    %c0_i32_2 = arith.constant 0 : i32
    return %c0_i32, %c0_i32_0, %c0_i32_1 : i32, i32, i32
  }
  func.func @transform_10(%arg0: i32) -> (i32, i32) {
    %c0_i32 = arith.constant 0 : i32
    %c0_i32_0 = arith.constant 0 : i32
    %c0_i32_1 = arith.constant 0 : i32
    return %c0_i32, %c0_i32_0 : i32, i32
  }
  func.func @transform_11(%arg0: i32) -> (i32, i32, i32) {
    %c0_i32 = arith.constant 0 : i32
    %c0_i32_0 = arith.constant 0 : i32
    %c0_i32_1 = arith.constant 0 : i32
    %c0_i32_2 = arith.constant 0 : i32
    return %c0_i32, %c0_i32_0, %c0_i32_1 : i32, i32, i32
  }
  func.func @transform_12(%arg0: i32) -> (i32, i32) {
    %c0_i32 = arith.constant 0 : i32
    %c0_i32_0 = arith.constant 0 : i32
    %c0_i32_1 = arith.constant 0 : i32
    return %c0_i32, %c0_i32_0 : i32, i32
  }
  func.func @transform_13(%arg0: i32) -> (i32, i32) {
    %c0_i32 = arith.constant 0 : i32
    %c0_i32_0 = arith.constant 0 : i32
    %c0_i32_1 = arith.constant 0 : i32
    return %c0_i32, %c0_i32_0 : i32, i32
  }
  func.func @transform_14(%arg0: i32) -> (i32, i32) {
    %c0_i32 = arith.constant 0 : i32
    %c0_i32_0 = arith.constant 0 : i32
    %c0_i32_1 = arith.constant 0 : i32
    return %c0_i32, %c0_i32_0 : i32, i32
  }
  func.func @transform_15(%arg0: i32) -> (i32, i32) {
    %c0_i32 = arith.constant 0 : i32
    %c0_i32_0 = arith.constant 0 : i32
    %c0_i32_1 = arith.constant 0 : i32
    return %c0_i32, %c0_i32_0 : i32, i32
  }
  func.func @transform_16(%arg0: i32) -> (i32, i32) {
    %c0_i32 = arith.constant 0 : i32
    %c0_i32_0 = arith.constant 0 : i32
    %c0_i32_1 = arith.constant 0 : i32
    return %c0_i32, %c0_i32_0 : i32, i32
  }
  func.func @transform_17(%arg0: i32) -> (i32, i32, i32) {
    %c0_i32 = arith.constant 0 : i32
    %c0_i32_0 = arith.constant 0 : i32
    %c0_i32_1 = arith.constant 0 : i32
    %c0_i32_2 = arith.constant 0 : i32
    return %c0_i32, %c0_i32_0, %c0_i32_1 : i32, i32, i32
  }
  func.func @transform_18(%arg0: i32) -> (i32, i32) {
    %c0_i32 = arith.constant 0 : i32
    %c0_i32_0 = arith.constant 0 : i32
    %c0_i32_1 = arith.constant 0 : i32
    return %c0_i32, %c0_i32_0 : i32, i32
  }
  func.func @transform_19(%arg0: i32) -> (i32, i32) {
    %c0_i32 = arith.constant 0 : i32
    %c0_i32_0 = arith.constant 0 : i32
    %c0_i32_1 = arith.constant 0 : i32
    return %c0_i32, %c0_i32_0 : i32, i32
  }
  func.func @transform_20(%arg0: i32) -> (i32, i32) {
    %c0_i32 = arith.constant 0 : i32
    %c0_i32_0 = arith.constant 0 : i32
    %c0_i32_1 = arith.constant 0 : i32
    return %c0_i32, %c0_i32_0 : i32, i32
  }
  func.func @transform_21(%arg0: i32) -> (i32, i32, i32) {
    %c0_i32 = arith.constant 0 : i32
    %c0_i32_0 = arith.constant 0 : i32
    %c0_i32_1 = arith.constant 0 : i32
    return %arg0, %c0_i32, %c0_i32_0 : i32, i32, i32
  }
}

</mosaic_0001>

<bundles_post_ra>
// kernel: cifarnet_forward.1
= control target key start
LH: loop header
LB: loop body
LE: loop exit
PB: predicated region body
PF: predicated region fallthrough
CT: control target
= control target key end

     0   :  { %s8659_s0 = inlined_call_operand.vmem [shape: f32[2,34,96], index: 0, kind: input, shape index: {}]   ;;  %s8660_s1 = inlined_call_operand.vmem [shape: f32[3,96,256], index: 1, kind: input, shape index: {}]   ;;  %s8661_s2 = inlined_call_operand.vmem [shape: f32[1,256], index: 2, kind: input, shape index: {}]   ;;  %s8662_s3 = inlined_call_operand.vmem [shape: f32[3,256,240], index: 3, kind: input, shape index: {}]   ;;  %s8663_s4 = inlined_call_operand.vmem [shape: f32[1,240], index: 4, kind: input, shape index: {}]   ;;  %s8664_s5 = inlined_call_operand.vmem [shape: f32[15,30], index: 5, kind: input, shape index: {}]   ;;  %s8665_s6 = inlined_call_operand.vmem [shape: f32[15,30], index: 6, kind: input, shape index: {}]   ;;  %s8666_s7 = inlined_call_operand.vmem [shape: f32[240,120], index: 7, kind: input, shape index: {}]   ;;  %s8667_s8 = inlined_call_operand.vmem [shape: f32[240,120], index: 8, kind: input, shape index: {}]   ;;  %s8668_s9 = inlined_call_operand.vmem [shape: f32[3,120,120], index: 9, kind: input, shape index: {}]   ;;  %s8669_s10 = inlined_call_operand.vmem [shape: f32[1,120], index: 10, kind: input, shape index: {}]   ;;  %s8670_s11 = inlined_call_operand.vmem [shape: f32[3,120,104], index: 11, kind: input, shape index: {}]   ;;  %s8671_s12 = inlined_call_operand.vmem [shape: f32[1,104], index: 12, kind: input, shape index: {}]   ;;  %s8672_s13 = inlined_call_operand.vmem [shape: f32[6,13], index: 13, kind: input, shape index: {}]   ;;  %s8673_s14 = inlined_call_operand.vmem [shape: f32[6,13], index: 14, kind: input, shape index: {}]   ;;  %s8674_s15 = inlined_call_operand.vmem [shape: f32[104,48], index: 15, kind: input, shape index: {}]   ;;  %s8675_s16 = inlined_call_operand.vmem [shape: f32[104,48], index: 16, kind: input, shape index: {}]   ;;  %s8676_s17 = inlined_call_operand.vmem [shape: f32[6,48,512], index: 17, kind: input, shape index: {}]   ;;  %s8677_s18 = inlined_call_operand.vmem [shape: f32[1,512], index: 18, kind: input, shape index: {}]   ;;  %s8678_s19 = inlined_call_operand.vmem [shape: f32[512,128], index: 19, kind: input, shape index: {}]   ;;  %s8679_s20 = inlined_call_operand.vmem [shape: f32[1,128], index: 20, kind: input, shape index: {}]   ;;  %s8680_s21 = inlined_call_operand.hbm [shape: f32[2,1,128], index: 21, kind: output, shape index: {}]  }
   0x1   :  { %8695 = sst [smem:[#allocation16_spill]] %s8659_s0 }
   0x2   :  { %8696 = sst [smem:[#allocation17_spill]] %s8660_s1 }
   0x3   :  { %8697 = sst [smem:[#allocation18_spill]] %s8661_s2 }
   0x4   :  { %8698 = sst [smem:[#allocation19_spill]] %s8662_s3 }
   0x5   :  { %8699 = sst [smem:[#allocation20_spill]] %s8663_s4 }
   0x6   :  { %8700 = sst [smem:[#allocation21_spill]] %s8664_s5 }
   0x7   :  { %8701 = sst [smem:[#allocation22_spill]] %s8680_s21 }
   0x8   :  { %26 = vsyncpa [#allocation7], 0 }
   0x9   :  { %28 = vsyncpa [#allocation7 + $0x1], 0  ;;  %s6332_s2 = smov 0   ;;  %s6334_s25 = smov 0  }
   0xa   :  { %s6336_s26 = smov 0   ;;  %s6338_s27 = smov 0  }
   0xb LB: > { %8702 = sst [smem:[#allocation9_spill]] %s6203_s2  ;;  %s6353_s3 = sadd.s32 4294967295, %s6215_s27   ;;  %s6215_s27 = sphi %s6338_s27, %s8722_s27   ;;  %s6211_s26 = sphi %s6336_s26, %s8727_s26   ;;  %s6207_s25 = sphi %s6334_s25, %s8726_s25   ;;  %s6203_s2 = sphi %s6332_s2, %s8725_s2  }
   0xc   : > { %8703 = sst [smem:[#allocation10_spill]] %s6211_s26  ;;  %s4359_s28 = sadd.s32 4294967294, %s6215_s27  }
   0xd   : > { %8704 = sst [smem:[#allocation11_spill]] %s6215_s27  ;;  %s6357_s29 = sadd.s32 1, %s6215_s27  }
   0xe   : > { %8705 = sst [smem:[#allocation12_spill]] %s6357_s29  ;;  %s487_s0 = sadd.s32 1, %s6211_s26 }
   0xf   : > { %s484_s4 = ssub.s32 %s6215_s27, %s6357_s29  ;;  %p497_p0 = scmp.ne.s32.totalorder %s6211_s26, %s6207_s25 }
  0x10   : > { %p485_p1 = scmp.eq.s32.totalorder %s484_s4, 0  ;;  %p498_p2 = scmp.eq.s32.totalorder %s6353_s3, 1 }
  0x11   : > { %p503_p3 = scmp.ne.s32.totalorder %s6207_s25, %s6203_s2  ;;  %p504_p4 = scmp.eq.s32.totalorder %s4359_s28, 1 }
  0x12   : > { %s6368_s30 = scalar_select %p485_p1, %s6211_s26, %s487_s0  }
  0x13   : > { %p6370_p5 = por %p498_p2, %p497_p0  ;;  %p6374_p6 = por %p504_p4, %p503_p3 }
  0x14   : > { %8706 = sst [smem:[#allocation13_spill]] %s6368_s30  ;;  %p4362_p7 = scmp.ge.s32.totalorder %s6215_s27, 1 }
  0x15   : > { %s8707_s5 = scalar_select %p6370_p5, 1, 0 }
  0x16   : > { %s8709_s22 = scalar_select %p6374_p6, 1, 0 }
  0x17   : > { %8708 = sst [smem:[#allocation14_spill]] %s8707_s5  ;;  %p590_p8 = scmp.lt.s32.totalorder %s6215_s27, 3 }
  0x18   : > { %8710 = sst [smem:[#allocation15_spill]] %s8709_s22 }
  0x19   : > { %p591_p9 = pnand %p4362_p7, %p590_p8 }
  0x1a   : > { %s8711_s24 = sld [smem:[#allocation17_spill]] (!%p591_p9)  ;;  %v6217_v7 = vmov (!%p591_p9), 0.0   ;;  %p649_p10 = scmp.lt.s32.totalorder (!%p591_p9), %s6353_s3, 1  ;;  %vm711_vm0 = vcmask (!%p591_p9), 785408   ;;  %vm1237_vm1 = vcmask (!%p591_p9), 1046528   ;;  %vm1511_vm2 = vcmask (!%p591_p9), 1045504  }
  0x1b   : > { %594 = sbr.rel (%p591_p9) target bundleno = 2791 (0xae7), region = 104  ;;  %788 = vmatprep.mubr.f32.mxu0 (!%p591_p9), %v6217_v7  ;;  %s8712_s1 = sld [smem:[#allocation16_spill]] (!%p591_p9)  ;;  %vm6218_vm3 = vmmov (!%p591_p9), 1   ;;  %vm1664_vm5 = vcmask (!%p591_p9), 244736   ;;  %vm1873_vm6 = vcmask (!%p591_p9), 916480   ;;  %vm1659_vm7 = vcmask (!%p591_p9), 974848  }
  0x1c   : > { %s8713_s4 = sld [smem:[#allocation19_spill]] (!%p591_p9)  ;;  %s8714_s26 = sld [smem:[#allocation18_spill]] (!%p591_p9)  ;;  %vm5524_vm4 = vmpackc.low (!%p591_p9), %vm1511_vm2, %vm6218_vm3  ;;  %1660 = vst.msk [vmem:[#allocation3] sm:$0x1] (!%p591_p9), %vm1659_vm7, %v6217_v7  ;;  %vm2062_vm8 = vcmask (!%p591_p9), 982016   ;;  %vm2064_vm9 = vcmask (!%p591_p9), 980992  }
  0x1d   : > { %s8715_s2 = sld [smem:[#allocation20_spill]] (!%p591_p9)  ;;  %s8716_s0 = sld [smem:[#allocation21_spill]] (!%p591_p9)  ;;  %1661 = vst.msk [vmem:[#allocation3 + $0x10] sm:$0x1] (!%p591_p9), %vm1659_vm7, %v6217_v7  ;;  %vm6220_vm10 = vmmov (!%p591_p9), 0   ;;  %vm2691_vm11 = vcmask (!%p591_p9), 1044480  }
  0x1e   : > { %vm5799_vm12 = vmpackc.low (!%p591_p9), %vm2691_vm11, %vm6218_vm3  ;;  %vm2687_vm13 = vcmask (!%p591_p9), 105472   ;;  %vm2853_vm14 = vcmask (!%p591_p9), 850944   ;;  %vm3011_vm15 = vcmask (!%p591_p9), 390144   ;;  %s4776_s22 = sshll.u32 (!%p591_p9), %s6353_s3, 4  ;;  %s8718_s30 = sld [smem:[#allocation22_spill]] (!%p591_p9) }
  0x20   : > { %v4365_v0 = vld [vmem:[%s8711_s24 + $0xc8] sm:$0xff] (!%p591_p9)  ;;  %v4367_v1 = vld [vmem:[%s8711_s24 + $0xd8] sm:$0xff] (!%p591_p9)  ;;  %v4364_v2 = vld [vmem:[%s8711_s24 + $0xc0] sm:$0xff] (!%p591_p9) }
  0x21   : > { %v5255_v3 = vpack.c.bf16 (!%p591_p9), %v4367_v1, %v4365_v0  ;;  %v4366_v4 = vld [vmem:[%s8711_s24 + $0xd0] sm:$0xff] (!%p591_p9)  ;;  %v4369_v5 = vld [vmem:[%s8711_s24 + $0xe8] sm:$0xff] (!%p591_p9)  ;;  %v4371_v6 = vld [vmem:[%s8711_s24 + $0xf8] sm:$0xff] (!%p591_p9) }
  0x22   : > { %v5257_v8 = vpack.c.bf16 %v4366_v4, %v4364_v2  ;;  %v5259_v9 = vpack.c.bf16 %v4371_v6, %v4369_v5  ;;  %v4368_v10 = vld [vmem:[%s8711_s24 + $0xe0] sm:$0xff]  ;;  %v4370_v11 = vld [vmem:[%s8711_s24 + $0xf0] sm:$0xff]  ;;  %v4373_v12 = vld [vmem:[%s8711_s24 + $0x108] sm:$0xff]  ;;  %s650_s27 = scalar_select %p649_p10, %s6353_s3, 1 }
  0x23   : > { %5256 = vmatprep.subr.bf16.mxu0 %v5255_v3  ;;  %v4375_v13 = vld [vmem:[%s8711_s24 + $0x118] sm:$0xff]  ;;  %v5261_v14 = vpack.c.bf16 %v4370_v11, %v4368_v10  ;;  %v4372_v16 = vld [vmem:[%s8711_s24 + $0x100] sm:$0xff]  ;;  %v4374_v17 = vld [vmem:[%s8711_s24 + $0x110] sm:$0xff]  ;;  %s6221_s3 = smov [#allocation6]  }
  0x24   : > { %5258 = vmatpush1.bf16.msra.mxu0 %v5257_v8  ;;  %v5263_v15 = vpack.c.bf16 %v4375_v13, %v4373_v12  ;;  %v4377_v18 = vld [vmem:[%s8711_s24 + $0x128] sm:$0xff]  ;;  %v4379_v19 = vld [vmem:[%s8711_s24 + $0x138] sm:$0xff]  ;;  %v5265_v20 = vpack.c.bf16 %v4374_v17, %v4372_v16  ;;  %v4376_v22 = vld [vmem:[%s8711_s24 + $0x120] sm:$0xff]  ;;  %s6109_s29 = smul.u32 40, %s650_s27  ;;  %s6157_s27 = sshll.u32 %s6221_s3, 4  ;;  %s6158_s27 = int_to_ptr.vmem [resolvable:$false] %s6157_s27 }
  0x25   : > { %5260 = vmatprep.subr.bf16.mxu0 %v5259_v9  ;;  %v5267_v21 = vpack.c.bf16 %v4379_v19, %v4377_v18  ;;  %v4378_v23 = vld [vmem:[%s8711_s24 + $0x130] sm:$0xff]  ;;  %v4381_v24 = vld [vmem:[%s8711_s24 + $0x148] sm:$0xff]  ;;  %v4383_v25 = vld [vmem:[%s8711_s24 + $0x158] sm:$0xff] }
  0x26   : > { %v5269_v26 = vpack.c.bf16 %v4378_v23, %v4376_v22  ;;  %v5271_v27 = vpack.c.bf16 %v4383_v25, %v4381_v24  ;;  %v4380_v28 = vld [vmem:[%s8711_s24 + $0x140] sm:$0xff]  ;;  %v4382_v29 = vld [vmem:[%s8711_s24 + $0x150] sm:$0xff]  ;;  %v4385_v30 = vld [vmem:[%s8711_s24 + $0x168] sm:$0xff]  ;;  %s6464_s21 = scalar_lea.vmem %s8712_s1, %s6109_s29 }
  0x27   : > { %v4387_v31 = vld [vmem:[%s8711_s24 + $0x178] sm:$0xff]  ;;  %v5273_v32 = vpack.c.bf16 %v4382_v29, %v4380_v28  ;;  %v4384_v34 = vld [vmem:[%s8711_s24 + $0x160] sm:$0xff]  ;;  %v4386_v35 = vld [vmem:[%s8711_s24 + $0x170] sm:$0xff] }
  0x28   : > { %5262 = vmatpush1.bf16.msra.mxu0 %v5261_v14  ;;  %v5275_v33 = vpack.c.bf16 %v4387_v31, %v4385_v30  ;;  %v659_v36 = vld [vmem:[%s8711_s24 + $0x8] sm:$0xff]  ;;  %v661_v37 = vld [vmem:[%s8711_s24 + $0x18] sm:$0xff]  ;;  %v5277_v38 = vpack.c.bf16 %v4386_v35, %v4384_v34  ;;  %v658_v40 = vld [vmem:[%s8711_s24] sm:$0xff] }
  0x29   : > { %5264 = vmatprep.subr.bf16.mxu0 %v5263_v15  ;;  %v5279_v39 = vpack.c.bf16 %v661_v37, %v659_v36  ;;  %v660_v41 = vld [vmem:[%s8711_s24 + $0x10] sm:$0xff]  ;;  %v663_v42 = vld [vmem:[%s8711_s24 + $0x28] sm:$0xff]  ;;  %v665_v43 = vld [vmem:[%s8711_s24 + $0x38] sm:$0xff] }
  0x2a   : > { %v682_v44 = vld [vmem:[%s6464_s21 + $0x1] sm:$0xff]  ;;  %v5281_v45 = vpack.c.bf16 %v660_v41, %v658_v40  ;;  %v5283_v46 = vpack.c.bf16 %v665_v43, %v663_v42  ;;  %v664_v48 = vld [vmem:[%s8711_s24 + $0x30] sm:$0xff]  ;;  %v669_v50 = vld [vmem:[%s8711_s24 + $0x58] sm:$0xff] }
  0x2b   : > { %v662_v47 = vld [vmem:[%s8711_s24 + $0x20] sm:$0xff]  ;;  %v667_v49 = vld [vmem:[%s8711_s24 + $0x48] sm:$0xff]  ;;  %v668_v52 = vld [vmem:[%s8711_s24 + $0x50] sm:$0xff] }
  0x2c   : > { %5266 = vmatpush1.bf16.msra.mxu0 %v5265_v20  ;;  %v666_v51 = vld [vmem:[%s8711_s24 + $0x40] sm:$0xff]  ;;  %v683_v53 = vld [vmem:[%s6464_s21 + $0x9] sm:$0xff]  ;;  %v5285_v54 = vpack.c.bf16 %v664_v48, %v662_v47  ;;  %v4427_v57 = vld [vmem:[%s8713_s4 + $0x218] sm:$0xff]  ;;  %v5287_v59 = vpack.c.bf16 %v669_v50, %v667_v49 }
  0x2d   : > { %5268 = vmatprep.subr.bf16.mxu0 %v5267_v21  ;;  %v671_v55 = vld [vmem:[%s8711_s24 + $0x68] sm:$0xff]  ;;  %v4424_v58 = vld [vmem:[%s8713_s4 + $0x200] sm:$0xff]  ;;  %v4426_v61 = vld [vmem:[%s8713_s4 + $0x210] sm:$0xff]  ;;  %v5289_v8 = vpack.c.bf16 %v668_v52, %v666_v51 }
  0x2e   : > { %v4425_v56 = vld [vmem:[%s8713_s4 + $0x208] sm:$0xff]  ;;  %v4431_v63 = vld [vmem:[%s8713_s4 + $0x238] sm:$0xff]  ;;  %v5329_v1 = vpack.c.bf16 %v4426_v61, %v4424_v58  ;;  %v4428_v3 = vld [vmem:[%s8713_s4 + $0x220] sm:$0xff] }
  0x2f   : > { %v5327_v60 = vpack.c.bf16 %v4427_v57, %v4425_v56  ;;  %v4429_v62 = vld [vmem:[%s8713_s4 + $0x228] sm:$0xff]  ;;  %v673_v0 = vld [vmem:[%s8711_s24 + $0x78] sm:$0xff]  ;;  %v4430_v4 = vld [vmem:[%s8713_s4 + $0x230] sm:$0xff] }
  0x30   : > { %5270 = vmatpush1.bf16.msra.mxu0 %v5269_v26  ;;  %v5331_v2 = vpack.c.bf16 %v4431_v63, %v4429_v62  ;;  %v4433_v5 = vld [vmem:[%s8713_s4 + $0x248] sm:$0xff]  ;;  %v4435_v6 = vld [vmem:[%s8713_s4 + $0x258] sm:$0xff]  ;;  %v5291_v10 = vpack.c.bf16 %v673_v0, %v671_v55  ;;  %v670_v11 = vld [vmem:[%s8711_s24 + $0x60] sm:$0xff]  ;;  %v5333_v14 = vpack.c.bf16 %v4430_v4, %v4428_v3 }
  0x31   : > { %5272 = vmatprep.subr.bf16.mxu0 %v5271_v27  ;;  %5328 = vmatprep.subr.bf16.mxu1 %v5327_v60  ;;  %v684_v9 = vld [vmem:[%s6464_s21 + $0x11] sm:$0xff]  ;;  %v675_v13 = vld [vmem:[%s8711_s24 + $0x88] sm:$0xff]  ;;  %v5335_v16 = vpack.c.bf16 %v4435_v6, %v4433_v5  ;;  %v4432_v17 = vld [vmem:[%s8713_s4 + $0x240] sm:$0xff] }
  0x32   : > { %v672_v12 = vld [vmem:[%s8711_s24 + $0x70] sm:$0xff]  ;;  %5330 = vmatpush1.bf16.msra.mxu1 %v5329_v1  ;;  %v677_v15 = vld [vmem:[%s8711_s24 + $0x98] sm:$0xff]  ;;  %v4437_v19 = vld [vmem:[%s8713_s4 + $0x268] sm:$0xff] }
  0x33   : > { %5332 = vmatprep.subr.bf16.mxu1 %v5331_v2  ;;  %v4434_v18 = vld [vmem:[%s8713_s4 + $0x250] sm:$0xff]  ;;  %v4439_v20 = vld [vmem:[%s8713_s4 + $0x278] sm:$0xff]  ;;  %v5293_v21 = vpack.c.bf16 %v672_v12, %v670_v11  ;;  %v5295_v23 = vpack.c.bf16 %v677_v15, %v675_v13  ;;  %v674_v24 = vld [vmem:[%s8711_s24 + $0x80] sm:$0xff] }
  0x34   : > { %5274 = vmatpush1.bf16.msra.mxu0 %v5273_v32  ;;  %v685_v22 = vld [vmem:[%s6464_s21 + $0x19] sm:$0xff]  ;;  %v676_v25 = vld [vmem:[%s8711_s24 + $0x90] sm:$0xff]  ;;  %v679_v26 = vld [vmem:[%s8711_s24 + $0xa8] sm:$0xff]  ;;  %v5337_v27 = vpack.c.bf16 %v4434_v18, %v4432_v17  ;;  %v5339_v29 = vpack.c.bf16 %v4439_v20, %v4437_v19 }
  0x35   : > { %5276 = vmatprep.subr.bf16.mxu0 %v5275_v33  ;;  %v681_v28 = vld [vmem:[%s8711_s24 + $0xb8] sm:$0xff]  ;;  %v4436_v30 = vld [vmem:[%s8713_s4 + $0x260] sm:$0xff]  ;;  %v4438_v31 = vld [vmem:[%s8713_s4 + $0x270] sm:$0xff]  ;;  %v5297_v34 = vpack.c.bf16 %v676_v25, %v674_v24 }
  0x36   : > { %5334 = vmatpush1.bf16.msra.mxu1 %v5333_v14  ;;  %v4441_v32 = vld [vmem:[%s8713_s4 + $0x288] sm:$0xff]  ;;  %v4443_v33 = vld [vmem:[%s8713_s4 + $0x298] sm:$0xff]  ;;  %v5299_v35 = vpack.c.bf16 %v681_v28, %v679_v26  ;;  %v678_v36 = vld [vmem:[%s8711_s24 + $0xa0] sm:$0xff] }
  0x37   : > { %5336 = vmatprep.subr.bf16.mxu1 %v5335_v16  ;;  %v680_v37 = vld [vmem:[%s8711_s24 + $0xb0] sm:$0xff]  ;;  %v4399_v40 = vld [vmem:[%s8711_s24 + $0x198] sm:$0xff]  ;;  %v5343_v41 = vpack.c.bf16 %v4443_v33, %v4441_v32  ;;  %v4440_v42 = vld [vmem:[%s8713_s4 + $0x280] sm:$0xff] }
  0x38   : > { %5278 = vmatpush1.bf16.msra.mxu0 %v5277_v38  ;;  %v4397_v38 = vld [vmem:[%s8711_s24 + $0x188] sm:$0xff]  ;;  %v4442_v43 = vld [vmem:[%s8713_s4 + $0x290] sm:$0xff]  ;;  %v4396_v48 = vld [vmem:[%s8711_s24 + $0x180] sm:$0xff] }
  0x39   : > { %5280 = vmatprep.subr.bf16.mxu0 %v5279_v39  ;;  %v5341_v39 = vpack.c.bf16 %v4438_v31, %v4436_v30  ;;  %v5303_v47 = vpack.c.bf16 %v4399_v40, %v4397_v38  ;;  %v4398_v49 = vld [vmem:[%s8711_s24 + $0x190] sm:$0xff]  ;;  %v4401_v50 = vld [vmem:[%s8711_s24 + $0x1a8] sm:$0xff]  ;;  %v5345_v51 = vpack.c.bf16 %v4442_v43, %v4440_v42  ;;  %v4403_v52 = vld [vmem:[%s8711_s24 + $0x1b8] sm:$0xff] }
  0x3a   : > { %5338 = vmatpush1.bf16.msra.mxu1 %v5337_v27  ;;  %v4446_v55 = vld [vmem:[%s8713_s4 + $0x2b0] sm:$0xff]  ;;  %v4449_v56 = vld [vmem:[%s8713_s4 + $0x2c8] sm:$0xff]  ;;  %v4451_v57 = vld [vmem:[%s8713_s4 + $0x2d8] sm:$0xff]  ;;  %v5307_v60 = vpack.c.bf16 %v4403_v52, %v4401_v50 }
  0x3b   : > { %4388 = vmatmul.mubr.msk.f32.vlgmr.msra.gmra.mrb[0].mxu0 %vm711_vm0, %v682_v44  ;;  %5340 = vmatprep.subr.bf16.mxu1 %v5339_v29  ;;  %v4445_v44 = vld [vmem:[%s8713_s4 + $0x2a8] sm:$0xff]  ;;  %v654_v58 = vld [vmem:[%s6464_s21] sm:$0xff]  ;;  %v4402_v62 = vld [vmem:[%s8711_s24 + $0x1b0] sm:$0xff]  ;;  %v5351_v2 = vpack.c.bf16 %v4451_v57, %v4449_v56 }
  0x3c   : > { %5282 = vmatpush1.bf16.msra.mxu0 %v5281_v45  ;;  %794 = vmatprep.mubr.f32.mxu0 %v6217_v7  ;;  %v4447_v45 = vld [vmem:[%s8713_s4 + $0x2b8] sm:$0xff]  ;;  %v4400_v61 = vld [vmem:[%s8711_s24 + $0x1a0] sm:$0xff]  ;;  %v4405_v63 = vld [vmem:[%s8711_s24 + $0x1c8] sm:$0xff] }
  0x3d   : > { %5284 = vmatprep.subr.bf16.mxu0 %v5283_v46  ;;  %v5301_v46 = vpack.c.bf16 %v680_v37, %v678_v36  ;;  %v4407_v1 = vld [vmem:[%s8711_s24 + $0x1d8] sm:$0xff]  ;;  %v4448_v3 = vld [vmem:[%s8713_s4 + $0x2c0] sm:$0xff]  ;;  %v4450_v4 = vld [vmem:[%s8713_s4 + $0x2d0] sm:$0xff] }
  0x3e   : > { %5342 = vmatpush1.bf16.msra.mxu1 %v5341_v39  ;;  %v4453_v5 = vld [vmem:[%s8713_s4 + $0x2e8] sm:$0xff]  ;;  %v4455_v6 = vld [vmem:[%s8713_s4 + $0x2f8] sm:$0xff]  ;;  %v4404_v11 = vld [vmem:[%s8711_s24 + $0x1c0] sm:$0xff]  ;;  %v5353_v14 = vpack.c.bf16 %v4450_v4, %v4448_v3 }
  0x3f   : > { %4389 = vmatmul.mubr.msk.f32.gmra.mrb[2].mxu0 %vm711_vm0, %v683_v53  ;;  %5344 = vmatprep.subr.bf16.mxu1 %v5343_v41  ;;  %v5347_v53 = vpack.c.bf16 %v4447_v45, %v4445_v44  ;;  %v4406_v12 = vld [vmem:[%s8711_s24 + $0x1d0] sm:$0xff]  ;;  %v4409_v13 = vld [vmem:[%s8711_s24 + $0x1e8] sm:$0xff]  ;;  %v4411_v15 = vld [vmem:[%s8711_s24 + $0x1f8] sm:$0xff]  ;;  %v5355_v16 = vpack.c.bf16 %v4455_v6, %v4453_v5 }
  0x40   : > { %5286 = vmatpush1.bf16.msra.mxu0 %v5285_v54  ;;  %800 = vmatprep.mubr.f32.mxu0 %v6217_v7  ;;  %v4444_v54 = vld [vmem:[%s8713_s4 + $0x2a0] sm:$0xff]  ;;  %v4454_v18 = vld [vmem:[%s8713_s4 + $0x2f0] sm:$0xff]  ;;  %v4457_v19 = vld [vmem:[%s8713_s4 + $0x308] sm:$0xff] }
  0x41   : > { %5288 = vmatprep.subr.bf16.mxu0 %v5287_v59  ;;  %v5305_v59 = vpack.c.bf16 %v4398_v49, %v4396_v48  ;;  %v5349_v0 = vpack.c.bf16 %v4446_v55, %v4444_v54  ;;  %v4452_v17 = vld [vmem:[%s8713_s4 + $0x2e0] sm:$0xff]  ;;  %v4459_v20 = vld [vmem:[%s8713_s4 + $0x318] sm:$0xff]  ;;  %v4410_v25 = vld [vmem:[%s8711_s24 + $0x1f0] sm:$0xff] }
  0x42   : > { %5346 = vmatpush1.bf16.msra.mxu1 %v5345_v51  ;;  %v4408_v24 = vld [vmem:[%s8711_s24 + $0x1e0] sm:$0xff]  ;;  %v4413_v26 = vld [vmem:[%s8711_s24 + $0x208] sm:$0xff]  ;;  %v5357_v27 = vpack.c.bf16 %v4454_v18, %v4452_v17  ;;  %v4415_v28 = vld [vmem:[%s8711_s24 + $0x218] sm:$0xff]  ;;  %v5359_v29 = vpack.c.bf16 %v4459_v20, %v4457_v19 }
  0x43   : > { %4390 = vmatmul.mubr.msk.f32.gmra.mrb[4].mxu0 %vm711_vm0, %v684_v9  ;;  %5348 = vmatprep.subr.bf16.mxu1 %v5347_v53  ;;  %v655_v9 = vld [vmem:[%s6464_s21 + $0x8] sm:$0xff]  ;;  %v4456_v30 = vld [vmem:[%s8713_s4 + $0x300] sm:$0xff]  ;;  %v4458_v31 = vld [vmem:[%s8713_s4 + $0x310] sm:$0xff]  ;;  %v5319_v36 = vpack.c.bf16 %v4415_v28, %v4413_v26 }
  0x44   : > { %5290 = vmatpush1.bf16.msra.mxu0 %v5289_v8  ;;  %806 = vmatprep.mubr.f32.mxu0 %v6217_v7  ;;  %v5309_v8 = vpack.c.bf16 %v4402_v62, %v4400_v61  ;;  %v4461_v32 = vld [vmem:[%s8713_s4 + $0x328] sm:$0xff]  ;;  %v4463_v33 = vld [vmem:[%s8713_s4 + $0x338] sm:$0xff]  ;;  %v4412_v37 = vld [vmem:[%s8711_s24 + $0x200] sm:$0xff]  ;;  %v5361_v40 = vpack.c.bf16 %v4458_v31, %v4456_v30  ;;  %v1054_v31 = vlaneseq }
  0x45   : > { %5292 = vmatprep.subr.bf16.mxu0 %v5291_v10  ;;  %v5311_v10 = vpack.c.bf16 %v4407_v1, %v4405_v63  ;;  %v4414_v38 = vld [vmem:[%s8711_s24 + $0x210] sm:$0xff]  ;;  %v4417_v39 = vld [vmem:[%s8711_s24 + $0x228] sm:$0xff]  ;;  %v4419_v41 = vld [vmem:[%s8711_s24 + $0x238] sm:$0xff]  ;;  %v5363_v42 = vpack.c.bf16 %v4463_v33, %v4461_v32 }
  0x46   : > { %5350 = vmatpush1.bf16.msra.mxu1 %v5349_v0  ;;  %v4460_v43 = vld [vmem:[%s8713_s4 + $0x320] sm:$0xff]  ;;  %v4462_v44 = vld [vmem:[%s8713_s4 + $0x330] sm:$0xff]  ;;  %v4465_v45 = vld [vmem:[%s8713_s4 + $0x348] sm:$0xff]  ;;  %v5323_v48 = vpack.c.bf16 %v4419_v41, %v4417_v39  ;;  %v6838_v32 = vshrl.u32 %v1054_v31, 7 }
  0x47   : > { %4391 = vmatmul.mubr.msk.f32.gmra.mrb[6].mxu0 %vm711_vm0, %v685_v22  ;;  %5352 = vmatprep.subr.bf16.mxu1 %v5351_v2  ;;  %v656_v22 = vld [vmem:[%s6464_s21 + $0x10] sm:$0xff]  ;;  %v4416_v49 = vld [vmem:[%s8711_s24 + $0x220] sm:$0xff]  ;;  %v5365_v51 = vpack.c.bf16 %v4462_v44, %v4460_v43  ;;  %v4469_v61 = vld [vmem:[%s8713_s4 + $0x368] sm:$0xff] }
  0x48   : > { %5294 = vmatpush1.bf16.msra.mxu0 %v5293_v21  ;;  %889 = vmatprep.mubr.f32.mxu0 %v6217_v7  ;;  %v5313_v21 = vpack.c.bf16 %v4406_v12, %v4404_v11  ;;  %v4418_v50 = vld [vmem:[%s8711_s24 + $0x230] sm:$0xff]  ;;  %v4464_v53 = vld [vmem:[%s8713_s4 + $0x340] sm:$0xff]  ;;  %v4471_v62 = vld [vmem:[%s8713_s4 + $0x378] sm:$0xff]  ;;  %v6841_v33 = vsub.s32 0, %v6838_v32 }
  0x49   : > { %5296 = vmatprep.subr.bf16.mxu0 %v5295_v23  ;;  %v5315_v23 = vpack.c.bf16 %v4411_v15, %v4409_v13  ;;  %v4466_v54 = vld [vmem:[%s8713_s4 + $0x350] sm:$0xff]  ;;  %v5325_v55 = vpack.c.bf16 %v4418_v50, %v4416_v49  ;;  %v914_v57 = vld [vmem:[%s6464_s21 + $0x2] sm:$0xff]  ;;  %v5371_v63 = vpack.c.bf16 %v4471_v62, %v4469_v61  ;;  %v4475_v4 = vld [vmem:[%s8713_s4 + $0x398] sm:$0xff] }
  0x4a   : > { %5354 = vmatpush1.bf16.msra.mxu1 %v5353_v14  ;;  %v5369_v56 = vpack.c.bf16 %v4466_v54, %v4464_v53  ;;  %v4468_v0 = vld [vmem:[%s8713_s4 + $0x360] sm:$0xff]  ;;  %v4470_v1 = vld [vmem:[%s8713_s4 + $0x370] sm:$0xff]  ;;  %v4473_v3 = vld [vmem:[%s8713_s4 + $0x388] sm:$0xff] }
  0x4b   : > { %5356 = vmatprep.subr.bf16.mxu1 %v5355_v16  ;;  %v5373_v2 = vpack.c.bf16 %v4470_v1, %v4468_v0  ;;  %v5375_v5 = vpack.c.bf16 %v4475_v4, %v4473_v3  ;;  %v4472_v6 = vld [vmem:[%s8713_s4 + $0x380] sm:$0xff]  ;;  %v4479_v11 = vld [vmem:[%s8713_s4 + $0x3b8] sm:$0xff]  ;;  %v4478_v14 = vld [vmem:[%s8713_s4 + $0x3b0] sm:$0xff] }
  0x4c   : > { %5298 = vmatpush1.bf16.msra.mxu0 %v5297_v34  ;;  %v5317_v34 = vpack.c.bf16 %v4410_v25, %v4408_v24  ;;  %v4476_v13 = vld [vmem:[%s8713_s4 + $0x3a0] sm:$0xff]  ;;  %v4481_v16 = vld [vmem:[%s8713_s4 + $0x3c8] sm:$0xff]  ;;  %v4483_v17 = vld [vmem:[%s8713_s4 + $0x3d8] sm:$0xff] }
  0x4d   : > { %5300 = vmatprep.subr.bf16.mxu0 %v5299_v35  ;;  %v657_v35 = vld [vmem:[%s6464_s21 + $0x18] sm:$0xff]  ;;  %v5381_v15 = vpack.c.bf16 %v4478_v14, %v4476_v13  ;;  %v5383_v18 = vpack.c.bf16 %v4483_v17, %v4481_v16  ;;  %v4480_v19 = vld [vmem:[%s8713_s4 + $0x3c0] sm:$0xff]  ;;  %v4482_v20 = vld [vmem:[%s8713_s4 + $0x3d0] sm:$0xff] }
  0x4e   : > { %5358 = vmatpush1.bf16.msra.mxu1 %v5357_v27  ;;  %v4484_v25 = vld [vmem:[%s8713_s4 + $0x3e0] sm:$0xff]  ;;  %v4486_v26 = vld [vmem:[%s8713_s4 + $0x3f0] sm:$0xff]  ;;  %v1097_v28 = vld [vmem:[%s8713_s4 + $0x8] sm:$0xff] }
  0x4f   : > { %5360 = vmatprep.subr.bf16.mxu1 %v5359_v29  ;;  %v5389_v27 = vpack.c.bf16 %v4486_v26, %v4484_v25  ;;  %v1099_v29 = vld [vmem:[%s8713_s4 + $0x18] sm:$0xff]  ;;  %v1101_v0 = vld [vmem:[%s8713_s4 + $0x28] sm:$0xff]  ;;  %v1100_v13 = vld [vmem:[%s8713_s4 + $0x20] sm:$0xff] }
  0x50   : > { %5302 = vmatpush1.bf16.msra.mxu0 %v5301_v46  ;;  %v4467_v46 = vld [vmem:[%s8713_s4 + $0x358] sm:$0xff]  ;;  %v5391_v30 = vpack.c.bf16 %v1099_v29, %v1097_v28  ;;  %v1102_v14 = vld [vmem:[%s8713_s4 + $0x30] sm:$0xff]  ;;  %v1105_v17 = vld [vmem:[%s8713_s4 + $0x48] sm:$0xff] }
  0x51   : > { %5304 = vmatprep.subr.bf16.mxu0 %v5303_v47  ;;  %v5321_v47 = vpack.c.bf16 %v4414_v38, %v4412_v37  ;;  %v5367_v52 = vpack.c.bf16 %v4467_v46, %v4465_v45  ;;  %v1103_v1 = vld [vmem:[%s8713_s4 + $0x38] sm:$0xff]  ;;  %v1109_v25 = vld [vmem:[%s8713_s4 + $0x68] sm:$0xff]  ;;  %v1110_v31 = vld [vmem:[%s8713_s4 + $0x70] sm:$0xff] }
  0x52   : > { %5362 = vmatpush1.bf16.msra.mxu1 %v5361_v40  ;;  %v1111_v26 = vld [vmem:[%s8713_s4 + $0x78] sm:$0xff] }
  0x53   : > { %4392 = vmatmul.mubr.msk.f32.vlgmr.msra.gmra.mrb[0].mxu0 %vm711_vm0, %v654_v58  ;;  %5364 = vmatprep.subr.bf16.mxu1 %v5363_v42  ;;  %v915_v58 = vld [vmem:[%s6464_s21 + $0xa] sm:$0xff]  ;;  %v5403_v29 = vpack.c.bf16 %v1111_v26, %v1109_v25 }
  0x54   : > { %5306 = vmatpush1.bf16.msra.mxu0 %v5305_v59  ;;  %895 = vmatprep.mubr.f32.mxu0 %v6217_v7  ;;  %v916_v59 = vld [vmem:[%s6464_s21 + $0x12] sm:$0xff] }
  0x55   : > { %5308 = vmatprep.subr.bf16.mxu0 %v5307_v60  ;;  %v917_v60 = vld [vmem:[%s6464_s21 + $0x1a] sm:$0xff]  ;;  %s8617_s21 = scalar_lea.hbm %s8718_s30, %s4776_s22 }
  0x56   : > { %5366 = vmatpush1.bf16.msra.mxu1 %v5365_v51 }
  0x57   : > { %4393 = vmatmul.mubr.msk.f32.gmra.mrb[2].mxu0 %vm711_vm0, %v655_v9  ;;  %5368 = vmatprep.subr.bf16.mxu1 %v5367_v52 }
  0x58   : > { %5310 = vmatpush1.bf16.msra.mxu0 %v5309_v8  ;;  %901 = vmatprep.mubr.f32.mxu0 %v6217_v7  ;;  %v4474_v8 = vld [vmem:[%s8713_s4 + $0x390] sm:$0xff] }
  0x59   : > { %5312 = vmatprep.subr.bf16.mxu0 %v5311_v10  ;;  %v5377_v9 = vpack.c.bf16 %v4474_v8, %v4472_v6  ;;  %v4477_v10 = vld [vmem:[%s8713_s4 + $0x3a8] sm:$0xff] }
  0x5a   : > { %5370 = vmatpush1.bf16.msra.mxu1 %v5369_v56  ;;  %v5379_v12 = vpack.c.bf16 %v4479_v11, %v4477_v10 }
  0x5b   : > { %4394 = vmatmul.mubr.msk.f32.gmra.mrb[4].mxu0 %vm711_vm0, %v656_v22  ;;  %5372 = vmatprep.subr.bf16.mxu1 %v5371_v63  ;;  %v4485_v22 = vld [vmem:[%s8713_s4 + $0x3e8] sm:$0xff] }
  0x5c   : > { %5314 = vmatpush1.bf16.msra.mxu0 %v5313_v21  ;;  %907 = vmatprep.mubr.f32.mxu0 %v6217_v7  ;;  %v5385_v21 = vpack.c.bf16 %v4482_v20, %v4480_v19  ;;  %v5397_v20 = vpack.c.bf16 %v1102_v14, %v1100_v13 }
  0x5d   : > { %5316 = vmatprep.subr.bf16.mxu0 %v5315_v23  ;;  %v4487_v23 = vld [vmem:[%s8713_s4 + $0x3f8] sm:$0xff] }
  0x5e   : > { %5374 = vmatpush1.bf16.msra.mxu1 %v5373_v2  ;;  %v5387_v24 = vpack.c.bf16 %v4487_v23, %v4485_v22  ;;  %v1104_v22 = vld [vmem:[%s8713_s4 + $0x40] sm:$0xff]  ;;  %v1106_v23 = vld [vmem:[%s8713_s4 + $0x50] sm:$0xff] }
  0x5f   : > { %4395 = vmatmul.mubr.msk.f32.gmra.mrb[6].mxu0 %vm711_vm0, %v657_v35  ;;  %5376 = vmatprep.subr.bf16.mxu1 %v5375_v5  ;;  %v6847_v35 = vsub.s32 1, %v6838_v32 }
  0x60   : > { %5318 = vmatpush1.bf16.msra.mxu0 %v5317_v34  ;;  %1019 = vmatprep.mubr.f32.mxu0 %v6217_v7  ;;  %v1052_v34 = vld [vmem:[%s8714_s26] sm:$0x3]  ;;  %s647_s26 = sand.u32 1, %s6207_s25  }
  0x61   : > { %5320 = vmatprep.subr.bf16.mxu0 %v5319_v36  ;;  %v1057_v36 = vrot.slane %v1052_v34, %v6841_v33  ;;  %v1061_v37 = vrot.slane %v1052_v34, %v6847_v35  ;;  %s648_s28 = scalar_lea.vmem [#allocation6], %s647_s26  ;;  %s4292_s1 = scalar_lea.sflag [#allocation7], %s647_s26 }
  0x62   : > { %5378 = vmatpush1.bf16.msra.mxu1 %v5377_v9 }
  0x63   : > { %5380 = vmatprep.subr.bf16.mxu1 %v5379_v12  ;;  %v5395_v12 = vpack.c.bf16 %v1103_v1, %v1101_v0  ;;  %v1120_v1 = vld [vmem:[%s8713_s4 + $0xc0] sm:$0xff] }
  0x64   : > { %5322 = vmatpush1.bf16.msra.mxu0 %v5321_v47 }
  0x65   : > { %5324 = vmatprep.subr.bf16.mxu0 %v5323_v48 }
  0x66   : > { %5382 = vmatpush1.bf16.msra.mxu1 %v5381_v15 }
  0x67   : > { %5384 = vmatprep.subr.bf16.mxu1 %v5383_v18  ;;  %v1107_v18 = vld [vmem:[%s8713_s4 + $0x58] sm:$0xff] }
  0x68   : > { %5326 = vmatpush1.bf16.msra.mxu0 %v5325_v55 }
  0x6a   : > { %5386 = vmatpush1.bf16.msra.mxu1 %v5385_v21  ;;  %v5399_v21 = vpack.c.bf16 %v1107_v18, %v1105_v17  ;;  %v1133_v17 = vld [vmem:[%s8713_s4 + $0x128] sm:$0xff]  ;;  %v1135_v18 = vld [vmem:[%s8713_s4 + $0x138] sm:$0xff] }
  0x6b   : > { %4420 = vmatmul.mubr.msk.f32.vlgmr.msra.gmra.mrb[0].mxu0 %vm711_vm0, %v914_v57  ;;  %5388 = vmatprep.subr.bf16.mxu1 %v5387_v24 }
  0x6c   : > { %1025 = vmatprep.mubr.f32.mxu0 %v6217_v7 }
  0x6e   : > { %5390 = vmatpush1.bf16.msra.mxu1 %v5389_v27  ;;  %v5401_v27 = vpack.c.bf16 %v1106_v23, %v1104_v22  ;;  %v1134_v22 = vld [vmem:[%s8713_s4 + $0x130] sm:$0xff]  ;;  %v1137_v23 = vld [vmem:[%s8713_s4 + $0x148] sm:$0xff] }
  0x6f   : > { %4421 = vmatmul.mubr.msk.f32.gmra.mrb[2].mxu0 %vm711_vm0, %v915_v58  ;;  %5392 = vmatprep.subr.bf16.mxu1 %v5391_v30  ;;  %v1096_v58 = vld [vmem:[%s8713_s4] sm:$0xff] }
  0x70   : > { %1031 = vmatprep.mubr.f32.mxu0 %v6217_v7  ;;  %v1108_v30 = vld [vmem:[%s8713_s4 + $0x60] sm:$0xff] }
  0x73   : > { %4422 = vmatmul.mubr.msk.f32.gmra.mrb[4].mxu0 %vm711_vm0, %v916_v59  ;;  %v1098_v59 = vld [vmem:[%s8713_s4 + $0x10] sm:$0xff] }
  0x74   : > { %1037 = vmatprep.mubr.f32.mxu0 %v6217_v7  ;;  %v5393_v9 = vpack.c.bf16 %v1098_v59, %v1096_v58  ;;  %v1116_v58 = vld [vmem:[%s8713_s4 + $0xa0] sm:$0xff]  ;;  %v1118_v59 = vld [vmem:[%s8713_s4 + $0xb0] sm:$0xff] }
  0x77   : > { %4423 = vmatmul.mubr.msk.f32.gmra.mrb[6].mxu0 %vm711_vm0, %v917_v60  ;;  %vm3064_vm0 = vcmask 392192  }
  0x78   : > { %1741 = vmatprep.mubr.f32.mxu0 %v6217_v7 }
 0x13e   : > { %v1021_v38 = vpop.f32.mrb[0].mxu0 }
 0x13f   : > { %v6851_v39 = vadd.f32 %v1057_v36, %v1021_v38  ;;  %v1023_v40 = vpop.f32.mrb[1].mxu0  ;;  %v1115_v38 = vld [vmem:[%s8713_s4 + $0x98] sm:$0xff] }
 0x140   : > { %v6853_v41 = vadd.f32 %v1061_v37, %v1023_v40 }
 0x141   : > { %v1072_v42 = vmax.f32 %v6851_v39, 0.0  ;;  %v4503_v39 = vld [vmem:[%s8713_s4 + $0x478] sm:$0xff] }
 0x142   : > { %v1073_v43 = vmax.f32 %v6853_v41, 0.0  ;;  %v1027_v44 = vpop.f32.mrb[2].mxu0  ;;  %v1127_v41 = vld [vmem:[%s8713_s4 + $0xf8] sm:$0xff] }
 0x143   : > { %1080 = vst [vmem:[#allocation2] sm:$0xff] %v1072_v42  ;;  %v1066_v45 = vadd.f32 %v1057_v36, %v1027_v44  ;;  %v1029_v46 = vpop.f32.mrb[3].mxu0  ;;  %v5405_v44 = vpack.c.bf16 %v1110_v31, %v1108_v30  ;;  %v1143_v30 = vld [vmem:[%s8713_s4 + $0x178] sm:$0xff] }
 0x144   : > { %1081 = vst [vmem:[#allocation2 + $0x8] sm:$0xff] %v1073_v43  ;;  %v1067_v47 = vadd.f32 %v1061_v37, %v1029_v46 }
 0x145   : > { %v6861_v48 = vmax.f32 %v1066_v45, 0.0 }
 0x146   : > { %v6863_v49 = vmax.f32 %v1067_v47, 0.0  ;;  %v1033_v50 = vpop.f32.mrb[4].mxu0  ;;  %v1112_v47 = vld [vmem:[%s8713_s4 + $0x80] sm:$0xff] }
 0x147   : > { %v1068_v51 = vadd.f32 %v1057_v36, %v1033_v50  ;;  %v1035_v52 = vpop.f32.mrb[5].mxu0  ;;  %v1239_v8 = vrot.slane %v6861_v48, 1  ;;  %v1114_v50 = vld [vmem:[%s8713_s4 + $0x90] sm:$0xff] }
 0x148   : > { %v1069_v53 = vadd.f32 %v1061_v37, %v1035_v52  ;;  %v1242_v4 = vrot.slane %v6863_v49, 1  ;;  %v1117_v52 = vld [vmem:[%s8713_s4 + $0xa8] sm:$0xff] }
 0x149   : > { %v6865_v54 = vmax.f32 %v1068_v51, 0.0 }
 0x14a   : > { %v6867_v55 = vmax.f32 %v1069_v53, 0.0  ;;  %v1039_v56 = vpop.f32.mrb[6].mxu0  ;;  %v1160_v57 = vld [vmem:[#allocation2] sm:$0xfe]  ;;  %v1119_v53 = vld [vmem:[%s8713_s4 + $0xb8] sm:$0xff] }
 0x14b   : > { %v6875_v60 = vadd.f32 %v1057_v36, %v1039_v56  ;;  %v1041_v61 = vpop.f32.mrb[7].mxu0  ;;  %v1161_v62 = vld [vmem:[#allocation2 + $0x8] sm:$0xfe]  ;;  %v1238_v63 = vrot.slane %v1160_v57, 1  ;;  %v1244_v16 = vrot.slane %v6865_v54, 1  ;;  %v5409_v56 = vpack.c.bf16 %v1114_v50, %v1112_v47  ;;  %v1146_v47 = vld [vmem:[%s8713_s4 + $0x190] sm:$0xff] }
 0x14c   : > { %v6883_v2 = vadd.f32 %v1061_v37, %v1041_v61  ;;  %v1241_v3 = vrot.slane %v1161_v62, 1  ;;  %v1246_v5 = vrot.slane %v6867_v55, 1  ;;  %v1113_v37 = vld [vmem:[%s8713_s4 + $0x88] sm:$0xff]  ;;  %v5411_v57 = vpack.c.bf16 %v1119_v53, %v1117_v52  ;;  %v1123_v62 = vld [vmem:[%s8713_s4 + $0xd8] sm:$0xff] }
 0x14d   : > { %v1078_v6 = vmax.f32 %v6875_v60, 0.0  ;;  %v1240_v15 = vsel %vm1237_vm1, %v1238_v63, %v1239_v8  ;;  %v1245_v24 = vsel %vm1237_vm1, %v1239_v8, %v1244_v16  ;;  %v5407_v46 = vpack.c.bf16 %v1115_v38, %v1113_v37  ;;  %v1121_v61 = vld [vmem:[%s8713_s4 + $0xc8] sm:$0xff]  ;;  %v1124_v8 = vld [vmem:[%s8713_s4 + $0xe0] sm:$0xff]  ;;  %v1142_v37 = vld [vmem:[%s8713_s4 + $0x170] sm:$0xff] }
 0x14e   : > { %v1079_v10 = vmax.f32 %v6883_v2, 0.0  ;;  %v1243_v11 = vsel %vm1237_vm1, %v1241_v3, %v1242_v4  ;;  %v1247_v19 = vsel %vm1237_vm1, %v1242_v4, %v1246_v5  ;;  %v5413_v63 = vpack.c.bf16 %v1118_v59, %v1116_v58  ;;  %v1122_v3 = vld [vmem:[%s8713_s4 + $0xd0] sm:$0xff]  ;;  %v1125_v4 = vld [vmem:[%s8713_s4 + $0xe8] sm:$0xff]  ;;  %v1155_v59 = vld [vmem:[%s8713_s4 + $0x1d8] sm:$0xff] }
 0x14f   : > { %1086 = vst [vmem:[#allocation2 + $0x30] sm:$0xff] %v1078_v6  ;;  %1324 = vmatprep.mubr.f32.mxu1 %v1243_v11  ;;  %v5415_v0 = vpack.c.bf16 %v1123_v62, %v1121_v61  ;;  %v1129_v11 = vld [vmem:[%s8713_s4 + $0x108] sm:$0xff] }
 0x150   : > { %1087 = vst [vmem:[#allocation2 + $0x38] sm:$0xff] %v1079_v10  ;;  %1325 = vmatmul.mubr.f32.vlgmr.msra.gmra.mrb[0].mxu1 %v1240_v15  ;;  %v1128_v15 = vld [vmem:[%s8713_s4 + $0x100] sm:$0xff]  ;;  %v1145_v38 = vld [vmem:[%s8713_s4 + $0x188] sm:$0xff] }
 0x151   : > { %5394 = vmatpush1.bf16.msra.mxu1 %v5393_v9  ;;  %1330 = vmatprep.mubr.f32.mxu1 %v1247_v19  ;;  %v1126_v9 = vld [vmem:[%s8713_s4 + $0xf0] sm:$0xff]  ;;  %v1149_v50 = vld [vmem:[%s8713_s4 + $0x1a8] sm:$0xff] }
 0x152   : > { %5396 = vmatprep.subr.bf16.mxu1 %v5395_v12  ;;  %v1131_v12 = vld [vmem:[%s8713_s4 + $0x118] sm:$0xff]  ;;  %v5421_v13 = vpack.c.bf16 %v1126_v9, %v1124_v8  ;;  %v1153_v58 = vld [vmem:[%s8713_s4 + $0x1c8] sm:$0xff] }
 0x153   : > { %v5423_v14 = vpack.c.bf16 %v1131_v12, %v1129_v11  ;;  %v5447_v62 = vpack.c.bf16 %v1155_v59, %v1153_v58  ;;  %v4489_v8 = vld [vmem:[%s8713_s4 + $0x408] sm:$0xff]  ;;  %v4491_v9 = vld [vmem:[%s8713_s4 + $0x418] sm:$0xff]  ;;  %v4508_v58 = vld [vmem:[%s8713_s4 + $0x4a0] sm:$0xff] }
 0x154   : > { %1331 = vmatmul.mubr.f32.gmra.mrb[2].mxu1 %v1245_v24  ;;  %v1139_v24 = vld [vmem:[%s8713_s4 + $0x158] sm:$0xff]  ;;  %v5455_v12 = vpack.c.bf16 %v4491_v9, %v4489_v8  ;;  %v4510_v59 = vld [vmem:[%s8713_s4 + $0x4b0] sm:$0xff]  ;;  %v4516_v8 = vld [vmem:[%s8713_s4 + $0x4e0] sm:$0xff] }
 0x155   : > { %5398 = vmatpush1.bf16.msra.mxu1 %v5397_v20  ;;  %v5427_v20 = vpack.c.bf16 %v1135_v18, %v1133_v17  ;;  %v5431_v26 = vpack.c.bf16 %v1139_v24, %v1137_v23  ;;  %v4518_v9 = vld [vmem:[%s8713_s4 + $0x4f0] sm:$0xff] }
 0x156   : > { %5400 = vmatprep.subr.bf16.mxu1 %v5399_v21  ;;  %v1162_v28 = vld [vmem:[#allocation2 + $0x30] sm:$0x7f]  ;;  %v1132_v21 = vld [vmem:[%s8713_s4 + $0x120] sm:$0xff] }
 0x157   : > { %v1163_v34 = vld [vmem:[#allocation2 + $0x38] sm:$0x7f]  ;;  %v1248_v36 = vrot.slane %v1162_v28, 1  ;;  %v5429_v25 = vpack.c.bf16 %v1134_v22, %v1132_v21  ;;  %v1138_v28 = vld [vmem:[%s8713_s4 + $0x150] sm:$0xff]  ;;  %v4497_v21 = vld [vmem:[%s8713_s4 + $0x448] sm:$0xff] }
 0x158   : > { %v1250_v40 = vrot.slane %v1163_v34, 1  ;;  %v4499_v22 = vld [vmem:[%s8713_s4 + $0x458] sm:$0xff] }
 0x159   : > { %5402 = vmatpush1.bf16.msra.mxu1 %v5401_v27  ;;  %v1249_v51 = vsel %vm1237_vm1, %v1244_v16, %v1248_v36  ;;  %v1130_v16 = vld [vmem:[%s8713_s4 + $0x110] sm:$0xff]  ;;  %v1136_v27 = vld [vmem:[%s8713_s4 + $0x140] sm:$0xff]  ;;  %v5463_v24 = vpack.c.bf16 %v4499_v22, %v4497_v21 }
 0x15a   : > { %v1251_v45 = vsel %vm1237_vm1, %v1246_v5, %v1250_v40  ;;  %5404 = vmatprep.subr.bf16.mxu1 %v5403_v29  ;;  %v5419_v5 = vpack.c.bf16 %v1127_v41, %v1125_v4  ;;  %v5425_v19 = vpack.c.bf16 %v1130_v16, %v1128_v15  ;;  %v1141_v29 = vld [vmem:[%s8713_s4 + $0x168] sm:$0xff]  ;;  %v5433_v31 = vpack.c.bf16 %v1138_v28, %v1136_v27  ;;  %v4495_v16 = vld [vmem:[%s8713_s4 + $0x438] sm:$0xff]  ;;  %v4524_v21 = vld [vmem:[%s8713_s4 + $0x520] sm:$0xff] }
 0x15b   : > { %1336 = vmatprep.mubr.f32.mxu1 %v1251_v45  ;;  %v5435_v34 = vpack.c.bf16 %v1143_v30, %v1141_v29  ;;  %v4493_v15 = vld [vmem:[%s8713_s4 + $0x428] sm:$0xff]  ;;  %v4500_v30 = vld [vmem:[%s8713_s4 + $0x460] sm:$0xff]  ;;  %v4526_v22 = vld [vmem:[%s8713_s4 + $0x530] sm:$0xff] }
 0x15c   : > { %1337 = vmatmul.mubr.f32.gmra.mrb[4].mxu1 %v1249_v51  ;;  %v1151_v51 = vld [vmem:[%s8713_s4 + $0x1b8] sm:$0xff]  ;;  %v5459_v18 = vpack.c.bf16 %v4495_v16, %v4493_v15  ;;  %v4501_v27 = vld [vmem:[%s8713_s4 + $0x468] sm:$0xff]  ;;  %v4520_v15 = vld [vmem:[%s8713_s4 + $0x500] sm:$0xff] }
 0x15d   : > { %1342 = vmatprep.mubr.f32.mxu1 %v1250_v40  ;;  %5406 = vmatpush1.bf16.msra.mxu1 %v5405_v44  ;;  %v1147_v40 = vld [vmem:[%s8713_s4 + $0x198] sm:$0xff]  ;;  %v5443_v53 = vpack.c.bf16 %v1151_v51, %v1149_v50  ;;  %v1439_v28 = vld [vmem:[#allocation2 + $0x8] sm:$0xfc]  ;;  %v5467_v29 = vpack.c.bf16 %v4503_v39, %v4501_v27  ;;  %v1094_v50 = vld [vmem:[#allocation2 + $0x30] sm:$0x3f] }
 0x15e   : > { %5408 = vmatprep.subr.bf16.mxu1 %v5407_v46  ;;  %v5439_v45 = vpack.c.bf16 %v1147_v40, %v1145_v38  ;;  %v1144_v46 = vld [vmem:[%s8713_s4 + $0x180] sm:$0xff]  ;;  %v1515_v38 = vrot.slane %v1439_v28, 2  ;;  %v4509_v51 = vld [vmem:[%s8713_s4 + $0x4a8] sm:$0xff]  ;;  %v4522_v16 = vld [vmem:[%s8713_s4 + $0x510] sm:$0xff] }
 0x15f   : > { %v5441_v52 = vpack.c.bf16 %v1146_v47, %v1144_v46  ;;  %v4504_v46 = vld [vmem:[%s8713_s4 + $0x480] sm:$0xff]  ;;  %v4506_v47 = vld [vmem:[%s8713_s4 + $0x490] sm:$0xff]  ;;  %v4535_v28 = vld [vmem:[%s8713_s4 + $0x578] sm:$0xff] }
 0x160   : > { %1343 = vmatmul.mubr.f32.gmra.mrb[6].mxu1 %v1248_v36  ;;  %v1140_v36 = vld [vmem:[%s8713_s4 + $0x160] sm:$0xff]  ;;  %v4530_v39 = vld [vmem:[%s8713_s4 + $0x550] sm:$0xff] }
 0x161   : > { %1413 = vmatprep.mubr.f32.mxu1 %v1073_v43  ;;  %5410 = vmatpush1.bf16.msra.mxu1 %v5409_v56  ;;  %v5417_v43 = vpack.c.bf16 %v1122_v3, %v1120_v1  ;;  %v5437_v44 = vpack.c.bf16 %v1142_v37, %v1140_v36  ;;  %v1148_v56 = vld [vmem:[%s8713_s4 + $0x1a0] sm:$0xff]  ;;  %v1157_v1 = vld [vmem:[%s8713_s4 + $0x1e8] sm:$0xff]  ;;  %v1159_v3 = vld [vmem:[%s8713_s4 + $0x1f8] sm:$0xff] }
 0x162   : > { %5412 = vmatprep.subr.bf16.mxu1 %v5411_v57  ;;  %v1150_v57 = vld [vmem:[%s8713_s4 + $0x1b0] sm:$0xff]  ;;  %v5451_v41 = vpack.c.bf16 %v1159_v3, %v1157_v1  ;;  %v4507_v36 = vld [vmem:[%s8713_s4 + $0x498] sm:$0xff]  ;;  %v4512_v1 = vld [vmem:[%s8713_s4 + $0x4c0] sm:$0xff] }
 0x163   : > { %v5445_v61 = vpack.c.bf16 %v1150_v57, %v1148_v56  ;;  %v1095_v37 = vld [vmem:[#allocation2 + $0x38] sm:$0x3f]  ;;  %v5473_v56 = vpack.c.bf16 %v4506_v47, %v4504_v46  ;;  %v4514_v3 = vld [vmem:[%s8713_s4 + $0x4d0] sm:$0xff]  ;;  %v4528_v27 = vld [vmem:[%s8713_s4 + $0x540] sm:$0xff] }
 0x164   : > { %v4538_v46 = vld [vmem:[%s8713_s4 + $0x590] sm:$0xff]  ;;  %v4541_v47 = vld [vmem:[%s8713_s4 + $0x5a8] sm:$0xff] }
 0x165   : > { %5414 = vmatpush1.bf16.msra.mxu1 %v5413_v63  ;;  %v1152_v63 = vld [vmem:[%s8713_s4 + $0x1c0] sm:$0xff] }
 0x166   : > { %5416 = vmatprep.subr.bf16.mxu1 %v5415_v0  ;;  %v1154_v0 = vld [vmem:[%s8713_s4 + $0x1d0] sm:$0xff] }
 0x167   : > { %v5449_v4 = vpack.c.bf16 %v1154_v0, %v1152_v63  ;;  %v5477_v63 = vpack.c.bf16 %v4510_v59, %v4508_v58  ;;  %v4547_v58 = vld [vmem:[%s8713_s4 + $0x5d8] sm:$0xff] }
 0x169   : > { %5418 = vmatpush1.bf16.msra.mxu1 %v5417_v43  ;;  %v1156_v43 = vld [vmem:[%s8713_s4 + $0x1e0] sm:$0xff] }
 0x16a   : > { %5420 = vmatprep.subr.bf16.mxu1 %v5419_v5  ;;  %v1158_v5 = vld [vmem:[%s8713_s4 + $0x1f0] sm:$0xff] }
 0x16b   : > { %v5453_v11 = vpack.c.bf16 %v1158_v5, %v1156_v43  ;;  %v5481_v43 = vpack.c.bf16 %v4514_v3, %v4512_v1  ;;  %v4551_v1 = vld [vmem:[%s8713_s4 + $0x5f8] sm:$0xff] }
 0x16d   : > { %5422 = vmatpush1.bf16.msra.mxu1 %v5421_v13  ;;  %v4488_v13 = vld [vmem:[%s8713_s4 + $0x400] sm:$0xff] }
 0x16e   : > { %5424 = vmatprep.subr.bf16.mxu1 %v5423_v14  ;;  %v4490_v14 = vld [vmem:[%s8713_s4 + $0x410] sm:$0xff] }
 0x16f   : > { %v5457_v17 = vpack.c.bf16 %v4490_v14, %v4488_v13  ;;  %v5485_v13 = vpack.c.bf16 %v4518_v9, %v4516_v8 }
 0x171   : > { %5426 = vmatpush1.bf16.msra.mxu1 %v5425_v19  ;;  %v4492_v19 = vld [vmem:[%s8713_s4 + $0x420] sm:$0xff] }
 0x172   : > { %5428 = vmatprep.subr.bf16.mxu1 %v5427_v20  ;;  %v4494_v20 = vld [vmem:[%s8713_s4 + $0x430] sm:$0xff] }
 0x173   : > { %v5461_v23 = vpack.c.bf16 %v4494_v20, %v4492_v19  ;;  %v5489_v19 = vpack.c.bf16 %v4522_v16, %v4520_v15  ;;  %v1524_v16 = vrot.slane %v1079_v10, 2 }
 0x175   : > { %5430 = vmatpush1.bf16.msra.mxu1 %v5429_v25  ;;  %v4496_v25 = vld [vmem:[%s8713_s4 + $0x440] sm:$0xff] }
 0x176   : > { %5432 = vmatprep.subr.bf16.mxu1 %v5431_v26  ;;  %v4498_v26 = vld [vmem:[%s8713_s4 + $0x450] sm:$0xff] }
 0x179   : > { %5434 = vmatpush1.bf16.msra.mxu1 %v5433_v31  ;;  %v4502_v31 = vld [vmem:[%s8713_s4 + $0x470] sm:$0xff] }
 0x17a   : > { %5436 = vmatprep.subr.bf16.mxu1 %v5435_v34  ;;  %v4505_v34 = vld [vmem:[%s8713_s4 + $0x488] sm:$0xff]  ;;  %v5469_v40 = vpack.c.bf16 %v4502_v31, %v4500_v30  ;;  %v4532_v31 = vld [vmem:[%s8713_s4 + $0x560] sm:$0xff] }
 0x17d   : > { %5438 = vmatpush1.bf16.msra.mxu1 %v5437_v44  ;;  %v1516_v44 = vrot.slane %v6863_v49, 2 }
 0x17e   : > { %5440 = vmatprep.subr.bf16.mxu1 %v5439_v45  ;;  %v5471_v45 = vpack.c.bf16 %v4507_v36, %v4505_v34  ;;  %v4534_v34 = vld [vmem:[%s8713_s4 + $0x570] sm:$0xff]  ;;  %v4537_v36 = vld [vmem:[%s8713_s4 + $0x588] sm:$0xff] }
 0x181   : > { %5442 = vmatpush1.bf16.msra.mxu1 %v5441_v52  ;;  %v4511_v52 = vld [vmem:[%s8713_s4 + $0x4b8] sm:$0xff] }
 0x182   : > { %5444 = vmatprep.subr.bf16.mxu1 %v5443_v53  ;;  %v1517_v53 = vsel %vm1511_vm2, %v1515_v38, %v1516_v44  ;;  %v5475_v57 = vpack.c.bf16 %v4511_v52, %v4509_v51  ;;  %v5501_v38 = vpack.c.bf16 %v4534_v34, %v4532_v31 }
 0x185   : > { %5446 = vmatpush1.bf16.msra.mxu1 %v5445_v61  ;;  %v4513_v61 = vld [vmem:[%s8713_s4 + $0x4c8] sm:$0xff] }
 0x186   : > { %5448 = vmatprep.subr.bf16.mxu1 %v5447_v62  ;;  %v4515_v62 = vld [vmem:[%s8713_s4 + $0x4d8] sm:$0xff] }
 0x187   : > { %v5479_v0 = vpack.c.bf16 %v4515_v62, %v4513_v61  ;;  %v4544_v62 = vld [vmem:[%s8713_s4 + $0x5c0] sm:$0xff] }
 0x189   : > { %5450 = vmatpush1.bf16.msra.mxu1 %v5449_v4  ;;  %v4517_v4 = vld [vmem:[%s8713_s4 + $0x4e8] sm:$0xff] }
 0x18a   : > { %5452 = vmatprep.subr.bf16.mxu1 %v5451_v41  ;;  %v4519_v41 = vld [vmem:[%s8713_s4 + $0x4f8] sm:$0xff] }
 0x18b   : > { %v5483_v5 = vpack.c.bf16 %v4519_v41, %v4517_v4  ;;  %v4548_v41 = vld [vmem:[%s8713_s4 + $0x5e0] sm:$0xff] }
 0x18d   : > { %5454 = vmatpush1.bf16.msra.mxu1 %v5453_v11  ;;  %v4521_v11 = vld [vmem:[%s8713_s4 + $0x508] sm:$0xff] }
 0x18e   : > { %5456 = vmatprep.subr.bf16.mxu1 %v5455_v12  ;;  %v4523_v12 = vld [vmem:[%s8713_s4 + $0x518] sm:$0xff] }
 0x18f   : > { %v5487_v14 = vpack.c.bf16 %v4523_v12, %v4521_v11  ;;  %v1520_v11 = vrot.slane %v6867_v55, 2  ;;  %v1513_v12 = vrot.slane %v6861_v48, 2 }
 0x190   : > { %1414 = vmatmul.mubr.f32.vlgmr.msra.gmra.mrb[0].mxu1 %v1072_v42  ;;  %v5465_v42 = vpack.c.bf16 %v4498_v26, %v4496_v25  ;;  %v5493_v25 = vpack.c.bf16 %v4526_v22, %v4524_v21 }
 0x191   : > { %1419 = vmatprep.mubr.f32.mxu1 %v6863_v49  ;;  %5458 = vmatpush1.bf16.msra.mxu1 %v5457_v17  ;;  %v4525_v17 = vld [vmem:[%s8713_s4 + $0x528] sm:$0xff]  ;;  %v1521_v15 = vsel %vm1511_vm2, %v1516_v44, %v1520_v11  ;;  %v1631_v49 = vld [vmem:[%s8715_s2] sm:$0x3] }
 0x192   : > { %5460 = vmatprep.subr.bf16.mxu1 %v5459_v18  ;;  %v4527_v18 = vld [vmem:[%s8713_s4 + $0x538] sm:$0xff]  ;;  %v1636_v2 = vrot.slane %v1631_v49, %v6841_v33  ;;  %v1640_v44 = vrot.slane %v1631_v49, %v6847_v35  ;;  %v1859_v49 = vld [vmem:[%s8666_s7 + $0x80] sm:$0xff] }
 0x193   : > { %v5491_v20 = vpack.c.bf16 %v4527_v18, %v4525_v17 }
 0x194   : > { %1420 = vmatmul.mubr.f32.gmra.mrb[2].mxu1 %v6861_v48  ;;  %v1525_v48 = vsel %vm1511_vm2, %v1520_v11, %v1524_v16 }
 0x195   : > { %1425 = vmatprep.mubr.f32.mxu1 %v6867_v55  ;;  %5462 = vmatpush1.bf16.msra.mxu1 %v5461_v23  ;;  %v4529_v23 = vld [vmem:[%s8713_s4 + $0x548] sm:$0xff]  ;;  %v1522_v55 = vrot.slane %v1078_v6, 2 }
 0x196   : > { %5464 = vmatprep.subr.bf16.mxu1 %v5463_v24  ;;  %v4531_v24 = vld [vmem:[%s8713_s4 + $0x558] sm:$0xff] }
 0x197   : > { %v5495_v26 = vpack.c.bf16 %v4531_v24, %v4529_v23 }
 0x198   : > { %1426 = vmatmul.mubr.f32.gmra.mrb[4].mxu1 %v6865_v54 }
 0x199   : > { %1431 = vmatprep.mubr.f32.mxu1 %v1095_v37  ;;  %5466 = vmatpush1.bf16.msra.mxu1 %v5465_v42  ;;  %v4533_v42 = vld [vmem:[%s8713_s4 + $0x568] sm:$0xff]  ;;  %v4539_v37 = vld [vmem:[%s8713_s4 + $0x598] sm:$0xff] }
 0x19a   : > { %5468 = vmatprep.subr.bf16.mxu1 %v5467_v29  ;;  %v5497_v29 = vpack.c.bf16 %v4530_v39, %v4528_v27  ;;  %v5499_v30 = vpack.c.bf16 %v4535_v28, %v4533_v42 }
 0x19c   : > { %1432 = vmatmul.mubr.f32.gmra.mrb[6].mxu1 %v1094_v50  ;;  %v4543_v50 = vld [vmem:[%s8713_s4 + $0x5b8] sm:$0xff] }
 0x19d   : > { %5470 = vmatpush1.bf16.msra.mxu1 %v5469_v40  ;;  %1598 = vmatprep.mubr.f32.mxu1 %v1517_v53  ;;  %v5503_v40 = vpack.c.bf16 %v4539_v37, %v4537_v36  ;;  %v5507_v52 = vpack.c.bf16 %v4543_v50, %v4541_v47  ;;  %v4540_v53 = vld [vmem:[%s8713_s4 + $0x5a0] sm:$0xff] }
 0x19e   : > { %5472 = vmatprep.subr.bf16.mxu1 %v5471_v45  ;;  %v4536_v45 = vld [vmem:[%s8713_s4 + $0x580] sm:$0xff] }
 0x19f   : > { %v5505_v51 = vpack.c.bf16 %v4538_v46, %v4536_v45 }
 0x1a1   : > { %5474 = vmatpush1.bf16.msra.mxu1 %v5473_v56  ;;  %v4542_v56 = vld [vmem:[%s8713_s4 + $0x5b0] sm:$0xff] }
 0x1a2   : > { %5476 = vmatprep.subr.bf16.mxu1 %v5475_v57  ;;  %v4545_v57 = vld [vmem:[%s8713_s4 + $0x5c8] sm:$0xff]  ;;  %v5509_v59 = vpack.c.bf16 %v4542_v56, %v4540_v53  ;;  %v1843_v53 = vld [vmem:[%s8666_s7] sm:$0xff] }
 0x1a3   : > { %v5511_v61 = vpack.c.bf16 %v4547_v58, %v4545_v57  ;;  %v1844_v56 = vld [vmem:[%s8666_s7 + $0x8] sm:$0xff]  ;;  %v1754_v57 = vld [vmem:[%s8665_s6] sm:$0xff] }
 0x1a4   : > { %v5540_v58 = vpack.c.bf16 %v1844_v56, %v1843_v53  ;;  %v1958_v53 = vld [vmem:[%s8667_s8 + $0x18] sm:$0xff] }
 0x1a5   : > { %5478 = vmatpush1.bf16.msra.mxu1 %v5477_v63  ;;  %v4546_v63 = vld [vmem:[%s8713_s4 + $0x5d0] sm:$0xff] }
 0x1a6   : > { %5480 = vmatprep.subr.bf16.mxu1 %v5479_v0  ;;  %v4549_v0 = vld [vmem:[%s8713_s4 + $0x5e8] sm:$0xff]  ;;  %v5513_v3 = vpack.c.bf16 %v4546_v63, %v4544_v62  ;;  %v1846_v62 = vld [vmem:[%s8666_s7 + $0x18] sm:$0xff] }
 0x1a7   : > { %v5515_v4 = vpack.c.bf16 %v4551_v1, %v4549_v0  ;;  %v1755_v63 = vld [vmem:[%s8665_s6 + $0x8] sm:$0x7f]  ;;  %v1847_v1 = vld [vmem:[%s8666_s7 + $0x20] sm:$0xff] }
 0x1a9   : > { %5482 = vmatpush1.bf16.msra.mxu1 %v5481_v43  ;;  %v4550_v43 = vld [vmem:[%s8713_s4 + $0x5f0] sm:$0xff]  ;;  %s6159_s4 = scalar_lea.vmem %s6158_s27, 32 }
 0x1aa   : > { %5484 = vmatprep.subr.bf16.mxu1 %v5483_v5  ;;  %v1438_v5 = vld [vmem:[#allocation2] sm:$0xfc]  ;;  %v5517_v8 = vpack.c.bf16 %v4550_v43, %v4548_v41  ;;  %v1849_v41 = vld [vmem:[%s8666_s7 + $0x30] sm:$0xff]  ;;  %v1850_v43 = vld [vmem:[%s8666_s7 + $0x38] sm:$0xff] }
 0x1ab   : > { %v1512_v9 = vrot.slane %v1438_v5, 2  ;;  %v5549_v5 = vpack.c.bf16 %v1850_v43, %v1849_v41  ;;  %v1963_v43 = vld [vmem:[%s8667_s8 + $0x40] sm:$0xff] }
 0x1ad   : > { %5486 = vmatpush1.bf16.msra.mxu1 %v5485_v13  ;;  %v1514_v13 = vsel %vm1511_vm2, %v1512_v9, %v1513_v12  ;;  %v1852_v9 = vld [vmem:[%s8666_s7 + $0x48] sm:$0xff] }
 0x1ae   : > { %5488 = vmatprep.subr.bf16.mxu1 %v5487_v14  ;;  %v1518_v14 = vrot.slane %v6865_v54, 2 }
 0x1b0   : > { %v1519_v17 = vsel %vm1511_vm2, %v1513_v12, %v1518_v14  ;;  %v1523_v54 = vsel %vm1511_vm2, %v1518_v14, %v1522_v55  ;;  %v1853_v12 = vld [vmem:[%s8666_s7 + $0x50] sm:$0xff] }
 0x1b1   : > { %5490 = vmatpush1.bf16.msra.mxu1 %v5489_v19 }
 0x1b2   : > { %5492 = vmatprep.subr.bf16.mxu1 %v5491_v20 }
 0x1b5   : > { %5494 = vmatpush1.bf16.msra.mxu1 %v5493_v25 }
 0x1b6   : > { %5496 = vmatprep.subr.bf16.mxu1 %v5495_v26 }
 0x1b9   : > { %5498 = vmatpush1.bf16.msra.mxu1 %v5497_v29 }
 0x1ba   : > { %5500 = vmatprep.subr.bf16.mxu1 %v5499_v30 }
 0x1bd   : > { %5502 = vmatpush1.bf16.msra.mxu1 %v5501_v38 }
 0x1be   : > { %5504 = vmatprep.subr.bf16.mxu1 %v5503_v40 }
 0x1c1   : > { %5506 = vmatpush1.bf16.msra.mxu1 %v5505_v51  ;;  %v1662_v51 = vld [vmem:[%s8716_s0] sm:$0xff] }
 0x1c2   : > { %5508 = vmatprep.subr.bf16.mxu1 %v5507_v52  ;;  %v1663_v52 = vld [vmem:[%s8716_s0 + $0x8] sm:$0x7f]  ;;  %s4304_s0 = sshll.u32 %s648_s28, 4  ;;  %s8619_s0 = int_to_ptr.vmem [resolvable:$true] %s4304_s0 }
 0x1c3   : > { %s6153_s5 = scalar_lea.vmem %s8619_s0, 16  ;;  %p6160_p0 = scmp.lt.s32.totalorder %s8619_s0, %s6158_s27 }
 0x1c4   : > { %p6154_p11 = scmp.ne.s32.totalorder %s8619_s0, %s6153_s5  ;;  %p6161_p1 = scmp.lt.s32.totalorder %s6159_s4, %s6153_s5 }
 0x1c5   : > { %5510 = vmatpush1.bf16.msra.mxu1 %v5509_v59  ;;  %v6219_v59 = vmov 0.0|0.0  }
 0x1c6   : > { %5512 = vmatprep.subr.bf16.mxu1 %v5511_v61  ;;  %v1845_v61 = vld [vmem:[%s8666_s7 + $0x10] sm:$0xff]  ;;  %p6155_p12 = pnand %p6154_p11, %p6370_p5  ;;  %p6162_p2 = por %p6161_p1, %p6160_p0 }
 0x1c7   : > { %v5543_v0 = vpack.c.bf16 %v1846_v62, %v1845_v61 }
 0x1c8   : > { %p6156_p13 = pneg %p6155_p12 }
 0x1c9   : > { %5514 = vmatpush1.bf16.msra.mxu1 %v5513_v3  ;;  %v1848_v3 = vld [vmem:[%s8666_s7 + $0x28] sm:$0xff] }
 0x1ca   : > { %5516 = vmatprep.subr.bf16.mxu1 %v5515_v4  ;;  %v5546_v4 = vpack.c.bf16 %v1848_v3, %v1847_v1  ;;  %v1961_v3 = vld [vmem:[%s8667_s8 + $0x30] sm:$0xff]  ;;  %p6163_p3 = pnand %p6162_p2, %p6156_p13 }
 0x1cd   : > { %5518 = vmatpush1.bf16.msra.mxu1 %v5517_v8  ;;  %v1851_v8 = vld [vmem:[%s8666_s7 + $0x40] sm:$0xff] }
 0x1ce   : > { %v5552_v11 = vpack.c.bf16 %v1852_v9, %v1851_v8  ;;  %v1965_v9 = vld [vmem:[%s8667_s8 + $0x50] sm:$0xff] }
 0x1d0   : > { %1599 = vmatmul.mubr.f32.vlgmr.msra.gmra.mrb[0].mxu1 %v1514_v13  ;;  %v1854_v13 = vld [vmem:[%s8666_s7 + $0x58] sm:$0xff] }
 0x1d1   : > { %1604 = vmatprep.mubr.f32.mxu1 %v1521_v15  ;;  %v5555_v14 = vpack.c.bf16 %v1854_v13, %v1853_v12  ;;  %v1855_v15 = vld [vmem:[%s8666_s7 + $0x60] sm:$0xff] }
 0x1d2   : > { %v1967_v13 = vld [vmem:[%s8667_s8 + $0x60] sm:$0xff] }
 0x1d4   : > { %1605 = vmatmul.mubr.f32.gmra.mrb[2].mxu1 %v1519_v17 }
 0x1d5   : > { %1610 = vmatprep.mubr.f32.mxu1 %v1525_v48  ;;  %v1858_v48 = vld [vmem:[%s8666_s7 + $0x78] sm:$0xff] }
 0x1d8   : > { %1611 = vmatmul.mubr.f32.gmra.mrb[4].mxu1 %v1523_v54 }
 0x1d9   : > { %1616 = vmatprep.mubr.f32.mxu1 %v1524_v16  ;;  %v1856_v16 = vld [vmem:[%s8666_s7 + $0x68] sm:$0xff] }
 0x1da   : > { %v5558_v17 = vpack.c.bf16 %v1856_v16, %v1855_v15  ;;  %v1969_v16 = vld [vmem:[%s8667_s8 + $0x70] sm:$0xff] }
 0x1dc   : > { %1617 = vmatmul.mubr.f32.gmra.mrb[6].mxu1 %v1522_v55  ;;  %v1857_v55 = vld [vmem:[%s8666_s7 + $0x70] sm:$0xff] }
 0x1dd   : > { %v5561_v54 = vpack.c.bf16 %v1858_v48, %v1857_v55  ;;  %v1971_v48 = vld [vmem:[%s8667_s8 + $0x80] sm:$0xff] }
 0x2a3   : > { %v1600_v10 = vpop.f32.mrb[0].mxu1 }
 0x2a4   : > { %v1602_v60 = vpop.f32.mrb[1].mxu1  ;;  %v1643_v6 = vadd.f32 %v1636_v2, %v1600_v10 }
 0x2a5   : > { %v1644_v18 = vadd.f32 %v1640_v44, %v1602_v60  ;;  %v1862_v60 = vld [vmem:[%s8666_s7 + $0x98] sm:$0xff] }
 0x2a6   : > { %v1651_v23 = vmax.f32 %v1643_v6, 0.0 }
 0x2a7   : > { %v1606_v19 = vpop.f32.mrb[2].mxu1  ;;  %v1652_v25 = vmax.f32 %v1644_v18, 0.0  ;;  %v1863_v18 = vld [vmem:[%s8666_s7 + $0xa0] sm:$0xff] }
 0x2a8   : > { %v1645_v20 = vadd.f32 %v1636_v2, %v1606_v19  ;;  %v1608_v21 = vpop.f32.mrb[3].mxu1  ;;  %v1864_v19 = vld [vmem:[%s8666_s7 + $0xa8] sm:$0xff] }
 0x2a9   : > { %v1646_v22 = vadd.f32 %v1640_v44, %v1608_v21  ;;  %v1865_v21 = vld [vmem:[%s8666_s7 + $0xb0] sm:$0xff] }
 0x2aa   : > { %v1653_v24 = vmax.f32 %v1645_v20, 0.0  ;;  %v5570_v20 = vpack.c.bf16 %v1864_v19, %v1863_v18  ;;  %v1977_v19 = vld [vmem:[%s8667_s8 + $0xb0] sm:$0xff] }
 0x2ab   : > { %v1654_v26 = vmax.f32 %v1646_v22, 0.0  ;;  %v1612_v27 = vpop.f32.mrb[4].mxu1  ;;  %v1866_v22 = vld [vmem:[%s8666_s7 + $0xb8] sm:$0xff] }
 0x2ac   : > { %v5521_v39 = vpack.c.bf16 %v1653_v24, %v1651_v23  ;;  %v1614_v42 = vpop.f32.mrb[5].mxu1  ;;  %v1647_v29 = vadd.f32 %v1636_v2, %v1612_v27  ;;  %v5573_v23 = vpack.c.bf16 %v1866_v22, %v1865_v21  ;;  %v1867_v24 = vld [vmem:[%s8666_s7 + $0xc0] sm:$0xff]  ;;  %v1869_v27 = vld [vmem:[%s8666_s7 + $0xd0] sm:$0xff] }
 0x2ad   : > { %v5519_v28 = vpack.c.bf16 %v1654_v26, %v1652_v25  ;;  %v1648_v30 = vadd.f32 %v1640_v44, %v1614_v42  ;;  %v1868_v25 = vld [vmem:[%s8666_s7 + $0xc8] sm:$0xff]  ;;  %v1979_v22 = vld [vmem:[%s8667_s8 + $0xc0] sm:$0xff] }
 0x2ae   : > { %v1655_v38 = vmax.f32 %v1647_v29, 0.0  ;;  %v5576_v26 = vpack.c.bf16 %v1868_v25, %v1867_v24  ;;  %v1872_v29 = vld [vmem:[%s8666_s7 + $0xe8] sm:$0xff]  ;;  %v1981_v25 = vld [vmem:[%s8667_s8 + $0xd0] sm:$0xff] }
 0x2af   : > { %v1618_v31 = vpop.f32.mrb[6].mxu1  ;;  %5520 = vmatprep.subr.bf16.mxu0 %v5519_v28  ;;  %v1656_v45 = vmax.f32 %v1648_v30, 0.0 }
 0x2b0   : > { %v1649_v34 = vadd.f32 %v1636_v2, %v1618_v31  ;;  %v1620_v36 = vpop.f32.mrb[7].mxu1  ;;  %5522 = vmatpush1.bf16.msra.mxu0 %v5521_v39  ;;  %v1860_v2 = vld [vmem:[%s8666_s7 + $0x88] sm:$0xff] }
 0x2b1   : > { %v1650_v37 = vadd.f32 %v1640_v44, %v1620_v36  ;;  %v5564_v10 = vpack.c.bf16 %v1860_v2, %v1859_v49  ;;  %v1861_v44 = vld [vmem:[%s8666_s7 + $0x90] sm:$0xff] }
 0x2b2   : > { %v1657_v40 = vmax.f32 %v1649_v34, 0.0  ;;  %v5567_v6 = vpack.c.bf16 %v1862_v60, %v1861_v44  ;;  %v1973_v2 = vld [vmem:[%s8667_s8 + $0x90] sm:$0xff]  ;;  %v1975_v60 = vld [vmem:[%s8667_s8 + $0xa0] sm:$0xff] }
 0x2b3   : > { %v1658_v46 = vmax.f32 %v1650_v37, 0.0 }
 0x2b4   : > { %v5526_v47 = vpack.c.bf16 %v1657_v40, %v1655_v38  ;;  %v1955_v38 = vld [vmem:[%s8667_s8] sm:$0xff]  ;;  %v1956_v40 = vld [vmem:[%s8667_s8 + $0x8] sm:$0xff] }
 0x2b5   : > { %v5523_v50 = vpack.c.bf16 %v1658_v46, %v1656_v45 }
 0x2b7   : > { %5525 = vmatprep.subr.msk.bf16.mxu0 %vm5524_vm4, %v5523_v50 }
 0x2b8   : > { %5528 = vmatpush1.bf16.msk.msra.mxu0 %vm5524_vm4, %v5526_v47 }
 0x2b9   : > { %5530 = vmatprep.subr.bf16.mxu0 %v5519_v28  ;;  %v1871_v28 = vld [vmem:[%s8666_s7 + $0xe0] sm:$0xff] }
 0x2ba   : > { %v5582_v30 = vpack.c.bf16 %v1872_v29, %v1871_v28  ;;  %v2068_v29 = vld [vmem:[%s8668_s9] sm:$0xff] }
 0x2bb   : > { %4554 = vmatmul.mubr.msk.f32.vlgmr.msra.gmra.mrb[8].mxu0 %vm1664_vm5, %v1662_v51  ;;  %v5585_v51 = vpack.c.bf16 %v1956_v40, %v1955_v38  ;;  %v2071_v38 = vld [vmem:[%s8668_s9 + $0x18] sm:$0xff] }
 0x2bc   : > { %5532 = vmatpush1.bf16.msra.mxu0 %v5521_v39  ;;  %1747 = vmatprep.mubr.f32.mxu0 %v6217_v7  ;;  %v1870_v39 = vld [vmem:[%s8666_s7 + $0xd8] sm:$0xff] }
 0x2bd   : > { %5535 = vmatprep.subr.msk.bf16.mxu0 %vm5524_vm4, %v5523_v50  ;;  %v5579_v42 = vpack.c.bf16 %v1870_v39, %v1869_v27  ;;  %v1983_v39 = vld [vmem:[%s8667_s8 + $0xe0] sm:$0xff] }
 0x2bf   : > { %4555 = vmatmul.mubr.msk.f32.gmra.mrb[10].mxu0 %vm1664_vm5, %v1663_v52  ;;  %v1957_v52 = vld [vmem:[%s8667_s8 + $0x10] sm:$0xff] }
 0x2c0   : > { %5538 = vmatpush1.bf16.msk.msra.mxu0 %vm5524_vm4, %v5526_v47  ;;  %1826 = vmatprep.mubr.f32.mxu0 %v6217_v7  ;;  %v5588_v62 = vpack.c.bf16 %v1958_v53, %v1957_v52  ;;  %v2073_v52 = vld [vmem:[%s8668_s9 + $0x28] sm:$0xff]  ;;  %v4568_v53 = vld [vmem:[%s8668_s9 + $0x98] sm:$0xff] }
 0x2c1   : > { %5539 = vmatprep.subr.bf16.mxu0 %v6219_v59 }
 0x2c3   : > { %4558 = vmatmul.mubr.msk.f32.vlgmr.msra.gmra.mrb[12].mxu0 %vm1664_vm5, %v1754_v57 }
 0x2c4   : > { %1832 = vmatprep.mubr.f32.mxu0 %v6217_v7  ;;  %5541 = vmatpush1.bf16.msra.mxu0 %v5540_v58 }
 0x2c5   : > { %5542 = vmatprep.subr.bf16.mxu0 %v6219_v59 }
 0x2c7   : > { %4559 = vmatmul.mubr.msk.f32.gmra.mrb[14].mxu0 %vm1664_vm5, %v1755_v63  ;;  %v1959_v63 = vld [vmem:[%s8667_s8 + $0x20] sm:$0xff] }
 0x2c8   : > { %5544 = vmatpush1.bf16.msra.mxu0 %v5543_v0  ;;  %v1960_v0 = vld [vmem:[%s8667_s8 + $0x28] sm:$0xff] }
 0x2c9   : > { %5545 = vmatprep.subr.bf16.mxu0 %v6219_v59  ;;  %v5591_v1 = vpack.c.bf16 %v1960_v0, %v1959_v63  ;;  %v4570_v63 = vld [vmem:[%s8668_s9 + $0xa8] sm:$0xff]  ;;  %v4571_v0 = vld [vmem:[%s8668_s9 + $0xb0] sm:$0xff] }
 0x2cc   : > { %5547 = vmatpush1.bf16.msra.mxu0 %v5546_v4  ;;  %v1962_v4 = vld [vmem:[%s8667_s8 + $0x38] sm:$0xff] }
 0x2cd   : > { %5548 = vmatprep.subr.bf16.mxu0 %v6219_v59  ;;  %v5594_v41 = vpack.c.bf16 %v1962_v4, %v1961_v3  ;;  %v5641_v3 = vpack.c.bf16 %v4571_v0, %v4570_v63  ;;  %v2076_v4 = vld [vmem:[%s8668_s9 + $0x40] sm:$0xff] }
 0x2ce   : > { %v4597_v0 = vld [vmem:[%s8668_s9 + $0x160] sm:$0xff] }
 0x2d0   : > { %5550 = vmatpush1.bf16.msra.mxu0 %v5549_v5  ;;  %v1964_v5 = vld [vmem:[%s8667_s8 + $0x48] sm:$0xff] }
 0x2d1   : > { %5551 = vmatprep.subr.bf16.mxu0 %v6219_v59  ;;  %v5597_v8 = vpack.c.bf16 %v1964_v5, %v1963_v43  ;;  %v4572_v5 = vld [vmem:[%s8668_s9 + $0xb8] sm:$0xff] }
 0x2d4   : > { %5553 = vmatpush1.bf16.msra.mxu0 %v5552_v11  ;;  %v1966_v11 = vld [vmem:[%s8667_s8 + $0x58] sm:$0xff] }
 0x2d5   : > { %5554 = vmatprep.subr.bf16.mxu0 %v6219_v59  ;;  %v5600_v12 = vpack.c.bf16 %v1966_v11, %v1965_v9  ;;  %v2078_v11 = vld [vmem:[%s8668_s9 + $0x50] sm:$0xff] }
 0x2d8   : > { %5556 = vmatpush1.bf16.msra.mxu0 %v5555_v14  ;;  %v1968_v14 = vld [vmem:[%s8667_s8 + $0x68] sm:$0xff] }
 0x2d9   : > { %5557 = vmatprep.subr.bf16.mxu0 %v6219_v59  ;;  %v5603_v15 = vpack.c.bf16 %v1968_v14, %v1967_v13  ;;  %v4574_v14 = vld [vmem:[%s8668_s9 + $0xc8] sm:$0xff] }
 0x2dc   : > { %5559 = vmatpush1.bf16.msra.mxu0 %v5558_v17  ;;  %v1970_v17 = vld [vmem:[%s8667_s8 + $0x78] sm:$0xff] }
 0x2dd   : > { %5560 = vmatprep.subr.bf16.mxu0 %v6219_v59  ;;  %v5606_v55 = vpack.c.bf16 %v1970_v17, %v1969_v16  ;;  %v2080_v17 = vld [vmem:[%s8668_s9 + $0x60] sm:$0xff] }
 0x2e0   : > { %5562 = vmatpush1.bf16.msra.mxu0 %v5561_v54  ;;  %v1972_v54 = vld [vmem:[%s8667_s8 + $0x88] sm:$0xff] }
 0x2e1   : > { %5563 = vmatprep.subr.bf16.mxu0 %v6219_v59  ;;  %v5609_v49 = vpack.c.bf16 %v1972_v54, %v1971_v48  ;;  %v4576_v48 = vld [vmem:[%s8668_s9 + $0xd8] sm:$0xff] }
 0x2e4   : > { %5565 = vmatpush1.bf16.msra.mxu0 %v5564_v10  ;;  %v1974_v10 = vld [vmem:[%s8667_s8 + $0x98] sm:$0xff] }
 0x2e5   : > { %5566 = vmatprep.subr.bf16.mxu0 %v6219_v59  ;;  %v5612_v44 = vpack.c.bf16 %v1974_v10, %v1973_v2  ;;  %v2082_v10 = vld [vmem:[%s8668_s9 + $0x70] sm:$0xff] }
 0x2e8   : > { %5568 = vmatpush1.bf16.msra.mxu0 %v5567_v6  ;;  %v1976_v6 = vld [vmem:[%s8667_s8 + $0xa8] sm:$0xff] }
 0x2e9   : > { %5569 = vmatprep.subr.bf16.mxu0 %v6219_v59  ;;  %v5615_v18 = vpack.c.bf16 %v1976_v6, %v1975_v60  ;;  %v4583_v60 = vld [vmem:[%s8668_s9 + $0xf0] sm:$0xff]  ;;  %v4584_v6 = vld [vmem:[%s8668_s9 + $0xf8] sm:$0xff] }
 0x2ec   : > { %5571 = vmatpush1.bf16.msra.mxu0 %v5570_v20  ;;  %v1978_v20 = vld [vmem:[%s8667_s8 + $0xb8] sm:$0xff] }
 0x2ed   : > { %5572 = vmatprep.subr.bf16.mxu0 %v6219_v59  ;;  %v5618_v21 = vpack.c.bf16 %v1978_v20, %v1977_v19 }
 0x2f0   : > { %5574 = vmatpush1.bf16.msra.mxu0 %v5573_v23  ;;  %v1980_v23 = vld [vmem:[%s8667_s8 + $0xc8] sm:$0xff] }
 0x2f1   : > { %5575 = vmatprep.subr.bf16.mxu0 %v6219_v59  ;;  %v5621_v24 = vpack.c.bf16 %v1980_v23, %v1979_v22 }
 0x2f4   : > { %5577 = vmatpush1.bf16.msra.mxu0 %v5576_v26  ;;  %v1982_v26 = vld [vmem:[%s8667_s8 + $0xd8] sm:$0xff] }
 0x2f5   : > { %5578 = vmatprep.subr.bf16.mxu0 %v6219_v59  ;;  %v5624_v27 = vpack.c.bf16 %v1982_v26, %v1981_v25 }
 0x2f8   : > { %5580 = vmatpush1.bf16.msra.mxu0 %v5579_v42  ;;  %v1984_v42 = vld [vmem:[%s8667_s8 + $0xe8] sm:$0xff] }
 0x2f9   : > { %5581 = vmatprep.subr.bf16.mxu0 %v6219_v59  ;;  %v5627_v28 = vpack.c.bf16 %v1984_v42, %v1983_v39  ;;  %v4585_v42 = vld [vmem:[%s8668_s9 + $0x100] sm:$0xff] }
 0x2fc   : > { %5583 = vmatpush1.bf16.msra.mxu0 %v5582_v30  ;;  %v2069_v30 = vld [vmem:[%s8668_s9 + $0x8] sm:$0xff] }
 0x2fd   : > { %5584 = vmatprep.subr.bf16.mxu0 %v6219_v59 }
 0x38e   : > { %v1743_v31 = vpop.f32.mrb[8].mxu0 }
 0x38f   : > { %v1745_v34 = vpop.f32.mrb[9].mxu0 }
 0x392   : > { %v1749_v36 = vpop.f32.mrb[10].mxu0 }
 0x393   : > { %v1751_v37 = vpop.f32.mrb[11].mxu0 }
 0x396   : > { %v1828_v45 = vpop.f32.mrb[12].mxu0 }
 0x397   : > { %v7431_v46 = vmax.f32 %v1743_v31, %v1828_v45  ;;  %v1830_v47 = vpop.f32.mrb[13].mxu0  ;;  %v4564_v31 = vld [vmem:[%s8668_s9 + $0x78] sm:$0xff] }
 0x398   : > { %v1840_v50 = vmax.f32 %v1745_v34, %v1830_v47  ;;  %v5657_v34 = vpack.c.bf16 %v2069_v30, %v2068_v29  ;;  %v4567_v47 = vld [vmem:[%s8668_s9 + $0x90] sm:$0xff]  ;;  %v4586_v30 = vld [vmem:[%s8668_s9 + $0x108] sm:$0xff] }
 0x39a   : > { %v1834_v56 = vpop.f32.mrb[14].mxu0  ;;  %4560 = vmatprep.mubr.msk.f32.mxu0 %vm1873_vm6, %v1840_v50  ;;  %5658 = vmatprep.subr.bf16.mxu1 %v5657_v34 }
 0x39b   : > { %v7440_v57 = vmax.f32 %v1749_v36, %v1834_v56  ;;  %v1836_v58 = vpop.f32.mrb[15].mxu0  ;;  %1945 = vmatmul.mubr.f32.vlgmr.msra.gmra.mrb[16].mxu0 %v7431_v46  ;;  %v4565_v36 = vld [vmem:[%s8668_s9 + $0x80] sm:$0xff]  ;;  %5660 = vmatpush3.bf16.msra.mxu1 %v5657_v34  ;;  %v4587_v34 = vld [vmem:[%s8668_s9 + $0x110] sm:$0xff] }
 0x39c   : > { %v7443_v61 = vmax.f32 %v1751_v37, %v1836_v58  ;;  %5586 = vmatpush1.bf16.msra.mxu0 %v5585_v51  ;;  %v2070_v37 = vld [vmem:[%s8668_s9 + $0x10] sm:$0xff]  ;;  %v5629_v40 = vpack.c.bf16 %v4565_v36, %v4564_v31  ;;  %v4569_v56 = vld [vmem:[%s8668_s9 + $0xa0] sm:$0xff]  ;;  %v5689_v31 = vpack.c.bf16 %v4586_v30, %v4585_v42  ;;  %v4588_v36 = vld [vmem:[%s8668_s9 + $0x118] sm:$0xff] }
 0x39d   : > { %5587 = vmatprep.subr.bf16.mxu0 %v6219_v59  ;;  %v5661_v45 = vpack.c.bf16 %v2071_v38, %v2070_v37  ;;  %v5637_v58 = vpack.c.bf16 %v4569_v56, %v4568_v53  ;;  %v4593_v56 = vld [vmem:[%s8668_s9 + $0x140] sm:$0xff]  ;;  %v2382_v30 = vld [vmem:[%s8670_s11 + $0x18] sm:$0xff] }
 0x39e   : > { %4561 = vmatprep.mubr.msk.f32.mxu0 %vm1873_vm6, %v7443_v61 }
 0x39f   : > { %1950 = vmatmul.mubr.f32.gmra.mrb[18].mxu0 %v7440_v57  ;;  %5662 = vmatprep.subr.bf16.mxu1 %v5661_v45 }
 0x3a0   : > { %5589 = vmatpush1.bf16.msra.mxu0 %v5588_v62  ;;  %4562 = vmatprep.mubr.msk.f32.mxu0 %vm1873_vm6, %v1840_v50  ;;  %v2072_v50 = vld [vmem:[%s8668_s9 + $0x20] sm:$0xff]  ;;  %v2075_v62 = vld [vmem:[%s8668_s9 + $0x38] sm:$0xff] }
 0x3a1   : > { %5590 = vmatprep.subr.bf16.mxu0 %v6219_v59  ;;  %5664 = vmatpush3.bf16.msra.mxu1 %v5661_v45  ;;  %v5693_v45 = vpack.c.bf16 %v4588_v36, %v4587_v34 }
 0x3a4   : > { %5592 = vmatpush1.bf16.msra.mxu0 %v5591_v1 }
 0x3a5   : > { %5593 = vmatprep.subr.bf16.mxu0 %v6219_v59 }
 0x3a8   : > { %5595 = vmatpush1.bf16.msra.mxu0 %v5594_v41  ;;  %v2077_v41 = vld [vmem:[%s8668_s9 + $0x48] sm:$0xff] }
 0x3a9   : > { %5596 = vmatprep.subr.bf16.mxu0 %v6219_v59  ;;  %v5673_v43 = vpack.c.bf16 %v2077_v41, %v2076_v4  ;;  %v4602_v4 = vld [vmem:[%s8670_s11 + $0x80] sm:$0xff]  ;;  %v4603_v41 = vld [vmem:[%s8670_s11 + $0x88] sm:$0xff] }
 0x3ac   : > { %5598 = vmatpush1.bf16.msra.mxu0 %v5597_v8  ;;  %v4573_v8 = vld [vmem:[%s8668_s9 + $0xc0] sm:$0xff] }
 0x3ad   : > { %5599 = vmatprep.subr.bf16.mxu0 %v6219_v59  ;;  %v5645_v9 = vpack.c.bf16 %v4573_v8, %v4572_v5  ;;  %v4604_v5 = vld [vmem:[%s8670_s11 + $0x90] sm:$0xff] }
 0x3ae   : > { %v5717_v8 = vpack.c.bf16 %v4604_v5, %v4603_v41  ;;  %v4623_v41 = vld [vmem:[%s8670_s11 + $0x108] sm:$0xff] }
 0x3b0   : > { %5601 = vmatpush1.bf16.msra.mxu0 %v5600_v12  ;;  %v2079_v12 = vld [vmem:[%s8668_s9 + $0x58] sm:$0xff] }
 0x3b1   : > { %5602 = vmatprep.subr.bf16.mxu0 %v6219_v59  ;;  %v5677_v13 = vpack.c.bf16 %v2079_v12, %v2078_v11  ;;  %v4606_v11 = vld [vmem:[%s8670_s11 + $0xa0] sm:$0xff] }
 0x3b4   : > { %5604 = vmatpush1.bf16.msra.mxu0 %v5603_v15  ;;  %v4575_v15 = vld [vmem:[%s8668_s9 + $0xd0] sm:$0xff] }
 0x3b5   : > { %5605 = vmatprep.subr.bf16.mxu0 %v6219_v59  ;;  %v5649_v16 = vpack.c.bf16 %v4575_v15, %v4574_v14  ;;  %v4608_v14 = vld [vmem:[%s8670_s11 + $0xb0] sm:$0xff] }
 0x3b8   : > { %5607 = vmatpush1.bf16.msra.mxu0 %v5606_v55  ;;  %v2081_v55 = vld [vmem:[%s8668_s9 + $0x68] sm:$0xff] }
 0x3b9   : > { %5608 = vmatprep.subr.bf16.mxu0 %v6219_v59  ;;  %v5681_v54 = vpack.c.bf16 %v2081_v55, %v2080_v17  ;;  %v4610_v17 = vld [vmem:[%s8670_s11 + $0xc0] sm:$0xff] }
 0x3bc   : > { %5610 = vmatpush1.bf16.msra.mxu0 %v5609_v49  ;;  %v4577_v49 = vld [vmem:[%s8668_s9 + $0xe0] sm:$0xff] }
 0x3bd   : > { %5611 = vmatprep.subr.bf16.mxu0 %v6219_v59  ;;  %v5653_v2 = vpack.c.bf16 %v4577_v49, %v4576_v48  ;;  %v4611_v48 = vld [vmem:[%s8670_s11 + $0xc8] sm:$0xff] }
 0x3c0   : > { %5613 = vmatpush1.bf16.msra.mxu0 %v5612_v44  ;;  %v4578_v44 = vld [vmem:[%s8668_s9 + $0xe8] sm:$0xff] }
 0x3c1   : > { %5614 = vmatprep.subr.bf16.mxu0 %v6219_v59 }
 0x3c4   : > { %5616 = vmatpush1.bf16.msra.mxu0 %v5615_v18  ;;  %v5685_v18 = vpack.c.bf16 %v4584_v6, %v4583_v60  ;;  %v4615_v60 = vld [vmem:[%s8670_s11 + $0xe8] sm:$0xff]  ;;  %v2379_v6 = vld [vmem:[%s8670_s11] sm:$0xff] }
 0x3c5   : > { %5617 = vmatprep.subr.bf16.mxu0 %v6219_v59 }
 0x3c8   : > { %5619 = vmatpush1.bf16.msra.mxu0 %v5618_v21 }
 0x3c9   : > { %5620 = vmatprep.subr.bf16.mxu0 %v6219_v59 }
 0x3cc   : > { %5622 = vmatpush1.bf16.msra.mxu0 %v5621_v24 }
 0x3cd   : > { %5623 = vmatprep.subr.bf16.mxu0 %v6219_v59 }
 0x3d0   : > { %5625 = vmatpush1.bf16.msra.mxu0 %v5624_v27 }
 0x3d1   : > { %5626 = vmatprep.subr.bf16.mxu0 %v6219_v59 }
 0x3d4   : > { %5628 = vmatpush1.bf16.msra.mxu0 %v5627_v28 }
 0x3d5   : > { %5630 = vmatprep.subr.bf16.mxu0 %v5629_v40 }
 0x3d7   : > { %2050 = vmatmul.mubr.f32.vlgmr.msra.gmra.mrb[20].mxu0 %v7431_v46  ;;  %v4566_v46 = vld [vmem:[%s8668_s9 + $0x88] sm:$0xff] }
 0x3d8   : > { %4563 = vmatprep.mubr.msk.f32.mxu0 %vm1873_vm6, %v7443_v61  ;;  %v5633_v51 = vpack.c.bf16 %v4567_v47, %v4566_v46  ;;  %5632 = vmatpush3.bf16.msra.mxu0 %v5629_v40  ;;  %v2074_v61 = vld [vmem:[%s8668_s9 + $0x30] sm:$0xff]  ;;  %v4589_v46 = vld [vmem:[%s8668_s9 + $0x120] sm:$0xff]  ;;  %v4590_v47 = vld [vmem:[%s8668_s9 + $0x128] sm:$0xff] }
 0x3d9   : > { %v5669_v1 = vpack.c.bf16 %v2075_v62, %v2074_v61  ;;  %v4595_v61 = vld [vmem:[%s8668_s9 + $0x150] sm:$0xff]  ;;  %v4596_v62 = vld [vmem:[%s8668_s9 + $0x158] sm:$0xff] }
 0x3da   : > { %5634 = vmatprep.subr.bf16.mxu0 %v5633_v51  ;;  %v5709_v63 = vpack.c.bf16 %v4596_v62, %v4595_v61  ;;  %v2391_v61 = vld [vmem:[%s8670_s11 + $0x60] sm:$0xff]  ;;  %v2392_v62 = vld [vmem:[%s8670_s11 + $0x68] sm:$0xff] }
 0x3db   : > { %2055 = vmatmul.mubr.f32.gmra.mrb[22].mxu0 %v7440_v57  ;;  %v5665_v57 = vpack.c.bf16 %v2073_v52, %v2072_v50  ;;  %v5697_v50 = vpack.c.bf16 %v4590_v47, %v4589_v46  ;;  %v4592_v52 = vld [vmem:[%s8668_s9 + $0x138] sm:$0xff]  ;;  %v2385_v46 = vld [vmem:[%s8670_s11 + $0x30] sm:$0xff] }
 0x3dc   : > { %5636 = vmatpush3.bf16.msra.mxu0 %v5633_v51  ;;  %v4591_v51 = vld [vmem:[%s8668_s9 + $0x130] sm:$0xff]  ;;  %v2386_v47 = vld [vmem:[%s8670_s11 + $0x38] sm:$0xff] }
 0x3dd   : > { %5666 = vmatprep.subr.bf16.mxu1 %v5665_v57  ;;  %5638 = vmatprep.subr.bf16.mxu0 %v5637_v58  ;;  %v5701_v53 = vpack.c.bf16 %v4592_v52, %v4591_v51  ;;  %v2387_v51 = vld [vmem:[%s8670_s11 + $0x40] sm:$0xff]  ;;  %v2388_v52 = vld [vmem:[%s8670_s11 + $0x48] sm:$0xff] }
 0x3de   : > { %5668 = vmatpush3.bf16.msra.mxu1 %v5665_v57  ;;  %v4594_v57 = vld [vmem:[%s8668_s9 + $0x148] sm:$0xff] }
 0x3df   : > { %5670 = vmatprep.subr.bf16.mxu1 %v5669_v1 }
 0x3e0   : > { %5640 = vmatpush3.bf16.msra.mxu0 %v5637_v58  ;;  %v5705_v58 = vpack.c.bf16 %v4594_v57, %v4593_v56  ;;  %v2389_v56 = vld [vmem:[%s8670_s11 + $0x50] sm:$0xff]  ;;  %v2390_v57 = vld [vmem:[%s8670_s11 + $0x58] sm:$0xff] }
 0x3e1   : > { %5642 = vmatprep.subr.bf16.mxu0 %v5641_v3 }
 0x3e2   : > { %5672 = vmatpush3.bf16.msra.mxu1 %v5669_v1 }
 0x3e3   : > { %5674 = vmatprep.subr.bf16.mxu1 %v5673_v43 }
 0x3e4   : > { %5644 = vmatpush3.bf16.msra.mxu0 %v5641_v3  ;;  %v4601_v3 = vld [vmem:[%s8670_s11 + $0x78] sm:$0xff] }
 0x3e5   : > { %5646 = vmatprep.subr.bf16.mxu0 %v5645_v9 }
 0x3e6   : > { %5676 = vmatpush3.bf16.msra.mxu1 %v5673_v43  ;;  %v5713_v43 = vpack.c.bf16 %v4602_v4, %v4601_v3  ;;  %v4621_v3 = vld [vmem:[%s8670_s11 + $0xf8] sm:$0xff]  ;;  %v4622_v4 = vld [vmem:[%s8670_s11 + $0x100] sm:$0xff] }
 0x3e7   : > { %5678 = vmatprep.subr.bf16.mxu1 %v5677_v13  ;;  %v5773_v5 = vpack.c.bf16 %v4623_v41, %v4622_v4  ;;  %v2848_v41 = vld [vmem:[%s8674_s15 + $0x40] sm:$0xff] }
 0x3e8   : > { %5648 = vmatpush3.bf16.msra.mxu0 %v5645_v9  ;;  %v4605_v9 = vld [vmem:[%s8670_s11 + $0x98] sm:$0xff] }
 0x3e9   : > { %5650 = vmatprep.subr.bf16.mxu0 %v5649_v16  ;;  %v5721_v12 = vpack.c.bf16 %v4606_v11, %v4605_v9  ;;  %v4624_v9 = vld [vmem:[%s8670_s11 + $0x110] sm:$0xff]  ;;  %v4625_v11 = vld [vmem:[%s8670_s11 + $0x118] sm:$0xff] }
 0x3ea   : > { %5680 = vmatpush3.bf16.msra.mxu1 %v5677_v13  ;;  %v4607_v13 = vld [vmem:[%s8670_s11 + $0xa8] sm:$0xff] }
 0x3eb   : > { %5682 = vmatprep.subr.bf16.mxu1 %v5681_v54  ;;  %v5725_v15 = vpack.c.bf16 %v4608_v14, %v4607_v13  ;;  %v5777_v13 = vpack.c.bf16 %v4625_v11, %v4624_v9  ;;  %v4626_v14 = vld [vmem:[%s8670_s11 + $0x120] sm:$0xff]  ;;  %v2851_v9 = vld [vmem:[%s8674_s15 + $0x58] sm:$0xff]  ;;  %v2937_v11 = vld [vmem:[%s8675_s16 + $0x50] sm:$0xff] }
 0x3ec   : > { %5652 = vmatpush3.bf16.msra.mxu0 %v5649_v16  ;;  %v4609_v16 = vld [vmem:[%s8670_s11 + $0xb8] sm:$0xff] }
 0x3ed   : > { %5654 = vmatprep.subr.bf16.mxu0 %v5653_v2  ;;  %v5729_v55 = vpack.c.bf16 %v4610_v17, %v4609_v16  ;;  %v4628_v17 = vld [vmem:[%s8670_s11 + $0x130] sm:$0xff] }
 0x3ee   : > { %5684 = vmatpush3.bf16.msra.mxu1 %v5681_v54  ;;  %v4612_v54 = vld [vmem:[%s8670_s11 + $0xd0] sm:$0xff] }
 0x3ef   : > { %5046 = vmatprep.subr.mxu1 %v2082_v10  ;;  %v5733_v49 = vpack.c.bf16 %v4612_v54, %v4611_v48  ;;  %v4630_v54 = vld [vmem:[%s8670_s11 + $0x140] sm:$0xff] }
 0x3f0   : > { %5656 = vmatpush3.bf16.msra.mxu0 %v5653_v2  ;;  %v4613_v2 = vld [vmem:[%s8670_s11 + $0xd8] sm:$0xff] }
 0x3f1   : > { %5013 = vmatprep.subr.mxu0 %v4578_v44 }
 0x3f2   : > { %5047 = vmatpush3.msra.mxu1 %v2082_v10  ;;  %v4614_v10 = vld [vmem:[%s8670_s11 + $0xe0] sm:$0xff] }
 0x3f3   : > { %5686 = vmatprep.subr.bf16.mxu1 %v5685_v18 }
 0x3f4   : > { %5014 = vmatpush3.msra.mxu0 %v4578_v44  ;;  %v5737_v44 = vpack.c.bf16 %v4614_v10, %v4613_v2  ;;  %v4632_v10 = vld [vmem:[%s8670_s11 + $0x150] sm:$0xff] }
 0x3f5   : > { %5714 = vmatprep.subr.bf16.mxu0 %v5713_v43 }
 0x46e   : > { %v1946_v19 = vpop.f32.mrb[16].mxu0 }
 0x46f   : > { %v1948_v20 = vpop.f32.mrb[17].mxu0 }
 0x472   : > { %v1951_v21 = vpop.f32.mrb[18].mxu0 }
 0x473   : > { %v1953_v22 = vpop.f32.mrb[19].mxu0 }
 0x4aa   : > { %v2051_v23 = vpop.f32.mrb[20].mxu0 }
 0x4ab   : > { %v2060_v24 = vmax.f32 %v1946_v19, %v2051_v23  ;;  %v2053_v25 = vpop.f32.mrb[21].mxu0  ;;  %v4600_v23 = vld [vmem:[%s8669_s10] ss:$0 sm:$0xff] }
 0x4ad   : > { %2063 = vst.msk [vmem:[#allocation3 + $0x1] sm:$0xff] %vm2062_vm8, %v2060_v24 }
 0x4ae   : > { %v2056_v26 = vpop.f32.mrb[22].mxu0 }
 0x4af   : > { %v2061_v27 = vmax.f32 %v1951_v21, %v2056_v26  ;;  %v2058_v39 = vpop.f32.mrb[23].mxu0 }
 0x4b1   : > { %2065 = vst.msk [vmem:[#allocation3 + $0x9] sm:$0x7f] %vm2064_vm9, %v2061_v27 }
 0x4b4   : > { %v2083_v28 = vld [vmem:[#allocation3 + $0x1] sm:$0xff] }
 0x4b5   : > { %v2066_v29 = vld [vmem:[#allocation3] sm:$0xff]  ;;  %5015 = vmatprep.mubr.msk.f32.mxu0 %vm2062_vm8, %v2083_v28 }
 0x4b6   : > { %5048 = vmatprep.mubr.msk.f32.mxu1 %vm2062_vm8, %v2066_v29  ;;  %v2381_v29 = vld [vmem:[%s8670_s11 + $0x10] sm:$0xff] }
 0x4b7   : > { %v5745_v34 = vpack.c.bf16 %v2382_v30, %v2381_v29  ;;  %v2935_v29 = vld [vmem:[%s8675_s16 + $0x40] sm:$0xff]  ;;  %v2936_v30 = vld [vmem:[%s8675_s16 + $0x48] sm:$0xff] }
 0x4b8   : > { %v2084_v37 = vld [vmem:[#allocation3 + $0x9] sm:$0x7f] }
 0x4b9   : > { %v2067_v38 = vld [vmem:[#allocation3 + $0x8] sm:$0x7f]  ;;  %5016 = vmatmul.mubr.msk.f32.vlgmr.msra.gmra.mrb[24].mxu0 %vm2062_vm8, %v2084_v37  ;;  %v2383_v37 = vld [vmem:[%s8670_s11 + $0x20] sm:$0xff] }
 0x4ba   : > { %v2263_v40 = vld [vmem:[#allocation3 + $0x2] sm:$0xff]  ;;  %5049 = vmatmul.mubr.msk.f32.vlgmr.msra.gmra.mrb[8].mxu1 %vm2062_vm8, %v2067_v38  ;;  %v2264_v1 = vld [vmem:[#allocation3 + $0xa] sm:$0x7f]  ;;  %5716 = vmatpush3.bf16.msra.mxu0 %v5713_v43 }
 0x4bb   : > { %5688 = vmatpush3.bf16.msra.mxu1 %v5685_v18  ;;  %5081 = vmatprep.mubr.msk.f32.mxu1 %vm2062_vm8, %v2263_v40  ;;  %v2380_v18 = vld [vmem:[%s8670_s11 + $0x8] sm:$0xff] }
 0x4bc   : > { %5690 = vmatprep.subr.bf16.mxu1 %v5689_v31  ;;  %5718 = vmatprep.subr.bf16.mxu0 %v5717_v8  ;;  %v5741_v19 = vpack.c.bf16 %v2380_v18, %v2379_v6  ;;  %v2384_v38 = vld [vmem:[%s8670_s11 + $0x28] sm:$0xff]  ;;  %v4634_v6 = vld [vmem:[%s8670_s11 + $0x160] sm:$0xff] }
 0x4be   : > { %5720 = vmatpush3.bf16.msra.mxu0 %v5717_v8 }
 0x4bf   : > { %5692 = vmatpush3.bf16.msra.mxu1 %v5689_v31  ;;  %5722 = vmatprep.subr.bf16.mxu0 %v5721_v12 }
 0x4c0   : > { %5694 = vmatprep.subr.bf16.mxu1 %v5693_v45 }
 0x4c2   : > { %5724 = vmatpush3.bf16.msra.mxu0 %v5721_v12 }
 0x4c3   : > { %5696 = vmatpush3.bf16.msra.mxu1 %v5693_v45  ;;  %5726 = vmatprep.subr.bf16.mxu0 %v5725_v15  ;;  %v5749_v45 = vpack.c.bf16 %v2384_v38, %v2383_v37 }
 0x4c4   : > { %5698 = vmatprep.subr.bf16.mxu1 %v5697_v50 }
 0x4c6   : > { %5728 = vmatpush3.bf16.msra.mxu0 %v5725_v15  ;;  %v4627_v15 = vld [vmem:[%s8670_s11 + $0x128] sm:$0xff] }
 0x4c7   : > { %5700 = vmatpush3.bf16.msra.mxu1 %v5697_v50  ;;  %5730 = vmatprep.subr.bf16.mxu0 %v5729_v55  ;;  %v5753_v50 = vpack.c.bf16 %v2386_v47, %v2385_v46  ;;  %v5781_v16 = vpack.c.bf16 %v4627_v15, %v4626_v14  ;;  %v2939_v15 = vld [vmem:[%s8675_s16 + $0x60] sm:$0xff] }
 0x4c8   : > { %5702 = vmatprep.subr.bf16.mxu1 %v5701_v53 }
 0x4ca   : > { %5732 = vmatpush3.bf16.msra.mxu0 %v5729_v55  ;;  %v4629_v55 = vld [vmem:[%s8670_s11 + $0x138] sm:$0xff] }
 0x4cb   : > { %5704 = vmatpush3.bf16.msra.mxu1 %v5701_v53  ;;  %5734 = vmatprep.subr.bf16.mxu0 %v5733_v49  ;;  %v5757_v53 = vpack.c.bf16 %v2388_v52, %v2387_v51  ;;  %v5785_v48 = vpack.c.bf16 %v4629_v55, %v4628_v17  ;;  %v2840_v51 = vld [vmem:[%s8674_s15] sm:$0xff]  ;;  %v2841_v52 = vld [vmem:[%s8674_s15 + $0x8] sm:$0xff] }
 0x4cc   : > { %5706 = vmatprep.subr.bf16.mxu1 %v5705_v58  ;;  %v4649_v17 = vld [vmem:[%s8676_s17 + $0xe8] sm:$0xff] }
 0x4ce   : > { %5736 = vmatpush3.bf16.msra.mxu0 %v5733_v49  ;;  %v4631_v49 = vld [vmem:[%s8670_s11 + $0x148] sm:$0xff] }
 0x4cf   : > { %5708 = vmatpush3.bf16.msra.mxu1 %v5705_v58  ;;  %5738 = vmatprep.subr.bf16.mxu0 %v5737_v44  ;;  %v5761_v58 = vpack.c.bf16 %v2390_v57, %v2389_v56  ;;  %v5789_v2 = vpack.c.bf16 %v4631_v49, %v4630_v54  ;;  %v5806_v56 = vpack.c.bf16 %v2841_v52, %v2840_v51  ;;  %v2842_v57 = vld [vmem:[%s8674_s15 + $0x10] sm:$0xff]  ;;  %v4644_v49 = vld [vmem:[%s8676_s17 + $0xc0] sm:$0xff] }
 0x4d0   : > { %5710 = vmatprep.subr.bf16.mxu1 %v5709_v63  ;;  %v4654_v52 = vld [vmem:[%s8676_s17 + $0x110] sm:$0xff] }
 0x4d2   : > { %5740 = vmatpush3.bf16.msra.mxu0 %v5737_v44  ;;  %v4633_v44 = vld [vmem:[%s8670_s11 + $0x158] sm:$0xff] }
 0x4d3   : > { %5712 = vmatpush3.bf16.msra.mxu1 %v5709_v63  ;;  %5112 = vmatprep.subr.mxu0 %v4615_v60  ;;  %v5765_v63 = vpack.c.bf16 %v2392_v62, %v2391_v61  ;;  %v2844_v62 = vld [vmem:[%s8674_s15 + $0x20] sm:$0xff] }
 0x4d4   : > { %5079 = vmatprep.subr.mxu1 %v4597_v0 }
 0x4d6   : > { %5113 = vmatpush3.msra.mxu0 %v4615_v60  ;;  %v5793_v60 = vpack.c.bf16 %v4633_v44, %v4632_v10 }
 0x4d7   : > { %5080 = vmatpush3.msra.mxu1 %v4597_v0  ;;  %5742 = vmatprep.subr.bf16.mxu0 %v5741_v19  ;;  %v2393_v0 = vld [vmem:[%s8670_s11 + $0x70] sm:$0xff] }
 0x4d8   : > { %5082 = vmatmul.mubr.msk.f32.vlgmr.msra.gmra.mrb[8].mxu1 %vm2062_vm8, %v2264_v1  ;;  %5797 = vmatprep.subr.bf16.mxu1 %v6219_v59  ;;  %v4620_v1 = vld [vmem:[%s8670_s11 + $0xf0] sm:$0xff] }
 0x4d9   : > { %v5769_v43 = vpack.c.bf16 %v4621_v3, %v4620_v1  ;;  %5187 = vmatprep.mubr.msk.f32.mxu1 %vm6220_vm10, %v6217_v7  ;;  %v2846_v1 = vld [vmem:[%s8674_s15 + $0x30] sm:$0xff]  ;;  %v2847_v3 = vld [vmem:[%s8674_s15 + $0x38] sm:$0xff] }
 0x4da   : > { %v5815_v4 = vpack.c.bf16 %v2847_v3, %v2846_v1  ;;  %v3015_v1 = vld [vmem:[%s8676_s17 + $0x8] sm:$0xff] }
 0x4db   : > { %v3019_v3 = vld [vmem:[%s8676_s17 + $0x28] sm:$0xff] }
 0x58c   : > { %v5017_v20 = vpop.f32.mrb[24].mxu0 }
 0x58d   : > { %v2173_v21 = vpop.f32.mrb[25].mxu0 }
 0x5ab   : > { %v5083_v22 = vpop.f32.mrb[8].mxu1 }
 0x5ac   : > { %v6049_v24 = vadd.f32 %v5083_v22, %v5017_v20  ;;  %v2353_v25 = vpop.f32.mrb[9].mxu1  ;;  %v2928_v20 = vld [vmem:[%s8675_s16 + $0x8] sm:$0xff]  ;;  %v2929_v22 = vld [vmem:[%s8675_s16 + $0x10] sm:$0xff] }
 0x5ad   : > { %v6050_v26 = vadd.f32 %v2353_v25, %v2173_v21  ;;  %v2931_v25 = vld [vmem:[%s8675_s16 + $0x20] sm:$0xff] }
 0x5ae   : > { %v2372_v27 = vadd.f32 %v6049_v24, %v4600_v23 }
 0x5af   : > { %v2371_v39 = vadd.f32 %v6050_v26, %v4600_v23  ;;  %v2930_v23 = vld [vmem:[%s8675_s16 + $0x18] sm:$0xff]  ;;  %v2932_v26 = vld [vmem:[%s8675_s16 + $0x28] sm:$0xff] }
 0x5b0   : > { %v2374_v42 = vmax.f32 %v2372_v27, 0.0  ;;  %v5827_v24 = vpack.c.bf16 %v2930_v23, %v2929_v22  ;;  %v5830_v27 = vpack.c.bf16 %v2932_v26, %v2931_v25  ;;  %v4656_v22 = vld [vmem:[%s8676_s17 + $0x120] sm:$0xff]  ;;  %v4665_v25 = vld [vmem:[%s8676_s17 + $0x168] sm:$0xff] }
 0x5b1   : > { %v2373_v28 = vmax.f32 %v2371_v39, 0.0  ;;  %v2933_v39 = vld [vmem:[%s8675_s16 + $0x30] sm:$0xff]  ;;  %v4660_v26 = vld [vmem:[%s8676_s17 + $0x140] sm:$0xff] }
 0x5b2   : > { %2376 = vst.msk [vmem:[#allocation4 + $0x8] sm:$0x7f] %vm2064_vm9, %v2374_v42  ;;  %v2934_v42 = vld [vmem:[%s8675_s16 + $0x38] sm:$0xff] }
 0x5b3   : > { %2375 = vst.msk [vmem:[#allocation4] sm:$0xff] %vm2062_vm8, %v2373_v28  ;;  %v5833_v28 = vpack.c.bf16 %v2934_v42, %v2933_v39  ;;  %v4664_v39 = vld [vmem:[%s8676_s17 + $0x160] sm:$0xff]  ;;  %v4647_v42 = vld [vmem:[%s8676_s17 + $0xd8] sm:$0xff] }
 0x5b9   : > { %v2395_v36 = vld [vmem:[#allocation4 + $0x9] sm:$0x1f] }
 0x5ba   : > { %v2394_v31 = vld [vmem:[#allocation4 + $0x1] sm:$0xff]  ;;  %v2575_v18 = vld [vmem:[#allocation4 + $0xa] sm:$0x1f] }
 0x5bb   : > { %5114 = vmatprep.mubr.msk.f32.mxu0 %vm2062_vm8, %v2394_v31  ;;  %v2377_v40 = vld [vmem:[#allocation4] sm:$0xff]  ;;  %v2378_v8 = vld [vmem:[#allocation4 + $0x8] sm:$0x1f]  ;;  %v5836_v31 = vpack.c.bf16 %v2936_v30, %v2935_v29  ;;  %v5851_v29 = vpack.c.bf16 %v4664_v39, %v4660_v26 }
 0x5bc   : > { %5115 = vmatmul.mubr.msk.f32.vlgmr.msra.gmra.mrb[26].mxu0 %vm2062_vm8, %v2395_v36  ;;  %v2574_v12 = vld [vmem:[#allocation4 + $0x2] sm:$0xff] }
 0x5bd   : > { %5744 = vmatpush3.bf16.msra.mxu0 %v5741_v19  ;;  %5147 = vmatprep.mubr.msk.f32.mxu0 %vm2062_vm8, %v2377_v40  ;;  %v2927_v19 = vld [vmem:[%s8675_s16] sm:$0xff] }
 0x5be   : > { %5746 = vmatprep.subr.bf16.mxu0 %v5745_v34  ;;  %v5824_v21 = vpack.c.bf16 %v2928_v20, %v2927_v19  ;;  %v4657_v19 = vld [vmem:[%s8676_s17 + $0x128] sm:$0xff]  ;;  %v3030_v39 = vld [vmem:[%s8676_s17 + $0x80] sm:$0xff] }
 0x5c1   : > { %5748 = vmatpush3.bf16.msra.mxu0 %v5745_v34  ;;  %v4637_v34 = vld [vmem:[%s8671_s12] ss:$0 sm:$0xff] }
 0x5c2   : > { %5750 = vmatprep.subr.bf16.mxu0 %v5749_v45 }
 0x5c5   : > { %5752 = vmatpush3.bf16.msra.mxu0 %v5749_v45 }
 0x5c6   : > { %5754 = vmatprep.subr.bf16.mxu0 %v5753_v50 }
 0x5c9   : > { %5756 = vmatpush3.bf16.msra.mxu0 %v5753_v50  ;;  %v2686_v50 = vld [vmem:[%s8672_s13] sm:$0x3f] }
 0x5ca   : > { %5758 = vmatprep.subr.bf16.mxu0 %v5757_v53 }
 0x5cd   : > { %5760 = vmatpush3.bf16.msra.mxu0 %v5757_v53  ;;  %v2765_v53 = vld [vmem:[%s8673_s14] sm:$0x3f] }
 0x5ce   : > { %5762 = vmatprep.subr.bf16.mxu0 %v5761_v58 }
 0x5d1   : > { %5764 = vmatpush3.bf16.msra.mxu0 %v5761_v58  ;;  %v2843_v58 = vld [vmem:[%s8674_s15 + $0x18] sm:$0xff] }
 0x5d2   : > { %5766 = vmatprep.subr.bf16.mxu0 %v5765_v63  ;;  %v5809_v61 = vpack.c.bf16 %v2843_v58, %v2842_v57  ;;  %v4663_v57 = vld [vmem:[%s8676_s17 + $0x158] sm:$0xff] }
 0x5d3   : > { %v4667_v58 = vld [vmem:[%s8676_s17 + $0x178] sm:$0xff] }
 0x5d5   : > { %5768 = vmatpush3.bf16.msra.mxu0 %v5765_v63  ;;  %v2845_v63 = vld [vmem:[%s8674_s15 + $0x28] sm:$0xff] }
 0x5d6   : > { %5145 = vmatprep.subr.mxu0 %v2393_v0 }
 0x5d9   : > { %5146 = vmatpush3.msra.mxu0 %v2393_v0  ;;  %v5812_v0 = vpack.c.bf16 %v2845_v63, %v2844_v62  ;;  %v5861_v62 = vpack.c.bf16 %v4667_v58, %v4663_v57  ;;  %v4662_v63 = vld [vmem:[%s8676_s17 + $0x150] sm:$0xff]  ;;  %v3029_v57 = vld [vmem:[%s8676_s17 + $0x78] sm:$0xff] }
 0x5da   : > { %5148 = vmatmul.mubr.msk.f32.vlgmr.msra.gmra.mrb[26].mxu0 %vm2062_vm8, %v2378_v8  ;;  %5770 = vmatprep.subr.bf16.mxu0 %v5769_v43  ;;  %v2850_v8 = vld [vmem:[%s8674_s15 + $0x50] sm:$0xff] }
 0x5db   : > { %5772 = vmatpush3.bf16.msra.mxu0 %v5769_v43  ;;  %5180 = vmatprep.mubr.msk.f32.mxu0 %vm2062_vm8, %v2574_v12  ;;  %v2849_v43 = vld [vmem:[%s8674_s15 + $0x48] sm:$0xff]  ;;  %v5821_v12 = vpack.c.bf16 %v2851_v9, %v2850_v8  ;;  %v4085_v8 = vld [vmem:[%s8678_s19] sm:$0xff]  ;;  %v4111_v58 = vld [vmem:[%s8678_s19 + $0xd0] sm:$0xff] }
 0x5dc   : > { %5774 = vmatprep.subr.bf16.mxu0 %v5773_v5 }
 0x5df   : > { %5776 = vmatpush3.bf16.msra.mxu0 %v5773_v5  ;;  %v5818_v5 = vpack.c.bf16 %v2849_v43, %v2848_v41  ;;  %v3018_v41 = vld [vmem:[%s8676_s17 + $0x20] sm:$0xff] }
 0x5e0   : > { %5778 = vmatprep.subr.bf16.mxu0 %v5777_v13  ;;  %v4101_v43 = vld [vmem:[%s8678_s19 + $0x80] sm:$0xff] }
 0x5e3   : > { %5780 = vmatpush3.bf16.msra.mxu0 %v5777_v13  ;;  %v2938_v13 = vld [vmem:[%s8675_s16 + $0x58] sm:$0xff] }
 0x5e4   : > { %5782 = vmatprep.subr.bf16.mxu0 %v5781_v16  ;;  %v5839_v14 = vpack.c.bf16 %v2938_v13, %v2937_v11  ;;  %v4103_v13 = vld [vmem:[%s8678_s19 + $0x90] sm:$0xff] }
 0x5e7   : > { %5784 = vmatpush3.bf16.msra.mxu0 %v5781_v16  ;;  %v4645_v16 = vld [vmem:[%s8676_s17 + $0xc8] sm:$0xff] }
 0x5e8   : > { %5786 = vmatprep.subr.bf16.mxu0 %v5785_v48  ;;  %v5841_v55 = vpack.c.bf16 %v4649_v17, %v4645_v16 }
 0x5eb   : > { %5788 = vmatpush3.bf16.msra.mxu0 %v5785_v48 }
 0x5ec   : > { %5790 = vmatprep.subr.bf16.mxu0 %v5789_v2 }
 0x5ef   : > { %5792 = vmatpush3.bf16.msra.mxu0 %v5789_v2  ;;  %v4648_v2 = vld [vmem:[%s8676_s17 + $0xe0] sm:$0xff] }
 0x5f0   : > { %5794 = vmatprep.subr.bf16.mxu0 %v5793_v60  ;;  %v5843_v44 = vpack.c.bf16 %v4648_v2, %v4644_v49  ;;  %v4105_v49 = vld [vmem:[%s8678_s19 + $0xa0] sm:$0xff]  ;;  %v4106_v2 = vld [vmem:[%s8678_s19 + $0xa8] sm:$0xff] }
 0x5f3   : > { %5796 = vmatpush3.bf16.msra.mxu0 %v5793_v60 }
 0x5f4   : > { %5178 = vmatprep.subr.mxu0 %v4634_v6 }
 0x5f7   : > { %5179 = vmatpush3.msra.mxu0 %v4634_v6 }
 0x5f8   : > { %5181 = vmatmul.mubr.msk.f32.vlgmr.msra.gmra.mrb[26].mxu0 %vm2062_vm8, %v2575_v18  ;;  %5823 = vmatprep.subr.bf16.mxu0 %v6219_v59  ;;  %v4653_v18 = vld [vmem:[%s8676_s17 + $0x108] sm:$0xff] }
 0x5f9   : > { %5252 = vmatprep.mubr.msk.f32.mxu0 %vm6220_vm10, %v6217_v7  ;;  %5825 = vmatpush3.bf16.msra.mxu0 %v5824_v21  ;;  %v5845_v20 = vpack.c.bf16 %v4657_v19, %v4653_v18  ;;  %v4652_v21 = vld [vmem:[%s8676_s17 + $0x100] sm:$0xff]  ;;  %v4090_v18 = vld [vmem:[%s8678_s19 + $0x28] sm:$0xff] }
 0x5fa   : > { %5826 = vmatprep.subr.bf16.mxu0 %v6219_v59  ;;  %v5847_v23 = vpack.c.bf16 %v4656_v22, %v4652_v21  ;;  %v5993_v21 = vpack.c.bf16 %v4106_v2, %v4105_v49  ;;  %v4107_v22 = vld [vmem:[%s8678_s19 + $0xb0] sm:$0xff]  ;;  %v4677_v49 = vld [vmem:[%s8676_s17 + $0x1a8] sm:$0xff] }
 0x5fd   : > { %5828 = vmatpush3.bf16.msra.mxu0 %v5827_v24  ;;  %v4661_v24 = vld [vmem:[%s8676_s17 + $0x148] sm:$0xff] }
 0x5fe   : > { %5829 = vmatprep.subr.bf16.mxu0 %v6219_v59 }
 0x601   : > { %5831 = vmatpush3.bf16.msra.mxu0 %v5830_v27  ;;  %v5849_v27 = vpack.c.bf16 %v4665_v25, %v4661_v24  ;;  %v3031_v24 = vld [vmem:[%s8676_s17 + $0x88] sm:$0xff] }
 0x602   : > { %5832 = vmatprep.subr.bf16.mxu0 %v6219_v59  ;;  %v3035_v25 = vld [vmem:[%s8676_s17 + $0xa8] sm:$0xff] }
 0x605   : > { %5834 = vmatpush3.bf16.msra.mxu0 %v5833_v28  ;;  %v4651_v28 = vld [vmem:[%s8676_s17 + $0xf8] sm:$0xff] }
 0x606   : > { %5835 = vmatprep.subr.bf16.mxu0 %v6219_v59  ;;  %v5853_v30 = vpack.c.bf16 %v4651_v28, %v4647_v42  ;;  %v4091_v28 = vld [vmem:[%s8678_s19 + $0x30] sm:$0xff] }
 0x609   : > { %5837 = vmatpush3.bf16.msra.mxu0 %v5836_v31 }
 0x60a   : > { %5838 = vmatprep.subr.bf16.mxu0 %v6219_v59 }
 0x60d   : > { %5840 = vmatpush3.bf16.msra.mxu0 %v5839_v14  ;;  %v4104_v14 = vld [vmem:[%s8678_s19 + $0x98] sm:$0xff] }
 0x60e   : > { %5250 = vmatprep.subr.mxu0 %v6217_v7  ;;  %v5989_v17 = vpack.c.bf16 %v4104_v14, %v4103_v13 }
 0x611   : > { %5251 = vmatpush3.msra.mxu0 %v2939_v15  ;;  %v3023_v15 = vld [vmem:[%s8676_s17 + $0x48] sm:$0xff] }
 0x6cb   : > { %v5182_v36 = vpop.f32.mrb[26].mxu0 }
 0x6cc   : > { %v2683_v37 = vadd.f32 %v5182_v36, %v4637_v34  ;;  %v2664_v38 = vpop.f32.mrb[27].mxu0 }
 0x6cd   : > { %v2682_v40 = vadd.f32 %v4637_v34, %v2664_v38 }
 0x6ce   : > { %v2685_v45 = vmax.f32 %v2683_v37, 0.0 }
 0x6cf   : > { %v2684_v46 = vmax.f32 %v2682_v40, 0.0  ;;  %v4646_v40 = vld [vmem:[%s8676_s17 + $0xd0] sm:$0xff] }
 0x6d1   : > { %v5798_v47 = vpack.c.bf16 %v2685_v45, %v2684_v46  ;;  %v4650_v45 = vld [vmem:[%s8676_s17 + $0xf0] sm:$0xff]  ;;  %v4655_v46 = vld [vmem:[%s8676_s17 + $0x118] sm:$0xff] }
 0x6d3   : > { %5800 = vmatpush3.bf16.msk.msra.mxu1 %vm5799_vm12, %v5798_v47 }
 0x6d4   : > { %5801 = vmatprep.subr.bf16.mxu1 %v6219_v59 }
 0x6d6   : > { %5188 = vmatmul.mubr.msk.f32.vlgmr.msra.gmra.mrb[10].mxu1 %vm2687_vm13, %v2686_v50  ;;  %v5855_v50 = vpack.c.bf16 %v4650_v45, %v4646_v40 }
 0x6d7   : > { %5804 = vmatpush3.bf16.msk.msra.mxu1 %vm5799_vm12, %v5798_v47  ;;  %5194 = vmatprep.mubr.msk.f32.mxu1 %vm6220_vm10, %v6217_v7  ;;  %v4659_v47 = vld [vmem:[%s8676_s17 + $0x138] sm:$0xff] }
 0x6d8   : > { %5805 = vmatprep.subr.bf16.mxu1 %v6219_v59  ;;  %v5857_v51 = vpack.c.bf16 %v4659_v47, %v4655_v46  ;;  %v4093_v47 = vld [vmem:[%s8678_s19 + $0x40] sm:$0xff] }
 0x6da   : > { %5195 = vmatmul.mubr.msk.f32.vlgmr.msra.gmra.mrb[12].mxu1 %vm2687_vm13, %v2765_v53  ;;  %v4658_v53 = vld [vmem:[%s8676_s17 + $0x130] sm:$0xff] }
 0x6db   : > { %5807 = vmatpush3.bf16.msra.mxu1 %v5806_v56  ;;  %5223 = vmatprep.mubr.msk.f32.mxu1 %vm6220_vm10, %v6217_v7 }
 0x6dc   : > { %5808 = vmatprep.subr.bf16.mxu1 %v6219_v59 }
 0x6df   : > { %5810 = vmatpush3.bf16.msra.mxu1 %v5809_v61  ;;  %v5859_v61 = vpack.c.bf16 %v4658_v53, %v4654_v52  ;;  %v3016_v52 = vld [vmem:[%s8676_s17 + $0x10] sm:$0xff] }
 0x6e0   : > { %5811 = vmatprep.subr.bf16.mxu1 %v6219_v59  ;;  %v3020_v53 = vld [vmem:[%s8676_s17 + $0x30] sm:$0xff] }
 0x6e3   : > { %5813 = vmatpush3.bf16.msra.mxu1 %v5812_v0  ;;  %v4666_v0 = vld [vmem:[%s8676_s17 + $0x170] sm:$0xff] }
 0x6e4   : > { %5814 = vmatprep.subr.bf16.mxu1 %v6219_v59  ;;  %v5863_v9 = vpack.c.bf16 %v4666_v0, %v4662_v63  ;;  %v5879_v63 = vpack.c.bf16 %v3020_v53, %v3016_v52  ;;  %v3024_v0 = vld [vmem:[%s8676_s17 + $0x50] sm:$0xff]  ;;  %v4695_v52 = vld [vmem:[%s8676_s17 + $0x238] sm:$0xff] }
 0x6e7   : > { %5816 = vmatpush3.bf16.msra.mxu1 %v5815_v4  ;;  %v3014_v4 = vld [vmem:[%s8676_s17] sm:$0xff] }
 0x6e8   : > { %5817 = vmatprep.subr.bf16.mxu1 %v6219_v59 }
 0x6eb   : > { %5819 = vmatpush3.bf16.msra.mxu1 %v5818_v5  ;;  %v4102_v5 = vld [vmem:[%s8678_s19 + $0x88] sm:$0xff] }
 0x6ec   : > { %5820 = vmatprep.subr.bf16.mxu1 %v6219_v59  ;;  %v2852_v59 = vld [vmem:[%s8674_s15 + $0x60] sm:$0xff]  ;;  %v5985_v11 = vpack.c.bf16 %v4102_v5, %v4101_v43 }
 0x6ed   : > { %v4113_v5 = vld [vmem:[%s8678_s19 + $0xe0] sm:$0xff] }
 0x6ee   : > { %5986 = vmatprep.subr.bf16.mxu0 %v5985_v11  ;;  %v3033_v11 = vld [vmem:[%s8676_s17 + $0x98] sm:$0xff] }
 0x6ef   : > { %5822 = vmatpush3.bf16.msra.mxu1 %v5821_v12  ;;  %v4086_v12 = vld [vmem:[%s8678_s19 + $0x8] sm:$0xff] }
 0x6f0   : > { %5221 = vmatprep.subr.mxu1 %v6217_v7  ;;  %v5987_v16 = vpack.c.bf16 %v4086_v12, %v4085_v8  ;;  %v4114_v8 = vld [vmem:[%s8678_s19 + $0xe8] sm:$0xff]  ;;  %v3037_v12 = vld [vmem:[%s8676_s17 + $0xb8] sm:$0xff] }
 0x6f3   : > { %5222 = vmatpush3.msra.mxu1 %v2852_v59  ;;  %v5865_v59 = vpack.c.bf16 %v3019_v3, %v3015_v1  ;;  %v4095_v1 = vld [vmem:[%s8678_s19 + $0x50] sm:$0xff]  ;;  %v4096_v3 = vld [vmem:[%s8678_s19 + $0x58] sm:$0xff] }
 0x6f4   : > { %5842 = vmatprep.subr.bf16.mxu1 %v5841_v55  ;;  %v4087_v55 = vld [vmem:[%s8678_s19 + $0x10] sm:$0xff]  ;;  %v6007_v13 = vpack.c.bf16 %v4096_v3, %v4095_v1  ;;  %v4698_v1 = vld [vmem:[%s8676_s17 + $0x240] sm:$0xff] }
 0x6f5   : > { %v4702_v3 = vld [vmem:[%s8676_s17 + $0x260] sm:$0xff] }
 0x7a9   : > { %v2761_v48 = vpop.f32.mrb[10].mxu1 }
 0x7aa   : > { %v5189_v54 = vpop.f32.mrb[11].mxu1 }
 0x7ab   : > { %v3027_v54 = vld [vmem:[%s8676_s17 + $0x68] sm:$0xff] }
 0x7ac   : > { %v5869_v19 = vpack.c.bf16 %v3027_v54, %v3023_v15  ;;  %v4097_v15 = vld [vmem:[%s8678_s19 + $0x60] sm:$0xff]  ;;  %v4673_v54 = vld [vmem:[%s8676_s17 + $0x188] sm:$0xff] }
 0x7ad   : > { %v2835_v10 = vpop.f32.mrb[12].mxu1 }
 0x7ae   : > { %v2839_v60 = vmax.f32 %v2761_v48, %v2835_v10  ;;  %v5196_v6 = vpop.f32.mrb[13].mxu1  ;;  %v4088_v48 = vld [vmem:[%s8678_s19 + $0x18] sm:$0xff] }
 0x7af   : > { %v5991_v10 = vpack.c.bf16 %v4088_v48, %v4087_v55  ;;  %v4089_v6 = vld [vmem:[%s8678_s19 + $0x20] sm:$0xff]  ;;  %v3032_v55 = vld [vmem:[%s8676_s17 + $0x90] sm:$0xff] }
 0x7b0   : > { %5224 = vmatmul.mubr.msk.f32.vlgmr.msra.gmra.mrb[14].mxu1 %vm2853_vm14, %v2839_v60  ;;  %5253 = vmatmul.mubr.msk.f32.vlgmr.msra.gmra.mrb[28].mxu0 %vm2853_vm14, %v2839_v60  ;;  %v3022_v60 = vld [vmem:[%s8676_s17 + $0x40] sm:$0xff]  ;;  %v5995_v26 = vpack.c.bf16 %v4090_v18, %v4089_v6  ;;  %v3036_v48 = vld [vmem:[%s8676_s17 + $0xb0] sm:$0xff]  ;;  %v4681_v18 = vld [vmem:[%s8676_s17 + $0x1c8] sm:$0xff] }
 0x7b1   : > { %5844 = vmatpush1.bf16.msra.mxu1 %v5843_v44  ;;  %3132 = vmatprep.mubr.f32.mxu1 %v6217_v7  ;;  %v5867_v44 = vpack.c.bf16 %v3018_v41, %v3014_v4  ;;  %v3028_v41 = vld [vmem:[%s8676_s17 + $0x70] sm:$0xff]  ;;  %v4676_v6 = vld [vmem:[%s8676_s17 + $0x1a0] sm:$0xff] }
 0x7b2   : > { %5846 = vmatprep.subr.bf16.mxu1 %v5845_v20  ;;  %5988 = vmatpush3.bf16.msra.mxu0 %v5987_v16  ;;  %v3026_v20 = vld [vmem:[%s8676_s17 + $0x60] sm:$0xff]  ;;  %v5883_v14 = vpack.c.bf16 %v3028_v41, %v3024_v0  ;;  %v4098_v16 = vld [vmem:[%s8678_s19 + $0x68] sm:$0xff] }
 0x7b3   : > { %5990 = vmatprep.subr.bf16.mxu0 %v5989_v17  ;;  %v5885_v17 = vpack.c.bf16 %v3037_v12, %v3033_v11  ;;  %v6011_v2 = vpack.c.bf16 %v4098_v16, %v4097_v15  ;;  %v4711_v41 = vld [vmem:[%s8676_s17 + $0x2a8] sm:$0xff]  ;;  %v4718_v15 = vld [vmem:[%s8676_s17 + $0x2e0] sm:$0xff]  ;;  %v4701_v16 = vld [vmem:[%s8676_s17 + $0x258] sm:$0xff] }
 0x7b4   : > { %v4715_v11 = vld [vmem:[%s8676_s17 + $0x2c8] sm:$0xff] }
 0x7b5   : > { %5848 = vmatpush1.bf16.msra.mxu1 %v5847_v23  ;;  %v4108_v23 = vld [vmem:[%s8678_s19 + $0xb8] sm:$0xff]  ;;  %v4719_v12 = vld [vmem:[%s8676_s17 + $0x2e8] sm:$0xff] }
 0x7b6   : > { %5850 = vmatprep.subr.bf16.mxu1 %v5849_v27  ;;  %5992 = vmatpush3.bf16.msra.mxu0 %v5991_v10  ;;  %v5871_v27 = vpack.c.bf16 %v3026_v20, %v3022_v60  ;;  %v5997_v42 = vpack.c.bf16 %v4108_v23, %v4107_v22  ;;  %v5887_v10 = vpack.c.bf16 %v3036_v48, %v3032_v55  ;;  %v4672_v60 = vld [vmem:[%s8676_s17 + $0x180] sm:$0xff] }
 0x7b7   : > { %5994 = vmatprep.subr.bf16.mxu0 %v5993_v21  ;;  %v5891_v20 = vpack.c.bf16 %v4676_v6, %v4672_v60  ;;  %v4680_v22 = vld [vmem:[%s8676_s17 + $0x1c0] sm:$0xff]  ;;  %v4708_v6 = vld [vmem:[%s8676_s17 + $0x290] sm:$0xff] }
 0x7b8   : > { %v4684_v23 = vld [vmem:[%s8676_s17 + $0x1e0] sm:$0xff] }
 0x7b9   : > { %5852 = vmatpush1.bf16.msra.mxu1 %v5851_v29  ;;  %v4092_v29 = vld [vmem:[%s8678_s19 + $0x38] sm:$0xff] }
 0x7ba   : > { %5854 = vmatprep.subr.bf16.mxu1 %v5853_v30  ;;  %v5873_v30 = vpack.c.bf16 %v3035_v25, %v3031_v24  ;;  %5996 = vmatpush3.bf16.msra.mxu0 %v5995_v26  ;;  %v5999_v40 = vpack.c.bf16 %v4092_v29, %v4091_v28  ;;  %v4689_v24 = vld [vmem:[%s8676_s17 + $0x208] sm:$0xff]  ;;  %v5895_v26 = vpack.c.bf16 %v4684_v23, %v4680_v22  ;;  %v4675_v28 = vld [vmem:[%s8676_s17 + $0x198] sm:$0xff] }
 0x7bb   : > { %5998 = vmatprep.subr.bf16.mxu0 %v5997_v42  ;;  %v4693_v25 = vld [vmem:[%s8676_s17 + $0x228] sm:$0xff]  ;;  %v4692_v42 = vld [vmem:[%s8676_s17 + $0x220] sm:$0xff]  ;;  %v4679_v29 = vld [vmem:[%s8676_s17 + $0x1b8] sm:$0xff] }
 0x7be   : > { %6000 = vmatpush3.bf16.msra.mxu0 %v5999_v40 }
 0x883   : > { %v2923_v31 = vpop.f32.mrb[14].mxu1  ;;  %v3006_v34 = vpop.f32.mrb[28].mxu0 }
 0x884   : > { %v3010_v36 = vmax.f32 %v2923_v31, %v3006_v34  ;;  %v5225_v37 = vpop.f32.mrb[15].mxu1  ;;  %v5254_v38 = vpop.f32.mrb[29].mxu0  ;;  %v3034_v31 = vld [vmem:[%s8676_s17 + $0xa0] sm:$0xff] }
 0x885   : > { %v4109_v34 = vld [vmem:[%s8678_s19 + $0xc0] sm:$0xff]  ;;  %v3017_v37 = vld [vmem:[%s8676_s17 + $0x18] sm:$0xff]  ;;  %v5875_v45 = vpack.c.bf16 %v3034_v31, %v3030_v39  ;;  %v5901_v31 = vpack.c.bf16 %v4679_v29, %v4675_v28 }
 0x886   : > { %3012 = vst.msk [vmem:[#allocation5] sm:$0x3f] %vm3011_vm15, %v3010_v36  ;;  %v4110_v36 = vld [vmem:[%s8678_s19 + $0xc8] sm:$0xff]  ;;  %v3021_v38 = vld [vmem:[%s8676_s17 + $0x38] sm:$0xff]  ;;  %v4688_v39 = vld [vmem:[%s8676_s17 + $0x200] sm:$0xff] }
 0x887   : > { %v6001_v46 = vpack.c.bf16 %v4110_v36, %v4109_v34  ;;  %v4674_v34 = vld [vmem:[%s8676_s17 + $0x190] sm:$0xff]  ;;  %v4724_v28 = vld [vmem:[%s8676_s17 + $0x300] sm:$0xff] }
 0x888   : > { %v4678_v36 = vld [vmem:[%s8676_s17 + $0x1b0] sm:$0xff]  ;;  %v4728_v29 = vld [vmem:[%s8676_s17 + $0x320] sm:$0xff] }
 0x889   : > { %6002 = vmatprep.subr.bf16.mxu0 %v6001_v46  ;;  %v5903_v40 = vpack.c.bf16 %v4678_v36, %v4674_v34  ;;  %v4682_v46 = vld [vmem:[%s8676_s17 + $0x1d0] sm:$0xff]  ;;  %v5939_v34 = vpack.c.bf16 %v4728_v29, %v4724_v28 }
 0x88a   : > { %v4760_v29 = vld [vmem:[%s8676_s17 + $0x410] sm:$0xff] }
 0x88d   : > { %v3038_v56 = vld [vmem:[#allocation5 + $0x1] sm:$0x1] }
 0x88e   : > { %4668 = vmatmul.mubr.msk.f32.vlgmr.msra.gmra.mrb[16].mxu1 %vm3064_vm0, %v3038_v56 }
 0x88f   : > { %5856 = vmatpush1.bf16.msra.mxu1 %v5855_v50  ;;  %3203 = vmatprep.mubr.f32.mxu1 %v6217_v7  ;;  %v4094_v50 = vld [vmem:[%s8678_s19 + $0x48] sm:$0xff] }
 0x890   : > { %5858 = vmatprep.subr.bf16.mxu1 %v5857_v51  ;;  %v5877_v51 = vpack.c.bf16 %v3021_v38, %v3017_v37  ;;  %v4683_v37 = vld [vmem:[%s8676_s17 + $0x1d8] sm:$0xff] }
 0x891   : > { %v4687_v38 = vld [vmem:[%s8676_s17 + $0x1f8] sm:$0xff] }
 0x893   : > { %5860 = vmatpush1.bf16.msra.mxu1 %v5859_v61  ;;  %v4112_v61 = vld [vmem:[%s8678_s19 + $0xd8] sm:$0xff] }
 0x894   : > { %5862 = vmatprep.subr.bf16.mxu1 %v5861_v62  ;;  %v6003_v62 = vpack.c.bf16 %v4094_v50, %v4093_v47  ;;  %v6005_v43 = vpack.c.bf16 %v4112_v61, %v4111_v58  ;;  %v4686_v47 = vld [vmem:[%s8676_s17 + $0x1f0] sm:$0xff]  ;;  %v3355_v50 = vld [vmem:[#allocation5 + $0x2] sm:$0x1] }
 0x895   : > { %v5907_v53 = vpack.c.bf16 %v4686_v47, %v4682_v46  ;;  %v4694_v58 = vld [vmem:[%s8676_s17 + $0x230] sm:$0xff]  ;;  %v4699_v61 = vld [vmem:[%s8676_s17 + $0x248] sm:$0xff] }
 0x896   : > { %6004 = vmatpush3.bf16.msra.mxu0 %v6003_v62  ;;  %v4703_v62 = vld [vmem:[%s8676_s17 + $0x268] sm:$0xff] }
 0x897   : > { %5864 = vmatpush1.bf16.msra.mxu1 %v5863_v9  ;;  %v3013_v9 = vld [vmem:[#allocation5] sm:$0x1]  ;;  %6006 = vmatprep.subr.bf16.mxu0 %v6005_v43  ;;  %v5913_v0 = vpack.c.bf16 %v4703_v62, %v4699_v61  ;;  %v5915_v43 = vpack.c.bf16 %v4702_v3, %v4698_v1  ;;  %v4730_v61 = vld [vmem:[%s8676_s17 + $0x330] sm:$0xff]  ;;  %v4735_v62 = vld [vmem:[%s8676_s17 + $0x358] sm:$0xff] }
 0x898   : > { %5866 = vmatprep.subr.bf16.mxu1 %v5865_v59  ;;  %v6009_v59 = vpack.c.bf16 %v4114_v8, %v4113_v5  ;;  %v4706_v8 = vld [vmem:[%s8676_s17 + $0x280] sm:$0xff]  ;;  %v4734_v3 = vld [vmem:[%s8676_s17 + $0x350] sm:$0xff] }
 0x89a   : > { %4669 = vmatmul.mubr.msk.f32.vlgmr.msra.gmra.mrb[18].mxu1 %vm3064_vm0, %v3038_v56  ;;  %v3025_v56 = vld [vmem:[%s8676_s17 + $0x58] sm:$0xff]  ;;  %6008 = vmatpush3.bf16.msra.mxu0 %v6007_v13 }
 0x89b   : > { %5868 = vmatpush1.bf16.msra.mxu1 %v5867_v44  ;;  %3277 = vmatprep.mubr.f32.mxu1 %v6217_v7  ;;  %v5881_v4 = vpack.c.bf16 %v3029_v57, %v3025_v56  ;;  %v5889_v44 = vpack.c.bf16 %v4677_v49, %v4673_v54  ;;  %v4690_v57 = vld [vmem:[%s8676_s17 + $0x210] sm:$0xff] }
 0x89c   : > { %5870 = vmatprep.subr.bf16.mxu1 %v5869_v19  ;;  %6010 = vmatprep.subr.bf16.mxu0 %v6009_v59  ;;  %v4685_v19 = vld [vmem:[%s8676_s17 + $0x1e8] sm:$0xff]  ;;  %v4714_v59 = vld [vmem:[%s8676_s17 + $0x2c0] sm:$0xff]  ;;  %v4700_v54 = vld [vmem:[%s8676_s17 + $0x250] sm:$0xff] }
 0x89d   : > { %v5893_v21 = vpack.c.bf16 %v4685_v19, %v4681_v18  ;;  %v5923_v55 = vpack.c.bf16 %v4718_v15, %v4714_v59  ;;  %v4704_v49 = vld [vmem:[%s8676_s17 + $0x270] sm:$0xff]  ;;  %v3530_v19 = vld [vmem:[#allocation5 + $0x3] sm:$0x1] }
 0x89e   : > { %6012 = vmatpush3.bf16.msra.mxu0 %v6011_v2  ;;  %v4709_v2 = vld [vmem:[%s8676_s17 + $0x298] sm:$0xff]  ;;  %v4712_v18 = vld [vmem:[%s8676_s17 + $0x2b0] sm:$0xff] }
 0x89f   : > { %5872 = vmatpush1.bf16.msra.mxu1 %v5871_v27  ;;  %v5897_v27 = vpack.c.bf16 %v4693_v25, %v4689_v24  ;;  %v5931_v22 = vpack.c.bf16 %v4712_v18, %v4708_v6  ;;  %v4716_v24 = vld [vmem:[%s8676_s17 + $0x2d0] sm:$0xff] }
 0x8a0   : > { %5874 = vmatprep.subr.bf16.mxu1 %v5873_v30  ;;  %v5899_v30 = vpack.c.bf16 %v4692_v42, %v4688_v39  ;;  %v4720_v25 = vld [vmem:[%s8676_s17 + $0x2f0] sm:$0xff] }
 0x8a1   : > { %v5935_v39 = vpack.c.bf16 %v4720_v25, %v4716_v24  ;;  %v4752_v25 = vld [vmem:[%s8676_s17 + $0x3d0] sm:$0xff] }
 0x8a3   : > { %5876 = vmatpush1.bf16.msra.mxu1 %v5875_v45  ;;  %v5905_v45 = vpack.c.bf16 %v4687_v38, %v4683_v37  ;;  %v4732_v37 = vld [vmem:[%s8676_s17 + $0x340] sm:$0xff] }
 0x8a4   : > { %5878 = vmatprep.subr.bf16.mxu1 %v5877_v51  ;;  %v4691_v51 = vld [vmem:[%s8676_s17 + $0x218] sm:$0xff]  ;;  %v4736_v38 = vld [vmem:[%s8676_s17 + $0x360] sm:$0xff] }
 0x8a5   : > { %v5909_v56 = vpack.c.bf16 %v4695_v52, %v4691_v51  ;;  %v5943_v46 = vpack.c.bf16 %v4736_v38, %v4732_v37  ;;  %v4744_v51 = vld [vmem:[%s8676_s17 + $0x3a0] sm:$0xff]  ;;  %v4727_v52 = vld [vmem:[%s8676_s17 + $0x318] sm:$0xff] }
 0x8a6   : > { %4670 = vmatmul.mubr.msk.f32.vlgmr.msra.gmra.mrb[16].mxu1 %vm3064_vm0, %v3013_v9 }
 0x8a7   : > { %5880 = vmatpush1.bf16.msra.mxu1 %v5879_v63  ;;  %3348 = vmatprep.mubr.f32.mxu1 %v6217_v7  ;;  %v5911_v63 = vpack.c.bf16 %v4694_v58, %v4690_v57  ;;  %v4726_v58 = vld [vmem:[%s8676_s17 + $0x310] sm:$0xff] }
 0x8a8   : > { %5882 = vmatprep.subr.bf16.mxu1 %v5881_v4  ;;  %v4707_v4 = vld [vmem:[%s8676_s17 + $0x288] sm:$0xff] }
 0x8a9   : > { %v5917_v5 = vpack.c.bf16 %v4711_v41, %v4707_v4  ;;  %v4738_v4 = vld [vmem:[%s8676_s17 + $0x370] sm:$0xff]  ;;  %v3705_v41 = vld [vmem:[#allocation5 + $0x4] sm:$0x1] }
 0x8ab   : > { %5884 = vmatpush1.bf16.msra.mxu1 %v5883_v14  ;;  %v5921_v14 = vpack.c.bf16 %v4719_v12, %v4715_v11  ;;  %v4742_v11 = vld [vmem:[%s8676_s17 + $0x390] sm:$0xff] }
 0x8ac   : > { %5886 = vmatprep.subr.bf16.mxu1 %v5885_v17  ;;  %v4705_v17 = vld [vmem:[%s8676_s17 + $0x278] sm:$0xff]  ;;  %v4746_v12 = vld [vmem:[%s8676_s17 + $0x3b0] sm:$0xff] }
 0x8ad   : > { %v5925_v48 = vpack.c.bf16 %v4705_v17, %v4701_v16  ;;  %v5959_v59 = vpack.c.bf16 %v4746_v12, %v4742_v11  ;;  %v4750_v16 = vld [vmem:[%s8676_s17 + $0x3c0] sm:$0xff]  ;;  %v4119_v12 = vld [vmem:[%s8678_s19 + $0x110] sm:$0xff] }
 0x8ae   : > { %v4754_v17 = vld [vmem:[%s8676_s17 + $0x3e0] sm:$0xff] }
 0x8af   : > { %5888 = vmatpush1.bf16.msra.mxu1 %v5887_v10  ;;  %v4713_v10 = vld [vmem:[%s8676_s17 + $0x2b8] sm:$0xff] }
 0x8b0   : > { %5890 = vmatprep.subr.bf16.mxu1 %v5889_v44  ;;  %v5927_v44 = vpack.c.bf16 %v4704_v49, %v4700_v54  ;;  %v5929_v60 = vpack.c.bf16 %v4713_v10, %v4709_v2  ;;  %v5963_v54 = vpack.c.bf16 %v4754_v17, %v4750_v16  ;;  %v4758_v2 = vld [vmem:[%s8676_s17 + $0x400] sm:$0xff] }
 0x8b1   : > { %v4762_v10 = vld [vmem:[%s8676_s17 + $0x420] sm:$0xff] }
 0x8b2   : > { %4671 = vmatmul.mubr.msk.f32.vlgmr.msra.gmra.mrb[18].mxu1 %vm3064_vm0, %v3013_v9  ;;  %v4710_v9 = vld [vmem:[%s8676_s17 + $0x2a0] sm:$0xff]  ;;  %v5967_v6 = vpack.c.bf16 %v4762_v10, %v4758_v2  ;;  %v4140_v2 = vld [vmem:[%s8678_s19 + $0x1b8] sm:$0xff] }
 0x8b3   : > { %5892 = vmatpush1.bf16.msra.mxu1 %v5891_v20  ;;  %3448 = vmatprep.mubr.f32.mxu1 %v6217_v7  ;;  %v5919_v13 = vpack.c.bf16 %v4710_v9, %v4706_v8  ;;  %v4717_v20 = vld [vmem:[%s8676_s17 + $0x2d8] sm:$0xff]  ;;  %v5955_v8 = vpack.c.bf16 %v4738_v4, %v4734_v3  ;;  %v4117_v4 = vld [vmem:[%s8678_s19 + $0x100] sm:$0xff] }
 0x8b4   : > { %5894 = vmatprep.subr.bf16.mxu1 %v5893_v21  ;;  %v4721_v21 = vld [vmem:[%s8676_s17 + $0x2f8] sm:$0xff] }
 0x8b5   : > { %v5933_v23 = vpack.c.bf16 %v4721_v21, %v4717_v20  ;;  %v4770_v20 = vld [vmem:[%s8676_s17 + $0x460] sm:$0xff]  ;;  %v4753_v21 = vld [vmem:[%s8676_s17 + $0x3d8] sm:$0xff] }
 0x8b7   : > { %5896 = vmatpush1.bf16.msra.mxu1 %v5895_v26  ;;  %v4725_v26 = vld [vmem:[%s8676_s17 + $0x308] sm:$0xff] }
 0x8b8   : > { %5898 = vmatprep.subr.bf16.mxu1 %v5897_v27  ;;  %v4729_v27 = vld [vmem:[%s8676_s17 + $0x328] sm:$0xff] }
 0x8b9   : > { %v5937_v42 = vpack.c.bf16 %v4729_v27, %v4725_v26  ;;  %v4756_v26 = vld [vmem:[%s8676_s17 + $0x3f0] sm:$0xff]  ;;  %v4761_v27 = vld [vmem:[%s8676_s17 + $0x418] sm:$0xff] }
 0x8bb   : > { %5900 = vmatpush1.bf16.msra.mxu1 %v5899_v30  ;;  %v4733_v30 = vld [vmem:[%s8676_s17 + $0x348] sm:$0xff] }
 0x8bc   : > { %5902 = vmatprep.subr.bf16.mxu1 %v5901_v31  ;;  %v4737_v31 = vld [vmem:[%s8676_s17 + $0x368] sm:$0xff] }
 0x8bd   : > { %v5941_v36 = vpack.c.bf16 %v4737_v31, %v4733_v30  ;;  %v4764_v30 = vld [vmem:[%s8676_s17 + $0x430] sm:$0xff]  ;;  %v3880_v31 = vld [vmem:[#allocation5 + $0x5] sm:$0x1] }
 0x8be   : > { %4696 = vmatmul.mubr.msk.f32.vlgmr.msra.gmra.mrb[16].mxu1 %vm3064_vm0, %v3355_v50  ;;  %v5979_v37 = vpack.c.bf16 %v4764_v30, %v4760_v29  ;;  %v4127_v30 = vld [vmem:[%s8678_s19 + $0x150] sm:$0xff] }
 0x8bf   : > { %5904 = vmatpush1.bf16.msra.mxu1 %v5903_v40  ;;  %3519 = vmatprep.mubr.f32.mxu1 %v6217_v7  ;;  %v4741_v40 = vld [vmem:[%s8676_s17 + $0x388] sm:$0xff] }
 0x8c0   : > { %5906 = vmatprep.subr.bf16.mxu1 %v5905_v45  ;;  %v4745_v45 = vld [vmem:[%s8676_s17 + $0x3a8] sm:$0xff] }
 0x8c1   : > { %v5945_v47 = vpack.c.bf16 %v4745_v45, %v4741_v40  ;;  %v4768_v40 = vld [vmem:[%s8676_s17 + $0x450] sm:$0xff] }
 0x8c2   : > { %v4772_v45 = vld [vmem:[%s8676_s17 + $0x470] sm:$0xff] }
 0x8c3   : > { %5908 = vmatpush1.bf16.msra.mxu1 %v5907_v53  ;;  %v4731_v53 = vld [vmem:[%s8676_s17 + $0x338] sm:$0xff] }
 0x8c4   : > { %5910 = vmatprep.subr.bf16.mxu1 %v5909_v56  ;;  %v5949_v57 = vpack.c.bf16 %v4731_v53, %v4727_v52  ;;  %v4100_v52 = vld [vmem:[%s8678_s19 + $0x78] sm:$0xff] }
 0x8c7   : > { %5912 = vmatpush1.bf16.msra.mxu1 %v5911_v63  ;;  %v4739_v63 = vld [vmem:[%s8676_s17 + $0x378] sm:$0xff] }
 0x8c8   : > { %5914 = vmatprep.subr.bf16.mxu1 %v5913_v0  ;;  %v5951_v0 = vpack.c.bf16 %v4730_v61, %v4726_v58  ;;  %v5953_v1 = vpack.c.bf16 %v4739_v63, %v4735_v62  ;;  %v8509_v61 = vld [vmem:[%s8677_s18] sm:$0xf] }
 0x8c9   : > { %v4060_v62 = vrot.slane %v8509_v61, %v6841_v33  ;;  %v4064_v63 = vrot.slane %v8509_v61, %v6847_v35  ;;  %v4136_v33 = vld [vmem:[%s8678_s19 + $0x198] sm:$0xff] }
 0x8ca   : > { %4697 = vmatmul.mubr.msk.f32.vlgmr.msra.gmra.mrb[18].mxu1 %vm3064_vm0, %v3355_v50  ;;  %v4740_v50 = vld [vmem:[%s8676_s17 + $0x380] sm:$0xff] }
 0x8cb   : > { %5916 = vmatpush1.bf16.msra.mxu1 %v5915_v43  ;;  %3623 = vmatprep.mubr.f32.mxu1 %v6217_v7  ;;  %v5947_v56 = vpack.c.bf16 %v4744_v51, %v4740_v50  ;;  %v4743_v43 = vld [vmem:[%s8676_s17 + $0x398] sm:$0xff]  ;;  %v4099_v51 = vld [vmem:[%s8678_s19 + $0x70] sm:$0xff] }
 0x8cc   : > { %5918 = vmatprep.subr.bf16.mxu1 %v5917_v5  ;;  %v4747_v5 = vld [vmem:[%s8676_s17 + $0x3b8] sm:$0xff]  ;;  %v6015_v53 = vpack.c.bf16 %v4100_v52, %v4099_v51  ;;  %v4131_v52 = vld [vmem:[%s8678_s19 + $0x170] sm:$0xff] }
 0x8cd   : > { %v5957_v9 = vpack.c.bf16 %v4747_v5, %v4743_v43  ;;  %v4135_v5 = vld [vmem:[%s8678_s19 + $0x190] sm:$0xff] }
 0x8ce   : > { %v6021_v11 = vpack.c.bf16 %v4136_v33, %v4135_v5 }
 0x8cf   : > { %5920 = vmatpush1.bf16.msra.mxu1 %v5919_v13  ;;  %v4751_v13 = vld [vmem:[%s8676_s17 + $0x3c8] sm:$0xff] }
 0x8d0   : > { %5922 = vmatprep.subr.bf16.mxu1 %v5921_v14  ;;  %v4755_v14 = vld [vmem:[%s8676_s17 + $0x3e8] sm:$0xff] }
 0x8d1   : > { %v5961_v15 = vpack.c.bf16 %v4755_v14, %v4751_v13  ;;  %v4120_v13 = vld [vmem:[%s8678_s19 + $0x118] sm:$0xff]  ;;  %v4071_v14 = vsub.s32 3, %v6838_v32 }
 0x8d2   : > { %v6023_v16 = vpack.c.bf16 %v4120_v13, %v4119_v12 }
 0x8d3   : > { %5924 = vmatpush1.bf16.msra.mxu1 %v5923_v55  ;;  %v4759_v55 = vld [vmem:[%s8676_s17 + $0x408] sm:$0xff] }
 0x8d4   : > { %5926 = vmatprep.subr.bf16.mxu1 %v5925_v48  ;;  %v4763_v48 = vld [vmem:[%s8676_s17 + $0x428] sm:$0xff] }
 0x8d5   : > { %v5965_v49 = vpack.c.bf16 %v4763_v48, %v4759_v55  ;;  %v4121_v55 = vld [vmem:[%s8678_s19 + $0x120] sm:$0xff]  ;;  %v4122_v48 = vld [vmem:[%s8678_s19 + $0x128] sm:$0xff] }
 0x8d6   : > { %4722 = vmatmul.mubr.msk.f32.vlgmr.msra.gmra.mrb[16].mxu1 %vm3064_vm0, %v3530_v19 }
 0x8d7   : > { %5928 = vmatpush1.bf16.msra.mxu1 %v5927_v44  ;;  %3694 = vmatprep.mubr.f32.mxu1 %v6217_v7  ;;  %v4767_v44 = vld [vmem:[%s8676_s17 + $0x448] sm:$0xff] }
 0x8d8   : > { %5930 = vmatprep.subr.bf16.mxu1 %v5929_v60  ;;  %v4771_v60 = vld [vmem:[%s8676_s17 + $0x468] sm:$0xff] }
 0x8d9   : > { %v5969_v18 = vpack.c.bf16 %v4771_v60, %v4767_v44  ;;  %v6027_v44 = vpack.c.bf16 %v4122_v48, %v4121_v55 }
 0x8db   : > { %5932 = vmatpush1.bf16.msra.mxu1 %v5931_v22  ;;  %v4757_v22 = vld [vmem:[%s8676_s17 + $0x3f8] sm:$0xff] }
 0x8dc   : > { %5934 = vmatprep.subr.bf16.mxu1 %v5933_v23  ;;  %v5973_v24 = vpack.c.bf16 %v4757_v22, %v4753_v21  ;;  %v4141_v21 = vld [vmem:[%s8678_s19 + $0x1c0] sm:$0xff]  ;;  %v4142_v22 = vld [vmem:[%s8678_s19 + $0x1c8] sm:$0xff] }
 0x8df   : > { %5936 = vmatpush1.bf16.msra.mxu1 %v5935_v39  ;;  %v4765_v39 = vld [vmem:[%s8676_s17 + $0x438] sm:$0xff] }
 0x8e0   : > { %5938 = vmatprep.subr.bf16.mxu1 %v5937_v42  ;;  %v5975_v42 = vpack.c.bf16 %v4756_v26, %v4752_v25  ;;  %v5977_v28 = vpack.c.bf16 %v4765_v39, %v4761_v27  ;;  %v6033_v25 = vpack.c.bf16 %v4142_v22, %v4141_v21  ;;  %v4125_v26 = vld [vmem:[%s8678_s19 + $0x140] sm:$0xff]  ;;  %v4126_v27 = vld [vmem:[%s8678_s19 + $0x148] sm:$0xff]  ;;  %v4143_v39 = vld [vmem:[%s8678_s19 + $0x1d0] sm:$0xff] }
 0x8e2   : > { %4723 = vmatmul.mubr.msk.f32.vlgmr.msra.gmra.mrb[18].mxu1 %vm3064_vm0, %v3530_v19  ;;  %v4766_v19 = vld [vmem:[%s8676_s17 + $0x440] sm:$0xff] }
 0x8e3   : > { %5940 = vmatpush1.bf16.msra.mxu1 %v5939_v34  ;;  %3798 = vmatprep.mubr.f32.mxu1 %v6217_v7  ;;  %v5971_v23 = vpack.c.bf16 %v4770_v20, %v4766_v19  ;;  %v4769_v34 = vld [vmem:[%s8676_s17 + $0x458] sm:$0xff] }
 0x8e4   : > { %5942 = vmatprep.subr.bf16.mxu1 %v5941_v36  ;;  %v4773_v36 = vld [vmem:[%s8676_s17 + $0x478] sm:$0xff] }
 0x8e5   : > { %v5981_v38 = vpack.c.bf16 %v4773_v36, %v4769_v34  ;;  %v4124_v19 = vld [vmem:[%s8678_s19 + $0x138] sm:$0xff]  ;;  %v4145_v34 = vld [vmem:[%s8678_s19 + $0x1e0] sm:$0xff]  ;;  %v4146_v36 = vld [vmem:[%s8678_s19 + $0x1e8] sm:$0xff] }
 0x8e7   : > { %5944 = vmatpush1.bf16.msra.mxu1 %v5943_v46  ;;  %v5983_v46 = vpack.c.bf16 %v4772_v45, %v4768_v40  ;;  %v6041_v40 = vpack.c.bf16 %v4146_v36, %v4145_v34  ;;  %v4129_v45 = vld [vmem:[%s8678_s19 + $0x160] sm:$0xff] }
 0x8e8   : > { %5946 = vmatprep.subr.bf16.mxu1 %v5945_v47  ;;  %v4116_v47 = vld [vmem:[%s8678_s19 + $0xf8] sm:$0xff] }
 0x8eb   : > { %5948 = vmatpush1.bf16.msra.mxu1 %v5947_v56  ;;  %v4133_v56 = vld [vmem:[%s8678_s19 + $0x180] sm:$0xff] }
 0x8ec   : > { %5950 = vmatprep.subr.bf16.mxu1 %v5949_v57  ;;  %v4134_v57 = vld [vmem:[%s8678_s19 + $0x188] sm:$0xff] }
 0x8ed   : > { %v6017_v58 = vpack.c.bf16 %v4134_v57, %v4133_v56 }
 0x8ee   : > { %4748 = vmatmul.mubr.msk.f32.vlgmr.msra.gmra.mrb[16].mxu1 %vm3064_vm0, %v3705_v41 }
 0x8ef   : > { %5952 = vmatpush1.bf16.msra.mxu1 %v5951_v0  ;;  %3869 = vmatprep.mubr.f32.mxu1 %v6217_v7 }
 0x8f0   : > { %5954 = vmatprep.subr.bf16.mxu1 %v5953_v1 }
 0x8f3   : > { %5956 = vmatpush1.bf16.msra.mxu1 %v5955_v8 }
 0x8f4   : > { %5958 = vmatprep.subr.bf16.mxu1 %v5957_v9 }
 0x8f7   : > { %5960 = vmatpush1.bf16.msra.mxu1 %v5959_v59  ;;  %v4137_v59 = vld [vmem:[%s8678_s19 + $0x1a0] sm:$0xff] }
 0x8f8   : > { %5962 = vmatprep.subr.bf16.mxu1 %v5961_v15  ;;  %v4138_v15 = vld [vmem:[%s8678_s19 + $0x1a8] sm:$0xff] }
 0x8f9   : > { %v6025_v17 = vpack.c.bf16 %v4138_v15, %v4137_v59 }
 0x8fa   : > { %4749 = vmatmul.mubr.msk.f32.vlgmr.msra.gmra.mrb[18].mxu1 %vm3064_vm0, %v3705_v41  ;;  %v4118_v41 = vld [vmem:[%s8678_s19 + $0x108] sm:$0xff] }
 0x8fb   : > { %5964 = vmatpush1.bf16.msra.mxu1 %v5963_v54  ;;  %3973 = vmatprep.mubr.f32.mxu1 %v6217_v7  ;;  %v6019_v8 = vpack.c.bf16 %v4118_v41, %v4117_v4  ;;  %v4072_v54 = vrot.slane %v8509_v61, %v4071_v14 }
 0x8fc   : > { %5966 = vmatprep.subr.bf16.mxu1 %v5965_v49  ;;  %v4139_v49 = vld [vmem:[%s8678_s19 + $0x1b0] sm:$0xff] }
 0x8ff   : > { %5968 = vmatpush1.bf16.msra.mxu1 %v5967_v6  ;;  %v6029_v6 = vpack.c.bf16 %v4140_v2, %v4139_v49 }
 0x900   : > { %5970 = vmatprep.subr.bf16.mxu1 %v5969_v18  ;;  %v4123_v18 = vld [vmem:[%s8678_s19 + $0x130] sm:$0xff] }
 0x903   : > { %5972 = vmatpush1.bf16.msra.mxu1 %v5971_v23 }
 0x904   : > { %5974 = vmatprep.subr.bf16.mxu1 %v5973_v24  ;;  %v6031_v24 = vpack.c.bf16 %v4124_v19, %v4123_v18 }
 0x906   : > { %4774 = vmatmul.mubr.msk.f32.vlgmr.msra.gmra.mrb[16].mxu1 %vm3064_vm0, %v3880_v31 }
 0x907   : > { %5976 = vmatpush1.bf16.msra.mxu1 %v5975_v42  ;;  %4044 = vmatprep.mubr.f32.mxu1 %v6217_v7  ;;  %v4115_v7 = vld [vmem:[%s8678_s19 + $0xf0] sm:$0xff]  ;;  %v4144_v42 = vld [vmem:[%s8678_s19 + $0x1d8] sm:$0xff] }
 0x908   : > { %5978 = vmatprep.subr.bf16.mxu1 %v5977_v28  ;;  %v6013_v50 = vpack.c.bf16 %v4116_v47, %v4115_v7  ;;  %v6035_v28 = vpack.c.bf16 %v4126_v27, %v4125_v26  ;;  %v6037_v29 = vpack.c.bf16 %v4144_v42, %v4143_v39  ;;  %v4147_v7 = vld [vmem:[%s8678_s19 + $0x1f0] sm:$0xff]  ;;  %v4148_v47 = vld [vmem:[%s8678_s19 + $0x1f8] sm:$0xff] }
 0x909   : > { %v6045_v51 = vpack.c.bf16 %v4148_v47, %v4147_v7 }
 0x90a   : > { %6014 = vmatprep.subr.bf16.mxu0 %v6013_v50 }
 0x90b   : > { %5980 = vmatpush1.bf16.msra.mxu1 %v5979_v37  ;;  %6016 = vmatpush3.bf16.msra.mxu0 %v6015_v53  ;;  %v4132_v53 = vld [vmem:[%s8678_s19 + $0x178] sm:$0xff] }
 0x90c   : > { %5982 = vmatprep.subr.bf16.mxu1 %v5981_v38  ;;  %6018 = vmatprep.subr.bf16.mxu0 %v6017_v58  ;;  %v4067_v38 = vsub.s32 2, %v6838_v32  ;;  %v6047_v56 = vpack.c.bf16 %v4132_v53, %v4131_v52 }
 0x90e   : > { %v4068_v50 = vrot.slane %v8509_v61, %v4067_v38 }
 0x90f   : > { %5984 = vmatpush1.bf16.msra.mxu1 %v5983_v46  ;;  %v4130_v46 = vld [vmem:[%s8678_s19 + $0x168] sm:$0xff] }
 0x910   : > { %v6043_v32 = vpack.c.bf16 %v4130_v46, %v4129_v45 }
 0x912   : > { %4775 = vmatmul.mubr.msk.f32.vlgmr.msra.gmra.mrb[18].mxu1 %vm3064_vm0, %v3880_v31  ;;  %v4128_v31 = vld [vmem:[%s8678_s19 + $0x158] sm:$0xff] }
 0x913   : > { %v6039_v37 = vpack.c.bf16 %v4128_v31, %v4127_v30 }
 0x9d9   : > { %v3975_v0 = vpop.f32.mrb[16].mxu1 }
 0x9da   : > { %v4077_v1 = vadd.f32 %v4060_v62, %v3975_v0  ;;  %v3977_v3 = vpop.f32.mrb[17].mxu1  ;;  %v4149_v0 = vld [vmem:[%s8679_s20] sm:$0x1] }
 0x9db   : > { %v4078_v43 = vadd.f32 %v4064_v63, %v3977_v3 }
 0x9dc   : > { %v4081_v9 = vmax.f32 %v4077_v1, 0.0 }
 0x9dd   : > { %v4082_v35 = vmax.f32 %v4078_v43, 0.0 }
 0x9df   : > { %4214 = vmatprep.mubr.f32.mxu0 %v4082_v35 }
 0x9e0   : > { %4215 = vmatmul.mubr.f32.vlgmr.msra.gmra.mrb[30].mxu0 %v4081_v9 }
 0x9e1   : > { %6020 = vmatpush3.bf16.msra.mxu0 %v6019_v8 }
 0x9e2   : > { %6022 = vmatprep.subr.bf16.mxu0 %v6021_v11 }
 0x9e5   : > { %6024 = vmatpush3.bf16.msra.mxu0 %v6023_v16  ;;  %v4046_v10 = vpop.f32.mrb[18].mxu1 }
 0x9e6   : > { %v4048_v60 = vpop.f32.mrb[19].mxu1  ;;  %6026 = vmatprep.subr.bf16.mxu0 %v6025_v17  ;;  %v4079_v57 = vadd.f32 %v4068_v50, %v4046_v10 }
 0x9e7   : > { %v4080_v20 = vadd.f32 %v4072_v54, %v4048_v60 }
 0x9e8   : > { %v4083_v58 = vmax.f32 %v4079_v57, 0.0 }
 0x9e9   : > { %v4084_v23 = vmax.f32 %v4080_v20, 0.0  ;;  %6028 = vmatpush3.bf16.msra.mxu0 %v6027_v44 }
 0x9ea   : > { %6030 = vmatprep.subr.bf16.mxu0 %v6029_v6 }
 0x9eb   : > { %4284 = vmatprep.mubr.f32.mxu0 %v4084_v23 }
 0x9ed   : > { %6032 = vmatpush3.bf16.msra.mxu0 %v6031_v24 }
 0x9ee   : > { %6034 = vmatprep.subr.bf16.mxu0 %v6033_v25 }
 0x9f1   : > { %6036 = vmatpush3.bf16.msra.mxu0 %v6035_v28 }
 0x9f2   : > { %6038 = vmatprep.subr.bf16.mxu0 %v6037_v29 }
 0x9f5   : > { %6040 = vmatpush3.bf16.msra.mxu0 %v6039_v37 }
 0x9f6   : > { %6042 = vmatprep.subr.bf16.mxu0 %v6041_v40 }
 0x9f9   : > { %6044 = vmatpush3.bf16.msra.mxu0 %v6043_v32 }
 0x9fa   : > { %6046 = vmatprep.subr.bf16.mxu0 %v6045_v51 }
 0x9fd   : > { %6048 = vmatpush3.bf16.msra.mxu0 %v6047_v56 }
 0xa00   : > { %4285 = vmatmul.mubr.f32.vlgmr.msra.gmra.mrb[32].mxu0 %v4083_v58 }
 0xab3   : > { %v4947_v62 = vpop.f32.mrb[30].mxu0 }
 0xab4   : > { %v4948_v61 = vpop.f32.mrb[31].mxu0 }
 0xab5   : > { %v4949_v63 = vadd.f32 %v4948_v61, %v4947_v62 }
 0xab7   : > { %v4217_v4 = vadd.f32 %v4949_v63, %v4149_v0 }
 0xad3   : > { %v4982_v1 = vpop.f32.mrb[32].mxu0 }
 0xad4   : > { %v4983_v3 = vpop.f32.mrb[33].mxu0 }
 0xad5   : > { %v4984_v41 = vadd.f32 %v4983_v3, %v4982_v1 }
 0xad7   : > { %v4287_v43 = vadd.f32 %v4984_v41, %v4217_v4 }
 0xad9   : > { %4290 = vst [vmem:[%s648_s28] sm:$0x1] %v4287_v43 }
 0xada   : > { %6166 = shalt.err (!%p6163_p3)
}
 0xadb   : > { %s6167_s26 = scalar_lea.hbm %s8617_s21, 16  ;;  %s6171_s29 = scalar_lea.hbm %s8718_s30, 32 }
 0xadc   : > { %p6168_p4 = scmp.ne.s32.totalorder %s8617_s21, %s6167_s26  ;;  %p6172_p9 = scmp.lt.u32.totalorder %s8617_s21, %s8718_s30 }
 0xadd   : > { %p6173_p10 = scmp.lt.u32.totalorder %s6171_s29, %s6167_s26  ;;  %p6175_p12 = scmp.lt.u32.totalorder %s6167_s26, %s8617_s21 }
 0xade   : > { %p6169_p7 = pnand %p6168_p4, %p6370_p5 }
 0xadf   : > { %p6174_p11 = por %p6173_p10, %p6172_p9 }
 0xae0   : > { %p6170_p8 = pneg %p6169_p7 }
 0xae1   : > { %p6176_p13 = por %p6175_p12, %p6174_p11 }
 0xae3   : > { %p6177_p0 = pnand %p6176_p13, %p6170_p8 }
 0xae5   : > { %6180 = shalt.err (!%p6177_p0)
}
 0xae6   : > { %6110 = dma.vmem_to_hbm [thread:$0]  (%p6370_p5), %s8619_s0, 16, %s8617_s21, %s4292_s1  }
 0xae7 PF: > { %s8719_s4 = sld [smem:[#allocation11_spill]]  ;;  %s8720_s5 = sld [smem:[#allocation9_spill]] }
 0xaed   : > { %p6116_p1 = scmp.ge.s32.totalorder %s8719_s4, 2  ;;  %s4316_s22 = sand.u32 1, %s8720_s5  }
 0xaee   : > { %s4317_s28 = scalar_lea.sflag [#allocation7], %s4316_s22 }
 0xaef   : > { %p6113_p2 = pnand %p6116_p1, %p6374_p6 }
 0xaf1   : > { %6198 = dma.done.wait (!%p6113_p2), %s4317_s28, 16  }
 0xaf2   : > { %6200 = vsyncadd (!%p6113_p2), %s4317_s28, 4294967280  ;;  %s8722_s27 = sld [smem:[#allocation12_spill]]  ;;  %s8723_s26 = sld [smem:[#allocation10_spill]] }
 0xaf3   : > { %s8724_s29 = sld [smem:[#allocation13_spill]]  ;;  %s8725_s2 = smov %s6207_s25 }
 0xaf8   : > { %p31_p3 = scmp.ge.s32.totalorder %s8722_s27, 4   ;;  %s8726_s25 = smov %s8723_s26 }
 0xaf9   : > { %s8727_s26 = smov %s8724_s29 }
 0xafa   :  { %33 = sbr.rel (!%p31_p3) target bundleno = 11 (0xb), region = 152 }
 0xb01   :  { %4321 = vsyncpa [#allocation7], 1 }
 0xb02   :  { %4323 = vsyncpa [#allocation7 + $0x1], 1 }

</bundles_post_ra>
